<compile_context>
chip_gen: v6e
topology: v6e:2x2x1
jax: 0.10.0
libtpu: 0.0.40
codegen_flags: <defaults>
</compile_context>

<pallas_src>
import functools

import jax
import jax.numpy as jnp
from jax.experimental import pallas as pl
from jax.experimental.pallas import tpu as pltpu  # noqa: F401  (TPU backend)

F32 = jnp.float32
BF16 = jnp.bfloat16
LN_EPS = 1e-5


def _round8(n):
    return max(8, -(-n // 8) * 8)


# ============================================================================
# The single fused forward kernel
# ============================================================================

def _fused_forward_kernel(*refs, plan, eps):
    o_ref = refs[-1]

    def get(i):
        return refs[i][...]

    # --- consolidated cond-conv contributions: ONE matmul per distinct stride
    cond_all = {}
    for s, c in plan["cond"].items():
        cond_all[s] = (jnp.dot(get(c["cf"]), get(c["w"]),
                               preferred_element_type=F32) + get(c["b"]))

    def layernorm(z, g, b):
        mu = jnp.mean(z, axis=-1, keepdims=True)
        zc = z - mu
        var = jnp.mean(zc * zc, axis=-1, keepdims=True)
        return zc * jax.lax.rsqrt(var + eps) * g + b

    def res_block(x, p):
        d = p["dim"]
        # diffusion-step bias broadcast to tokens via a one-hot batch matmul
        # (no (B*L, d) slab is ever materialised in HBM).
        t = jnp.dot(get(p["Rb"]), get(p["t"]), preferred_element_type=F32)
        z = layernorm(x + t, get(p["g"]), get(p["b"]))
        if p["type"] == "s4":
            # TODO(synk): surrogate for the unprovided S4 SSM layer:
            # depthwise skip (D*u) -> GELU -> merged GLU output linear.
            h = jax.nn.gelu(z * get(p["D"])).astype(BF16)
            y = jnp.dot(h, get(p["Wag"]),
                        preferred_element_type=F32) + get(p["bag"])
            z = y[:, :d] * jax.nn.sigmoid(y[:, d:])
        else:  # feed-forward inverted bottleneck
            h = jax.nn.gelu(jnp.dot(z.astype(BF16), get(p["W1"]),
                                    preferred_element_type=F32) + get(p["b1"]))
            z = jnp.dot(h.astype(BF16), get(p["W2"]),
                        preferred_element_type=F32) + get(p["b2"])
        c = cond_all[p["stride"]][:, p["coff"]:p["coff"] + d]
        return z + c + x

    def down_pool(x, p):
        # '... h (l s) -> ... (h s) l' + linear, done as one-hot tap gathers
        # (exact f32 selections) followed by one bf16 weight matmul.
        taps = [jnp.dot(get(g), x, preferred_element_type=F32) for g in p["G"]]
        xg = jnp.concatenate(taps, axis=-1).astype(BF16)
        return jnp.dot(xg, get(p["W"]),
                       preferred_element_type=F32) + get(p["b"])

    def up_pool(x, p):
        # linear (+ optional causal shift) + '(h s) l -> h (l s)' via one-hot
        # tap scatters; the (h,s) permutation is folded into the weight.
        h_out = p["h_out"]
        y = jnp.dot(x.astype(BF16), get(p["W"]),
                    preferred_element_type=F32) + get(p["b"])
        out = None
        for s, e in enumerate(p["E"]):
            part = jnp.dot(get(e), y[:, s * h_out:(s + 1) * h_out],
                           preferred_element_type=F32)
            out = part if out is None else out + part
        return out

    # ---- init conv (1x1) + ReLU ----
    x = jnp.dot(get(plan["x"]).astype(BF16), get(plan["init_w"]),
                preferred_element_type=F32) + get(plan["init_b"])
    x = jnp.maximum(x, 0.0)

    # ---- SaShiMi U-Net (unet=True) with the reference skip stack ----
    skips = [x]
    for p in plan["d_layers"]:
        x = res_block(x, p) if p["kind"] == "res" else down_pool(x, p)
        skips.append(x)
    for p in plan["c_layers"]:
        x = res_block(x, p)
    x = x + skips.pop()
    for blk in plan["u_layers"]:
        for p in blk:
            x = res_block(x, p) if p["kind"] == "res" else up_pool(x, p)
            x = x + skips.pop()
    assert not skips

    # ---- final LayerNorm + conv1x1 + ReLU + conv1x1 (lane-dense output) ----
    fin = plan["final"]
    z = layernorm(x, get(fin["g"]), get(fin["b"]))
    h = jnp.maximum(jnp.dot(z.astype(BF16), get(fin["W1"]),
                            preferred_element_type=F32) + get(fin["b1"]), 0.0)
    o_ref[...] = jnp.dot(h.astype(BF16), get(fin["W2"]),
                         preferred_element_type=F32) + get(fin["b2"])


# ============================================================================
# Parameter construction (deterministic, synthetic; prepped once for TPU)
# ============================================================================

class KeyGen:
    def __init__(self, key):
        self.key = key

    def __call__(self):
        self.key, k = jax.random.split(self.key)
        return k


def _dense(kg, out_dim, in_dim, scale=0.1):
    """PyTorch-layout weight (out, in) + bias (out,)."""
    w = scale * jax.random.normal(kg(), (out_dim, in_dim), F32)
    b = scale * jax.random.normal(kg(), (out_dim,), F32)
    return w, b


def _enumerate_structure(cfg, L0):
    """Mirror the SSSDSAImputer constructor (unet=True, len(pool)==2)."""
    H, L = cfg["d_model"], L0
    pool, n_layers, ffe = cfg["pool"], cfg["n_layers"], cfg["ff"]
    d, c, u = [], [], []
    for i, p in enumerate(pool):
        stride = 1 if i == 0 else p
        for _ in range(n_layers):
            d.append(("s4", H, stride, L))
            if ffe > 0:
                d.append(("ff", H, stride, L))
        d.append(("down", H, p, L))
        H *= cfg["expand"]
        L //= p
    for _ in range(n_layers):
        c.append(("s4", H, pool[1] * 2, L))
        if ffe > 0:
            c.append(("ff", H, pool[1] * 2, L))
    for i, p in enumerate(pool[::-1]):
        blk = []
        H //= cfg["expand"]
        blk.append(("up", H, p, L))
        L *= p
        stride = pool[0] if i == 0 else 1
        for _ in range(n_layers):
            blk.append(("s4", H, stride, L))
            if ffe > 0:
                blk.append(("ff", H, stride, L))
        u.append(blk)
    assert H == cfg["d_model"] and L == L0
    return dict(d=d, c=c, u=u)


def build_model(kg, cfg, B, L0):
    d_model = cfg["d_model"]
    in_ch = cfg["in_channels"]
    out_ch = cfg["out_channels"]
    dse_out = cfg["dse_out"]
    causal_up = not cfg["bidirectional"]

    prod = 1
    for p in cfg["pool"]:
        prod *= p
    assert L0 % prod == 0, "sequence length must be divisible by prod(pool)"

    struct = _enumerate_structure(cfg, L0)
    all_entries = struct["d"] + struct["c"] + [e for blk in struct["u"] for e in blk]
    res_entries = [e for e in all_entries if e[0] in ("s4", "ff")]
    strides = sorted({e[2] for e in res_entries})
    n_res = len(res_entries)
    n_dyn = 1 + len(strides) + n_res      # x, per-stride cond feats, per-block t

    statics = []

    def add(a):
        statics.append(a)
        return n_dyn + len(statics) - 1

    b_pad = _round8(B)
    in_pad = _round8(in_ch)
    out_pad = 128 * pl.cdiv(out_ch, 128)  # lane-dense final store

    plan = dict(B=B, L0=L0, b_pad=b_pad, in_pad=in_pad, out_pad=out_pad,
                strides=strides, x=0)

    # token <- batch one-hot broadcast matrices, one per distinct token count
    r_cache = {}

    def bcast_idx(L):
        if L not in r_cache:
            tok = jnp.arange(B * L)
            r = (jnp.arange(b_pad)[None, :] == (tok // L)[:, None]).astype(F32)
            r_cache[L] = add(r)
        return r_cache[L]

    # ---- init conv (input channels padded to >=8 once, at build time) ----
    w, b = _dense(kg, d_model, in_ch)
    plan["init_w"] = add(jnp.pad(w.T, ((0, in_pad - in_ch), (0, 0))).astype(BF16))
    plan["init_b"] = add(b.reshape(1, -1))

    # ---- diffusion-step-embedding MLP (runs in tiny XLA glue) ----
    fc1_w, fc1_b = _dense(kg, cfg["dse_mid"], cfg["dse_in"])
    fc2_w, fc2_b = _dense(kg, dse_out, cfg["dse_mid"])

    # per-block fc_t (stacked into one matmul) + per-stride consolidated cond
    t_ws, t_bs, t_dims = [], [], []
    cond_ws = {s: [] for s in strides}
    cond_bs = {s: [] for s in strides}
    cond_off = {s: 0 for s in strides}
    res_idx = [0]

    def make_res(kind, dim, stride, L):
        k = res_idx[0]
        res_idx[0] += 1
        p = dict(kind="res", type=kind, dim=dim, stride=stride,
                 t=1 + len(strides) + k, Rb=bcast_idx(L))
        p["g"] = add(jnp.ones((1, dim), F32))
        p["b"] = add(jnp.zeros((1, dim), F32))
        tw, tb = _dense(kg, dim, dse_out)
        t_ws.append(tw)
        t_bs.append(tb)
        t_dims.append(dim)
        # cond_conv: Conv1d(2*in_ch, dim, kernel_size=stride, stride=stride)
        c2, kk = 2 * in_ch, stride
        ck, ck_pad = c2 * kk, _round8(c2 * kk)
        wc = 0.1 * jax.random.normal(kg(), (dim, c2, kk), F32)
        bc = 0.1 * jax.random.normal(kg(), (dim,), F32)
        cond_ws[stride].append(
            jnp.pad(wc.reshape(dim, ck), ((0, 0), (0, ck_pad - ck))).T.astype(BF16))
        cond_bs[stride].append(bc)
        p["coff"] = cond_off[stride]
        cond_off[stride] += dim
        if kind == "s4":
            # TODO(synk): surrogate parameters for the unprovided S4 layer.
            p["D"] = add(0.1 * jax.random.normal(kg(), (1, dim), F32))
            wo, bo = _dense(kg, 2 * dim, dim)   # merged GLU output linear
            p["Wag"] = add(wo.T.astype(BF16))   # cols [:d]=value, [d:]=gate
            p["bag"] = add(bo.reshape(1, -1))
        else:
            w1, b1 = _dense(kg, dim * cfg["ff"], dim)
            w2, b2 = _dense(kg, dim, dim * cfg["ff"])
            p["W1"] = add(w1.T.astype(BF16))
            p["b1"] = add(b1.reshape(1, -1))
            p["W2"] = add(w2.T.astype(BF16))
            p["b2"] = add(b2.reshape(1, -1))
        return p

    def make_down(h_in, pool_, L_in):
        h_out = h_in * cfg["expand"]
        w, b = _dense(kg, h_out, h_in * pool_)
        # fold the '(h s)' -> '(s h)' column permutation into the weight
        wp = (w.reshape(h_out, h_in, pool_).transpose(0, 2, 1)
               .reshape(h_out, pool_ * h_in))
        Lc = L_in // pool_
        tc = jnp.arange(B * Lc)
        col = jnp.arange(B * L_in)[None, :]
        g_idx = [add((col == (tc * pool_ + s)[:, None]).astype(F32))
                 for s in range(pool_)]
        return dict(kind="down", G=g_idx,
                    W=add(wp.T.astype(BF16)), b=add(b.reshape(1, -1)))

    def make_up(h_out, pool_, Lc, causal):
        h_in = h_out * cfg["expand"]
        w, b = _dense(kg, h_out * pool_, h_in)
        # fold the '(h s)' -> '(s h)' row permutation into weight and bias
        wp = (w.reshape(h_out, pool_, h_in).transpose(1, 0, 2)
               .reshape(pool_ * h_out, h_in))
        bp = b.reshape(h_out, pool_).T.reshape(1, pool_ * h_out)
        Lf = Lc * pool_
        tf = jnp.arange(B * Lf)
        l = (tf % Lf) // pool_
        tap = (tf % Lf) % pool_
        src_l = l - 1 if causal else l
        src = (tf // Lf) * Lc + src_l
        col = jnp.arange(B * Lc)[None, :]
        e_idx = []
        for s in range(pool_):
            valid = (tap == s) & (src_l >= 0)
            e_idx.append(add(((col == src[:, None]) & valid[:, None]).astype(F32)))
        return dict(kind="up", h_out=h_out, E=e_idx,
                    W=add(wp.T.astype(BF16)), b=add(bp))

    def build_layer(entry):
        kind, dim, sp, L = entry
        if kind in ("s4", "ff"):
            return make_res(kind, dim, sp, L)
        if kind == "down":
            return make_down(dim, sp, L)
        return make_up(dim, sp, L, causal_up)

    plan["d_layers"] = [build_layer(e) for e in struct["d"]]
    plan["c_layers"] = [build_layer(e) for e in struct["c"]]
    plan["u_layers"] = [[build_layer(e) for e in blk] for blk in struct["u"]]

    # consolidated cond-conv weights: one matmul per stride inside the kernel
    plan["cond"] = {}
    for j, s in enumerate(strides):
        wc = jnp.concatenate(cond_ws[s], axis=1)
        bc = jnp.concatenate(cond_bs[s], axis=0).reshape(1, -1)
        plan["cond"][s] = dict(cf=1 + j, w=add(wc), b=add(bc))

    # final LayerNorm + conv1x1 + ReLU + conv1x1 (output lane-padded to 128)
    fin = dict(g=add(jnp.ones((1, d_model), F32)),
               b=add(jnp.zeros((1, d_model), F32)))
    w1, b1 = _dense(kg, d_model, d_model)
    fin["W1"] = add(w1.T.astype(BF16))
    fin["b1"] = add(b1.reshape(1, -1))
    w2, b2 = _dense(kg, out_ch, d_model)
    fin["W2"] = add(jnp.pad(w2.T, ((0, 0), (0, out_pad - out_ch))).astype(BF16))
    fin["b2"] = add(jnp.pad(b2, ((0, out_pad - out_ch),)).reshape(1, -1))
    plan["final"] = fin

    # stacked per-block fc_t (single matmul in glue) + split offsets
    offs, o = [], 0
    for d in t_dims:
        offs.append((o, d))
        o += d

    return dict(
        plan=plan,
        statics=statics,
        fc_t1_wT=fc1_w.T, fc_t1_b=fc1_b,
        fc_t2_wT=fc2_w.T, fc_t2_b=fc2_b,
        t_stack_wT=jnp.concatenate([tw.T for tw in t_ws], axis=1),
        t_stack_b=jnp.concatenate(t_bs, axis=0),
        t_slices=offs,
    )


# ============================================================================
# Forward pass (glue + the single pallas_call)
# ============================================================================

def _swish(v):
    return v * jax.nn.sigmoid(v)


def _im2col_cond(cond, k):
    """cond_conv (kernel==stride==k) unfolded to token layout.

    Because the stride equals the kernel size this is a pure pad + slice +
    reshape (no gather).  Columns ordered (channel, tap) to match the
    weight.reshape(dim, 2c*k) layout.
    """
    B, c2, lt = cond.shape
    pad = (k - 1) // 2
    lo = (lt + 2 * pad - k) // k + 1
    cp = jnp.pad(cond, ((0, 0), (0, 0), (pad, pad)))[:, :, :lo * k]
    cf = cp.reshape(B, c2, lo, k).transpose(0, 2, 1, 3).reshape(B * lo, c2 * k)
    ck_pad = _round8(c2 * k)
    return jnp.pad(cf, ((0, 0), (0, ck_pad - c2 * k))).astype(BF16)


def forward(params, noise, conditional, mask, diffusion_steps, cfg):
    plan = params["plan"]
    B, in_ch, L0 = noise.shape
    assert B == plan["B"] and L0 == plan["L0"]

    cond = jnp.concatenate([conditional * mask, mask.astype(F32)], axis=1)

    # diffusion-step embedding (tiny (B, .) matmuls -> plain XLA glue)
    half = cfg["dse_in"] // 2
    freqs = jnp.exp(jnp.arange(half, dtype=F32) * -(jnp.log(10000.0) / (half - 1)))
    emb = diffusion_steps.astype(F32) * freqs[None, :]
    dse = jnp.concatenate([jnp.sin(emb), jnp.cos(emb)], axis=-1)
    dse = _swish(dse @ params["fc_t1_wT"] + params["fc_t1_b"])
    dse = _swish(dse @ params["fc_t2_wT"] + params["fc_t2_b"])

    # all per-block fc_t projections in ONE stacked matmul, split per block
    t_all = dse @ params["t_stack_wT"] + params["t_stack_b"]
    t_all = jnp.pad(t_all, ((0, plan["b_pad"] - B), (0, 0)))
    t_args = [t_all[:, o:o + d] for o, d in params["t_slices"]]

    # cond features once per distinct stride (shared by all blocks at a level)
    cf_args = [_im2col_cond(cond, s) for s in plan["strides"]]

    # token-major (B*L, C) input slab, channel-padded once
    x = noise.transpose(0, 2, 1).reshape(B * L0, in_ch).astype(F32)
    x = jnp.pad(x, ((0, 0), (0, plan["in_pad"] - in_ch)))

    args = [x] + cf_args + t_args + list(params["statics"])

    out = pl.pallas_call(
        functools.partial(_fused_forward_kernel, plan=plan, eps=LN_EPS),
        out_shape=jax.ShapeDtypeStruct((B * L0, plan["out_pad"]), F32),
    )(*args)

    out_ch = cfg["out_channels"]
    return out[:, :out_ch].reshape(B, L0, out_ch).transpose(0, 2, 1)


# ============================================================================
# Main
# ============================================================================

CFG = dict(
    d_model=16,
    n_layers=1,
    pool=(2, 2),
    expand=2,
    ff=2,
    in_channels=1,
    out_channels=1,
    dse_in=16,
    dse_mid=32,
    dse_out=32,
    bidirectional=True,   # -> UpPool causal=False
)

if __name__ == "__main__":
    root = jax.random.PRNGKey(0)
    kp, k1, k2, k3 = jax.random.split(root, 4)

    B, L = 2, 16
    params = build_model(KeyGen(kp), CFG, B, L)

    noise = jax.random.normal(k1, (B, CFG["in_channels"], L), F32)
    conditional = jax.random.normal(k2, (B, CFG["in_channels"], L), F32)
    mask = (jax.random.uniform(k3, (B, CFG["in_channels"], L)) > 0.5).astype(F32)
    diffusion_steps = jnp.array([[3.0], [7.0]], F32)

    fwd = jax.jit(lambda n, c, m, d: forward(params, n, c, m, d, CFG))
    out = jax.block_until_ready(fwd(noise, conditional, mask, diffusion_steps))

    assert out.shape == (B, CFG["out_channels"], L)
    assert bool(jnp.all(jnp.isfinite(out)))
    print("KERNEL_OK")
</pallas_src>

<mosaic_0001>
module attributes {stable_mosaic.version = 11 : i64} {
  func.func @_fused_forward_kernel(%arg0: memref<32x8xf32, #tpu.memory_space<vmem>>, %arg1: memref<32x8xbf16, #tpu.memory_space<vmem>>, %arg2: memref<16x8xbf16, #tpu.memory_space<vmem>>, %arg3: memref<8x8xbf16, #tpu.memory_space<vmem>>, %arg4: memref<8x16xf32, #tpu.memory_space<vmem>>, %arg5: memref<8x16xf32, #tpu.memory_space<vmem>>, %arg6: memref<8x32xf32, #tpu.memory_space<vmem>>, %arg7: memref<8x32xf32, #tpu.memory_space<vmem>>, %arg8: memref<8x64xf32, #tpu.memory_space<vmem>>, %arg9: memref<8x64xf32, #tpu.memory_space<vmem>>, %arg10: memref<8x32xf32, #tpu.memory_space<vmem>>, %arg11: memref<8x32xf32, #tpu.memory_space<vmem>>, %arg12: memref<8x16xf32, #tpu.memory_space<vmem>>, %arg13: memref<8x16xf32, #tpu.memory_space<vmem>>, %arg14: memref<8x16xbf16, #tpu.memory_space<vmem>>, %arg15: memref<1x16xf32, #tpu.memory_space<vmem>>, %arg16: memref<32x8xf32, #tpu.memory_space<vmem>>, %arg17: memref<1x16xf32, #tpu.memory_space<vmem>>, %arg18: memref<1x16xf32, #tpu.memory_space<vmem>>, %arg19: memref<1x16xf32, #tpu.memory_space<vmem>>, %arg20: memref<16x32xbf16, #tpu.memory_space<vmem>>, %arg21: memref<1x32xf32, #tpu.memory_space<vmem>>, %arg22: memref<1x16xf32, #tpu.memory_space<vmem>>, %arg23: memref<1x16xf32, #tpu.memory_space<vmem>>, %arg24: memref<16x32xbf16, #tpu.memory_space<vmem>>, %arg25: memref<1x32xf32, #tpu.memory_space<vmem>>, %arg26: memref<32x16xbf16, #tpu.memory_space<vmem>>, %arg27: memref<1x16xf32, #tpu.memory_space<vmem>>, %arg28: memref<16x32xf32, #tpu.memory_space<vmem>>, %arg29: memref<16x32xf32, #tpu.memory_space<vmem>>, %arg30: memref<32x32xbf16, #tpu.memory_space<vmem>>, %arg31: memref<1x32xf32, #tpu.memory_space<vmem>>, %arg32: memref<16x8xf32, #tpu.memory_space<vmem>>, %arg33: memref<1x32xf32, #tpu.memory_space<vmem>>, %arg34: memref<1x32xf32, #tpu.memory_space<vmem>>, %arg35: memref<1x32xf32, #tpu.memory_space<vmem>>, %arg36: memref<32x64xbf16, #tpu.memory_space<vmem>>, %arg37: memref<1x64xf32, #tpu.memory_space<vmem>>, %arg38: memref<1x32xf32, #tpu.memory_space<vmem>>, %arg39: memref<1x32xf32, #tpu.memory_space<vmem>>, %arg40: memref<32x64xbf16, #tpu.memory_space<vmem>>, %arg41: memref<1x64xf32, #tpu.memory_space<vmem>>, %arg42: memref<64x32xbf16, #tpu.memory_space<vmem>>, %arg43: memref<1x32xf32, #tpu.memory_space<vmem>>, %arg44: memref<8x16xf32, #tpu.memory_space<vmem>>, %arg45: memref<8x16xf32, #tpu.memory_space<vmem>>, %arg46: memref<64x64xbf16, #tpu.memory_space<vmem>>, %arg47: memref<1x64xf32, #tpu.memory_space<vmem>>, %arg48: memref<8x8xf32, #tpu.memory_space<vmem>>, %arg49: memref<1x64xf32, #tpu.memory_space<vmem>>, %arg50: memref<1x64xf32, #tpu.memory_space<vmem>>, %arg51: memref<1x64xf32, #tpu.memory_space<vmem>>, %arg52: memref<64x128xbf16, #tpu.memory_space<vmem>>, %arg53: memref<1x128xf32, #tpu.memory_space<vmem>>, %arg54: memref<1x64xf32, #tpu.memory_space<vmem>>, %arg55: memref<1x64xf32, #tpu.memory_space<vmem>>, %arg56: memref<64x128xbf16, #tpu.memory_space<vmem>>, %arg57: memref<1x128xf32, #tpu.memory_space<vmem>>, %arg58: memref<128x64xbf16, #tpu.memory_space<vmem>>, %arg59: memref<1x64xf32, #tpu.memory_space<vmem>>, %arg60: memref<16x8xf32, #tpu.memory_space<vmem>>, %arg61: memref<16x8xf32, #tpu.memory_space<vmem>>, %arg62: memref<64x64xbf16, #tpu.memory_space<vmem>>, %arg63: memref<1x64xf32, #tpu.memory_space<vmem>>, %arg64: memref<1x32xf32, #tpu.memory_space<vmem>>, %arg65: memref<1x32xf32, #tpu.memory_space<vmem>>, %arg66: memref<1x32xf32, #tpu.memory_space<vmem>>, %arg67: memref<32x64xbf16, #tpu.memory_space<vmem>>, %arg68: memref<1x64xf32, #tpu.memory_space<vmem>>, %arg69: memref<1x32xf32, #tpu.memory_space<vmem>>, %arg70: memref<1x32xf32, #tpu.memory_space<vmem>>, %arg71: memref<32x64xbf16, #tpu.memory_space<vmem>>, %arg72: memref<1x64xf32, #tpu.memory_space<vmem>>, %arg73: memref<64x32xbf16, #tpu.memory_space<vmem>>, %arg74: memref<1x32xf32, #tpu.memory_space<vmem>>, %arg75: memref<32x16xf32, #tpu.memory_space<vmem>>, %arg76: memref<32x16xf32, #tpu.memory_space<vmem>>, %arg77: memref<32x32xbf16, #tpu.memory_space<vmem>>, %arg78: memref<1x32xf32, #tpu.memory_space<vmem>>, %arg79: memref<1x16xf32, #tpu.memory_space<vmem>>, %arg80: memref<1x16xf32, #tpu.memory_space<vmem>>, %arg81: memref<1x16xf32, #tpu.memory_space<vmem>>, %arg82: memref<16x32xbf16, #tpu.memory_space<vmem>>, %arg83: memref<1x32xf32, #tpu.memory_space<vmem>>, %arg84: memref<1x16xf32, #tpu.memory_space<vmem>>, %arg85: memref<1x16xf32, #tpu.memory_space<vmem>>, %arg86: memref<16x32xbf16, #tpu.memory_space<vmem>>, %arg87: memref<1x32xf32, #tpu.memory_space<vmem>>, %arg88: memref<32x16xbf16, #tpu.memory_space<vmem>>, %arg89: memref<1x16xf32, #tpu.memory_space<vmem>>, %arg90: memref<8x64xbf16, #tpu.memory_space<vmem>>, %arg91: memref<1x64xf32, #tpu.memory_space<vmem>>, %arg92: memref<8x128xbf16, #tpu.memory_space<vmem>>, %arg93: memref<1x128xf32, #tpu.memory_space<vmem>>, %arg94: memref<8x128xbf16, #tpu.memory_space<vmem>>, %arg95: memref<1x128xf32, #tpu.memory_space<vmem>>, %arg96: memref<1x16xf32, #tpu.memory_space<vmem>>, %arg97: memref<1x16xf32, #tpu.memory_space<vmem>>, %arg98: memref<16x16xbf16, #tpu.memory_space<vmem>>, %arg99: memref<1x16xf32, #tpu.memory_space<vmem>>, %arg100: memref<16x128xbf16, #tpu.memory_space<vmem>>, %arg101: memref<1x128xf32, #tpu.memory_space<vmem>>, %arg102: memref<32x128xf32, #tpu.memory_space<vmem>>) attributes {dimension_semantics = [], scalar_prefetch = 0 : i64, scratch_operands = 0 : i64, tpu.core_type = #tpu.core_type<tc>} {
    %c0 = arith.constant 0 : index
    %c0_0 = arith.constant 0 : index
    %0 = vector.load %arg1[%c0, %c0_0] : memref<32x8xbf16, #tpu.memory_space<vmem>>, vector<32x8xbf16>
    %c0_1 = arith.constant 0 : index
    %c0_2 = arith.constant 0 : index
    %1 = vector.load %arg90[%c0_1, %c0_2] : memref<8x64xbf16, #tpu.memory_space<vmem>>, vector<8x64xbf16>
    %cst = arith.constant dense<0.000000e+00> : vector<32x64xf32>
    %2 = tpu.matmul %0, %1, %cst {dimension_numbers = #tpu.dot_dimension_numbers<[1], [0], [0], [1], [0, 0, 1, 1], [], []>} : vector<32x8xbf16>, vector<8x64xbf16>, vector<32x64xf32> -> vector<32x64xf32>
    %c0_3 = arith.constant 0 : index
    %c0_4 = arith.constant 0 : index
    %3 = vector.load %arg91[%c0_3, %c0_4] : memref<1x64xf32, #tpu.memory_space<vmem>>, vector<1x64xf32>
    %4 = vector.broadcast %3 : vector<1x64xf32> to vector<32x64xf32>
    %5 = arith.addf %2, %4 : vector<32x64xf32>
    %c0_5 = arith.constant 0 : index
    %c0_6 = arith.constant 0 : index
    %6 = vector.load %arg2[%c0_5, %c0_6] : memref<16x8xbf16, #tpu.memory_space<vmem>>, vector<16x8xbf16>
    %c0_7 = arith.constant 0 : index
    %c0_8 = arith.constant 0 : index
    %7 = vector.load %arg92[%c0_7, %c0_8] : memref<8x128xbf16, #tpu.memory_space<vmem>>, vector<8x128xbf16>
    %cst_9 = arith.constant dense<0.000000e+00> : vector<16x128xf32>
    %8 = tpu.matmul %6, %7, %cst_9 {dimension_numbers = #tpu.dot_dimension_numbers<[1], [0], [0], [1], [0, 0, 1, 1], [], []>} : vector<16x8xbf16>, vector<8x128xbf16>, vector<16x128xf32> -> vector<16x128xf32>
    %c0_10 = arith.constant 0 : index
    %c0_11 = arith.constant 0 : index
    %9 = vector.load %arg93[%c0_10, %c0_11] : memref<1x128xf32, #tpu.memory_space<vmem>>, vector<1x128xf32>
    %10 = vector.broadcast %9 : vector<1x128xf32> to vector<16x128xf32>
    %11 = arith.addf %8, %10 : vector<16x128xf32>
    %c0_12 = arith.constant 0 : index
    %c0_13 = arith.constant 0 : index
    %12 = vector.load %arg3[%c0_12, %c0_13] : memref<8x8xbf16, #tpu.memory_space<vmem>>, vector<8x8xbf16>
    %c0_14 = arith.constant 0 : index
    %c0_15 = arith.constant 0 : index
    %13 = vector.load %arg94[%c0_14, %c0_15] : memref<8x128xbf16, #tpu.memory_space<vmem>>, vector<8x128xbf16>
    %cst_16 = arith.constant dense<0.000000e+00> : vector<8x128xf32>
    %14 = tpu.matmul %12, %13, %cst_16 {dimension_numbers = #tpu.dot_dimension_numbers<[1], [0], [0], [1], [0, 0, 1, 1], [], []>} : vector<8x8xbf16>, vector<8x128xbf16>, vector<8x128xf32> -> vector<8x128xf32>
    %c0_17 = arith.constant 0 : index
    %c0_18 = arith.constant 0 : index
    %15 = vector.load %arg95[%c0_17, %c0_18] : memref<1x128xf32, #tpu.memory_space<vmem>>, vector<1x128xf32>
    %16 = vector.broadcast %15 : vector<1x128xf32> to vector<8x128xf32>
    %17 = arith.addf %14, %16 : vector<8x128xf32>
    %c0_19 = arith.constant 0 : index
    %c0_20 = arith.constant 0 : index
    %18 = vector.load %arg0[%c0_19, %c0_20] : memref<32x8xf32, #tpu.memory_space<vmem>>, vector<32x8xf32>
    %19 = arith.truncf %18 : vector<32x8xf32> to vector<32x8xbf16>
    %c0_21 = arith.constant 0 : index
    %c0_22 = arith.constant 0 : index
    %20 = vector.load %arg14[%c0_21, %c0_22] : memref<8x16xbf16, #tpu.memory_space<vmem>>, vector<8x16xbf16>
    %cst_23 = arith.constant dense<0.000000e+00> : vector<32x16xf32>
    %21 = tpu.matmul %19, %20, %cst_23 {dimension_numbers = #tpu.dot_dimension_numbers<[1], [0], [0], [1], [0, 0, 1, 1], [], []>} : vector<32x8xbf16>, vector<8x16xbf16>, vector<32x16xf32> -> vector<32x16xf32>
    %c0_24 = arith.constant 0 : index
    %c0_25 = arith.constant 0 : index
    %22 = vector.load %arg15[%c0_24, %c0_25] : memref<1x16xf32, #tpu.memory_space<vmem>>, vector<1x16xf32>
    %23 = vector.broadcast %22 : vector<1x16xf32> to vector<32x16xf32>
    %24 = arith.addf %21, %23 : vector<32x16xf32>
    %cst_26 = arith.constant 0.000000e+00 : f32
    %25 = vector.broadcast %cst_26 : f32 to vector<32x16xf32>
    %26 = arith.maximumf %24, %25 : vector<32x16xf32>
    %c0_27 = arith.constant 0 : index
    %c0_28 = arith.constant 0 : index
    %27 = vector.load %arg16[%c0_27, %c0_28] : memref<32x8xf32, #tpu.memory_space<vmem>>, vector<32x8xf32>
    %c0_29 = arith.constant 0 : index
    %c0_30 = arith.constant 0 : index
    %28 = vector.load %arg4[%c0_29, %c0_30] : memref<8x16xf32, #tpu.memory_space<vmem>>, vector<8x16xf32>
    %cst_31 = arith.constant dense<0.000000e+00> : vector<32x16xf32>
    %29 = tpu.matmul %27, %28, %cst_31 {dimension_numbers = #tpu.dot_dimension_numbers<[1], [0], [0], [1], [0, 0, 1, 1], [], []>} : vector<32x8xf32>, vector<8x16xf32>, vector<32x16xf32> -> vector<32x16xf32>
    %30 = arith.addf %26, %29 : vector<32x16xf32>
    %c0_32 = arith.constant 0 : index
    %c0_33 = arith.constant 0 : index
    %31 = vector.load %arg17[%c0_32, %c0_33] : memref<1x16xf32, #tpu.memory_space<vmem>>, vector<1x16xf32>
    %c0_34 = arith.constant 0 : index
    %c0_35 = arith.constant 0 : index
    %32 = vector.load %arg18[%c0_34, %c0_35] : memref<1x16xf32, #tpu.memory_space<vmem>>, vector<1x16xf32>
    %cst_36 = arith.constant dense<0.000000e+00> : vector<32xf32>
    %33 = vector.multi_reduction <add>, %30, %cst_36 [1] : vector<32x16xf32> to vector<32xf32>
    %34 = vector.shape_cast %33 : vector<32xf32> to vector<32x1xf32>
    %cst_37 = arith.constant 1.600000e+01 : f32
    %35 = vector.broadcast %cst_37 : f32 to vector<32x1xf32>
    %36 = arith.divf %34, %35 : vector<32x1xf32>
    %37 = vector.broadcast %36 : vector<32x1xf32> to vector<32x16xf32>
    %38 = arith.subf %30, %37 : vector<32x16xf32>
    %39 = arith.mulf %38, %38 : vector<32x16xf32>
    %cst_38 = arith.constant dense<0.000000e+00> : vector<32xf32>
    %40 = vector.multi_reduction <add>, %39, %cst_38 [1] : vector<32x16xf32> to vector<32xf32>
    %41 = vector.shape_cast %40 : vector<32xf32> to vector<32x1xf32>
    %cst_39 = arith.constant 1.600000e+01 : f32
    %42 = vector.broadcast %cst_39 : f32 to vector<32x1xf32>
    %43 = arith.divf %41, %42 : vector<32x1xf32>
    %cst_40 = arith.constant 9.99999974E-6 : f32
    %44 = vector.broadcast %cst_40 : f32 to vector<32x1xf32>
    %45 = arith.addf %43, %44 : vector<32x1xf32>
    %46 = math.rsqrt %45 : vector<32x1xf32>
    %47 = vector.broadcast %46 : vector<32x1xf32> to vector<32x16xf32>
    %48 = arith.mulf %38, %47 : vector<32x16xf32>
    %49 = vector.broadcast %31 : vector<1x16xf32> to vector<32x16xf32>
    %50 = arith.mulf %48, %49 : vector<32x16xf32>
    %51 = vector.broadcast %32 : vector<1x16xf32> to vector<32x16xf32>
    %52 = arith.addf %50, %51 : vector<32x16xf32>
    %c0_41 = arith.constant 0 : index
    %c0_42 = arith.constant 0 : index
    %53 = vector.load %arg19[%c0_41, %c0_42] : memref<1x16xf32, #tpu.memory_space<vmem>>, vector<1x16xf32>
    %54 = vector.broadcast %53 : vector<1x16xf32> to vector<32x16xf32>
    %55 = arith.mulf %52, %54 : vector<32x16xf32>
    %56 = arith.mulf %55, %55 : vector<32x16xf32>
    %57 = arith.mulf %55, %56 : vector<32x16xf32>
    %cst_43 = arith.constant 4.471500e-02 : f32
    %58 = vector.broadcast %cst_43 : f32 to vector<32x16xf32>
    %59 = arith.mulf %58, %57 : vector<32x16xf32>
    %60 = arith.addf %55, %59 : vector<32x16xf32>
    %cst_44 = arith.constant 0.797884583 : f32
    %61 = vector.broadcast %cst_44 : f32 to vector<32x16xf32>
    %62 = arith.mulf %61, %60 : vector<32x16xf32>
    %63 = math.tanh %62 : vector<32x16xf32>
    %cst_45 = arith.constant 1.000000e+00 : f32
    %64 = vector.broadcast %cst_45 : f32 to vector<32x16xf32>
    %65 = arith.addf %64, %63 : vector<32x16xf32>
    %cst_46 = arith.constant 5.000000e-01 : f32
    %66 = vector.broadcast %cst_46 : f32 to vector<32x16xf32>
    %67 = arith.mulf %66, %65 : vector<32x16xf32>
    %68 = arith.mulf %55, %67 : vector<32x16xf32>
    %69 = arith.truncf %68 : vector<32x16xf32> to vector<32x16xbf16>
    %c0_47 = arith.constant 0 : index
    %c0_48 = arith.constant 0 : index
    %70 = vector.load %arg20[%c0_47, %c0_48] : memref<16x32xbf16, #tpu.memory_space<vmem>>, vector<16x32xbf16>
    %cst_49 = arith.constant dense<0.000000e+00> : vector<32x32xf32>
    %71 = tpu.matmul %69, %70, %cst_49 {dimension_numbers = #tpu.dot_dimension_numbers<[1], [0], [0], [1], [0, 0, 1, 1], [], []>} : vector<32x16xbf16>, vector<16x32xbf16>, vector<32x32xf32> -> vector<32x32xf32>
    %c0_50 = arith.constant 0 : index
    %c0_51 = arith.constant 0 : index
    %72 = vector.load %arg21[%c0_50, %c0_51] : memref<1x32xf32, #tpu.memory_space<vmem>>, vector<1x32xf32>
    %73 = vector.broadcast %72 : vector<1x32xf32> to vector<32x32xf32>
    %74 = arith.addf %71, %73 : vector<32x32xf32>
    %75 = vector.extract_strided_slice %74 {offsets = [0, 0], sizes = [32, 16], strides = [1, 1]} : vector<32x32xf32> to vector<32x16xf32>
    %76 = vector.extract_strided_slice %74 {offsets = [0, 16], sizes = [32, 16], strides = [1, 1]} : vector<32x32xf32> to vector<32x16xf32>
    %77 = arith.negf %76 : vector<32x16xf32>
    %78 = math.exp %77 : vector<32x16xf32>
    %cst_52 = arith.constant 1.000000e+00 : f32
    %79 = vector.broadcast %cst_52 : f32 to vector<32x16xf32>
    %80 = arith.addf %79, %78 : vector<32x16xf32>
    %81 = arith.divf %79, %80 : vector<32x16xf32>
    %82 = arith.mulf %75, %81 : vector<32x16xf32>
    %83 = vector.extract_strided_slice %5 {offsets = [0, 0], sizes = [32, 16], strides = [1, 1]} : vector<32x64xf32> to vector<32x16xf32>
    %84 = arith.addf %82, %83 : vector<32x16xf32>
    %85 = arith.addf %84, %26 : vector<32x16xf32>
    %c0_53 = arith.constant 0 : index
    %c0_54 = arith.constant 0 : index
    %86 = vector.load %arg16[%c0_53, %c0_54] : memref<32x8xf32, #tpu.memory_space<vmem>>, vector<32x8xf32>
    %c0_55 = arith.constant 0 : index
    %c0_56 = arith.constant 0 : index
    %87 = vector.load %arg5[%c0_55, %c0_56] : memref<8x16xf32, #tpu.memory_space<vmem>>, vector<8x16xf32>
    %cst_57 = arith.constant dense<0.000000e+00> : vector<32x16xf32>
    %88 = tpu.matmul %86, %87, %cst_57 {dimension_numbers = #tpu.dot_dimension_numbers<[1], [0], [0], [1], [0, 0, 1, 1], [], []>} : vector<32x8xf32>, vector<8x16xf32>, vector<32x16xf32> -> vector<32x16xf32>
    %89 = arith.addf %85, %88 : vector<32x16xf32>
    %c0_58 = arith.constant 0 : index
    %c0_59 = arith.constant 0 : index
    %90 = vector.load %arg22[%c0_58, %c0_59] : memref<1x16xf32, #tpu.memory_space<vmem>>, vector<1x16xf32>
    %c0_60 = arith.constant 0 : index
    %c0_61 = arith.constant 0 : index
    %91 = vector.load %arg23[%c0_60, %c0_61] : memref<1x16xf32, #tpu.memory_space<vmem>>, vector<1x16xf32>
    %cst_62 = arith.constant dense<0.000000e+00> : vector<32xf32>
    %92 = vector.multi_reduction <add>, %89, %cst_62 [1] : vector<32x16xf32> to vector<32xf32>
    %93 = vector.shape_cast %92 : vector<32xf32> to vector<32x1xf32>
    %cst_63 = arith.constant 1.600000e+01 : f32
    %94 = vector.broadcast %cst_63 : f32 to vector<32x1xf32>
    %95 = arith.divf %93, %94 : vector<32x1xf32>
    %96 = vector.broadcast %95 : vector<32x1xf32> to vector<32x16xf32>
    %97 = arith.subf %89, %96 : vector<32x16xf32>
    %98 = arith.mulf %97, %97 : vector<32x16xf32>
    %cst_64 = arith.constant dense<0.000000e+00> : vector<32xf32>
    %99 = vector.multi_reduction <add>, %98, %cst_64 [1] : vector<32x16xf32> to vector<32xf32>
    %100 = vector.shape_cast %99 : vector<32xf32> to vector<32x1xf32>
    %cst_65 = arith.constant 1.600000e+01 : f32
    %101 = vector.broadcast %cst_65 : f32 to vector<32x1xf32>
    %102 = arith.divf %100, %101 : vector<32x1xf32>
    %cst_66 = arith.constant 9.99999974E-6 : f32
    %103 = vector.broadcast %cst_66 : f32 to vector<32x1xf32>
    %104 = arith.addf %102, %103 : vector<32x1xf32>
    %105 = math.rsqrt %104 : vector<32x1xf32>
    %106 = vector.broadcast %105 : vector<32x1xf32> to vector<32x16xf32>
    %107 = arith.mulf %97, %106 : vector<32x16xf32>
    %108 = vector.broadcast %90 : vector<1x16xf32> to vector<32x16xf32>
    %109 = arith.mulf %107, %108 : vector<32x16xf32>
    %110 = vector.broadcast %91 : vector<1x16xf32> to vector<32x16xf32>
    %111 = arith.addf %109, %110 : vector<32x16xf32>
    %112 = arith.truncf %111 : vector<32x16xf32> to vector<32x16xbf16>
    %c0_67 = arith.constant 0 : index
    %c0_68 = arith.constant 0 : index
    %113 = vector.load %arg24[%c0_67, %c0_68] : memref<16x32xbf16, #tpu.memory_space<vmem>>, vector<16x32xbf16>
    %cst_69 = arith.constant dense<0.000000e+00> : vector<32x32xf32>
    %114 = tpu.matmul %112, %113, %cst_69 {dimension_numbers = #tpu.dot_dimension_numbers<[1], [0], [0], [1], [0, 0, 1, 1], [], []>} : vector<32x16xbf16>, vector<16x32xbf16>, vector<32x32xf32> -> vector<32x32xf32>
    %c0_70 = arith.constant 0 : index
    %c0_71 = arith.constant 0 : index
    %115 = vector.load %arg25[%c0_70, %c0_71] : memref<1x32xf32, #tpu.memory_space<vmem>>, vector<1x32xf32>
    %116 = vector.broadcast %115 : vector<1x32xf32> to vector<32x32xf32>
    %117 = arith.addf %114, %116 : vector<32x32xf32>
    %118 = arith.mulf %117, %117 : vector<32x32xf32>
    %119 = arith.mulf %117, %118 : vector<32x32xf32>
    %cst_72 = arith.constant 4.471500e-02 : f32
    %120 = vector.broadcast %cst_72 : f32 to vector<32x32xf32>
    %121 = arith.mulf %120, %119 : vector<32x32xf32>
    %122 = arith.addf %117, %121 : vector<32x32xf32>
    %cst_73 = arith.constant 0.797884583 : f32
    %123 = vector.broadcast %cst_73 : f32 to vector<32x32xf32>
    %124 = arith.mulf %123, %122 : vector<32x32xf32>
    %125 = math.tanh %124 : vector<32x32xf32>
    %cst_74 = arith.constant 1.000000e+00 : f32
    %126 = vector.broadcast %cst_74 : f32 to vector<32x32xf32>
    %127 = arith.addf %126, %125 : vector<32x32xf32>
    %cst_75 = arith.constant 5.000000e-01 : f32
    %128 = vector.broadcast %cst_75 : f32 to vector<32x32xf32>
    %129 = arith.mulf %128, %127 : vector<32x32xf32>
    %130 = arith.mulf %117, %129 : vector<32x32xf32>
    %131 = arith.truncf %130 : vector<32x32xf32> to vector<32x32xbf16>
    %c0_76 = arith.constant 0 : index
    %c0_77 = arith.constant 0 : index
    %132 = vector.load %arg26[%c0_76, %c0_77] : memref<32x16xbf16, #tpu.memory_space<vmem>>, vector<32x16xbf16>
    %cst_78 = arith.constant dense<0.000000e+00> : vector<32x16xf32>
    %133 = tpu.matmul %131, %132, %cst_78 {dimension_numbers = #tpu.dot_dimension_numbers<[1], [0], [0], [1], [0, 0, 1, 1], [], []>} : vector<32x32xbf16>, vector<32x16xbf16>, vector<32x16xf32> -> vector<32x16xf32>
    %c0_79 = arith.constant 0 : index
    %c0_80 = arith.constant 0 : index
    %134 = vector.load %arg27[%c0_79, %c0_80] : memref<1x16xf32, #tpu.memory_space<vmem>>, vector<1x16xf32>
    %135 = vector.broadcast %134 : vector<1x16xf32> to vector<32x16xf32>
    %136 = arith.addf %133, %135 : vector<32x16xf32>
    %137 = vector.extract_strided_slice %5 {offsets = [0, 16], sizes = [32, 16], strides = [1, 1]} : vector<32x64xf32> to vector<32x16xf32>
    %138 = arith.addf %136, %137 : vector<32x16xf32>
    %139 = arith.addf %138, %85 : vector<32x16xf32>
    %c0_81 = arith.constant 0 : index
    %c0_82 = arith.constant 0 : index
    %140 = vector.load %arg28[%c0_81, %c0_82] : memref<16x32xf32, #tpu.memory_space<vmem>>, vector<16x32xf32>
    %cst_83 = arith.constant dense<0.000000e+00> : vector<16x16xf32>
    %141 = tpu.matmul %140, %139, %cst_83 {dimension_numbers = #tpu.dot_dimension_numbers<[1], [0], [0], [1], [0, 0, 1, 1], [], []>} : vector<16x32xf32>, vector<32x16xf32>, vector<16x16xf32> -> vector<16x16xf32>
    %c0_84 = arith.constant 0 : index
    %c0_85 = arith.constant 0 : index
    %142 = vector.load %arg29[%c0_84, %c0_85] : memref<16x32xf32, #tpu.memory_space<vmem>>, vector<16x32xf32>
    %cst_86 = arith.constant dense<0.000000e+00> : vector<16x16xf32>
    %143 = tpu.matmul %142, %139, %cst_86 {dimension_numbers = #tpu.dot_dimension_numbers<[1], [0], [0], [1], [0, 0, 1, 1], [], []>} : vector<16x32xf32>, vector<32x16xf32>, vector<16x16xf32> -> vector<16x16xf32>
    %144 = tpu.concatenate %141, %143 in 1 : vector<16x16xf32>, vector<16x16xf32> -> vector<16x32xf32>
    %145 = arith.truncf %144 : vector<16x32xf32> to vector<16x32xbf16>
    %c0_87 = arith.constant 0 : index
    %c0_88 = arith.constant 0 : index
    %146 = vector.load %arg30[%c0_87, %c0_88] : memref<32x32xbf16, #tpu.memory_space<vmem>>, vector<32x32xbf16>
    %cst_89 = arith.constant dense<0.000000e+00> : vector<16x32xf32>
    %147 = tpu.matmul %145, %146, %cst_89 {dimension_numbers = #tpu.dot_dimension_numbers<[1], [0], [0], [1], [0, 0, 1, 1], [], []>} : vector<16x32xbf16>, vector<32x32xbf16>, vector<16x32xf32> -> vector<16x32xf32>
    %c0_90 = arith.constant 0 : index
    %c0_91 = arith.constant 0 : index
    %148 = vector.load %arg31[%c0_90, %c0_91] : memref<1x32xf32, #tpu.memory_space<vmem>>, vector<1x32xf32>
    %149 = vector.broadcast %148 : vector<1x32xf32> to vector<16x32xf32>
    %150 = arith.addf %147, %149 : vector<16x32xf32>
    %c0_92 = arith.constant 0 : index
    %c0_93 = arith.constant 0 : index
    %151 = vector.load %arg32[%c0_92, %c0_93] : memref<16x8xf32, #tpu.memory_space<vmem>>, vector<16x8xf32>
    %c0_94 = arith.constant 0 : index
    %c0_95 = arith.constant 0 : index
    %152 = vector.load %arg6[%c0_94, %c0_95] : memref<8x32xf32, #tpu.memory_space<vmem>>, vector<8x32xf32>
    %cst_96 = arith.constant dense<0.000000e+00> : vector<16x32xf32>
    %153 = tpu.matmul %151, %152, %cst_96 {dimension_numbers = #tpu.dot_dimension_numbers<[1], [0], [0], [1], [0, 0, 1, 1], [], []>} : vector<16x8xf32>, vector<8x32xf32>, vector<16x32xf32> -> vector<16x32xf32>
    %154 = arith.addf %150, %153 : vector<16x32xf32>
    %c0_97 = arith.constant 0 : index
    %c0_98 = arith.constant 0 : index
    %155 = vector.load %arg33[%c0_97, %c0_98] : memref<1x32xf32, #tpu.memory_space<vmem>>, vector<1x32xf32>
    %c0_99 = arith.constant 0 : index
    %c0_100 = arith.constant 0 : index
    %156 = vector.load %arg34[%c0_99, %c0_100] : memref<1x32xf32, #tpu.memory_space<vmem>>, vector<1x32xf32>
    %cst_101 = arith.constant dense<0.000000e+00> : vector<16xf32>
    %157 = vector.multi_reduction <add>, %154, %cst_101 [1] : vector<16x32xf32> to vector<16xf32>
    %158 = vector.shape_cast %157 : vector<16xf32> to vector<16x1xf32>
    %cst_102 = arith.constant 3.200000e+01 : f32
    %159 = vector.broadcast %cst_102 : f32 to vector<16x1xf32>
    %160 = arith.divf %158, %159 : vector<16x1xf32>
    %161 = vector.broadcast %160 : vector<16x1xf32> to vector<16x32xf32>
    %162 = arith.subf %154, %161 : vector<16x32xf32>
    %163 = arith.mulf %162, %162 : vector<16x32xf32>
    %cst_103 = arith.constant dense<0.000000e+00> : vector<16xf32>
    %164 = vector.multi_reduction <add>, %163, %cst_103 [1] : vector<16x32xf32> to vector<16xf32>
    %165 = vector.shape_cast %164 : vector<16xf32> to vector<16x1xf32>
    %cst_104 = arith.constant 3.200000e+01 : f32
    %166 = vector.broadcast %cst_104 : f32 to vector<16x1xf32>
    %167 = arith.divf %165, %166 : vector<16x1xf32>
    %cst_105 = arith.constant 9.99999974E-6 : f32
    %168 = vector.broadcast %cst_105 : f32 to vector<16x1xf32>
    %169 = arith.addf %167, %168 : vector<16x1xf32>
    %170 = math.rsqrt %169 : vector<16x1xf32>
    %171 = vector.broadcast %170 : vector<16x1xf32> to vector<16x32xf32>
    %172 = arith.mulf %162, %171 : vector<16x32xf32>
    %173 = vector.broadcast %155 : vector<1x32xf32> to vector<16x32xf32>
    %174 = arith.mulf %172, %173 : vector<16x32xf32>
    %175 = vector.broadcast %156 : vector<1x32xf32> to vector<16x32xf32>
    %176 = arith.addf %174, %175 : vector<16x32xf32>
    %c0_106 = arith.constant 0 : index
    %c0_107 = arith.constant 0 : index
    %177 = vector.load %arg35[%c0_106, %c0_107] : memref<1x32xf32, #tpu.memory_space<vmem>>, vector<1x32xf32>
    %178 = vector.broadcast %177 : vector<1x32xf32> to vector<16x32xf32>
    %179 = arith.mulf %176, %178 : vector<16x32xf32>
    %180 = arith.mulf %179, %179 : vector<16x32xf32>
    %181 = arith.mulf %179, %180 : vector<16x32xf32>
    %cst_108 = arith.constant 4.471500e-02 : f32
    %182 = vector.broadcast %cst_108 : f32 to vector<16x32xf32>
    %183 = arith.mulf %182, %181 : vector<16x32xf32>
    %184 = arith.addf %179, %183 : vector<16x32xf32>
    %cst_109 = arith.constant 0.797884583 : f32
    %185 = vector.broadcast %cst_109 : f32 to vector<16x32xf32>
    %186 = arith.mulf %185, %184 : vector<16x32xf32>
    %187 = math.tanh %186 : vector<16x32xf32>
    %cst_110 = arith.constant 1.000000e+00 : f32
    %188 = vector.broadcast %cst_110 : f32 to vector<16x32xf32>
    %189 = arith.addf %188, %187 : vector<16x32xf32>
    %cst_111 = arith.constant 5.000000e-01 : f32
    %190 = vector.broadcast %cst_111 : f32 to vector<16x32xf32>
    %191 = arith.mulf %190, %189 : vector<16x32xf32>
    %192 = arith.mulf %179, %191 : vector<16x32xf32>
    %193 = arith.truncf %192 : vector<16x32xf32> to vector<16x32xbf16>
    %c0_112 = arith.constant 0 : index
    %c0_113 = arith.constant 0 : index
    %194 = vector.load %arg36[%c0_112, %c0_113] : memref<32x64xbf16, #tpu.memory_space<vmem>>, vector<32x64xbf16>
    %cst_114 = arith.constant dense<0.000000e+00> : vector<16x64xf32>
    %195 = tpu.matmul %193, %194, %cst_114 {dimension_numbers = #tpu.dot_dimension_numbers<[1], [0], [0], [1], [0, 0, 1, 1], [], []>} : vector<16x32xbf16>, vector<32x64xbf16>, vector<16x64xf32> -> vector<16x64xf32>
    %c0_115 = arith.constant 0 : index
    %c0_116 = arith.constant 0 : index
    %196 = vector.load %arg37[%c0_115, %c0_116] : memref<1x64xf32, #tpu.memory_space<vmem>>, vector<1x64xf32>
    %197 = vector.broadcast %196 : vector<1x64xf32> to vector<16x64xf32>
    %198 = arith.addf %195, %197 : vector<16x64xf32>
    %199 = vector.extract_strided_slice %198 {offsets = [0, 0], sizes = [16, 32], strides = [1, 1]} : vector<16x64xf32> to vector<16x32xf32>
    %200 = vector.extract_strided_slice %198 {offsets = [0, 32], sizes = [16, 32], strides = [1, 1]} : vector<16x64xf32> to vector<16x32xf32>
    %201 = arith.negf %200 : vector<16x32xf32>
    %202 = math.exp %201 : vector<16x32xf32>
    %cst_117 = arith.constant 1.000000e+00 : f32
    %203 = vector.broadcast %cst_117 : f32 to vector<16x32xf32>
    %204 = arith.addf %203, %202 : vector<16x32xf32>
    %205 = arith.divf %203, %204 : vector<16x32xf32>
    %206 = arith.mulf %199, %205 : vector<16x32xf32>
    %207 = vector.extract_strided_slice %11 {offsets = [0, 0], sizes = [16, 32], strides = [1, 1]} : vector<16x128xf32> to vector<16x32xf32>
    %208 = arith.addf %206, %207 : vector<16x32xf32>
    %209 = arith.addf %208, %150 : vector<16x32xf32>
    %c0_118 = arith.constant 0 : index
    %c0_119 = arith.constant 0 : index
    %210 = vector.load %arg32[%c0_118, %c0_119] : memref<16x8xf32, #tpu.memory_space<vmem>>, vector<16x8xf32>
    %c0_120 = arith.constant 0 : index
    %c0_121 = arith.constant 0 : index
    %211 = vector.load %arg7[%c0_120, %c0_121] : memref<8x32xf32, #tpu.memory_space<vmem>>, vector<8x32xf32>
    %cst_122 = arith.constant dense<0.000000e+00> : vector<16x32xf32>
    %212 = tpu.matmul %210, %211, %cst_122 {dimension_numbers = #tpu.dot_dimension_numbers<[1], [0], [0], [1], [0, 0, 1, 1], [], []>} : vector<16x8xf32>, vector<8x32xf32>, vector<16x32xf32> -> vector<16x32xf32>
    %213 = arith.addf %209, %212 : vector<16x32xf32>
    %c0_123 = arith.constant 0 : index
    %c0_124 = arith.constant 0 : index
    %214 = vector.load %arg38[%c0_123, %c0_124] : memref<1x32xf32, #tpu.memory_space<vmem>>, vector<1x32xf32>
    %c0_125 = arith.constant 0 : index
    %c0_126 = arith.constant 0 : index
    %215 = vector.load %arg39[%c0_125, %c0_126] : memref<1x32xf32, #tpu.memory_space<vmem>>, vector<1x32xf32>
    %cst_127 = arith.constant dense<0.000000e+00> : vector<16xf32>
    %216 = vector.multi_reduction <add>, %213, %cst_127 [1] : vector<16x32xf32> to vector<16xf32>
    %217 = vector.shape_cast %216 : vector<16xf32> to vector<16x1xf32>
    %cst_128 = arith.constant 3.200000e+01 : f32
    %218 = vector.broadcast %cst_128 : f32 to vector<16x1xf32>
    %219 = arith.divf %217, %218 : vector<16x1xf32>
    %220 = vector.broadcast %219 : vector<16x1xf32> to vector<16x32xf32>
    %221 = arith.subf %213, %220 : vector<16x32xf32>
    %222 = arith.mulf %221, %221 : vector<16x32xf32>
    %cst_129 = arith.constant dense<0.000000e+00> : vector<16xf32>
    %223 = vector.multi_reduction <add>, %222, %cst_129 [1] : vector<16x32xf32> to vector<16xf32>
    %224 = vector.shape_cast %223 : vector<16xf32> to vector<16x1xf32>
    %cst_130 = arith.constant 3.200000e+01 : f32
    %225 = vector.broadcast %cst_130 : f32 to vector<16x1xf32>
    %226 = arith.divf %224, %225 : vector<16x1xf32>
    %cst_131 = arith.constant 9.99999974E-6 : f32
    %227 = vector.broadcast %cst_131 : f32 to vector<16x1xf32>
    %228 = arith.addf %226, %227 : vector<16x1xf32>
    %229 = math.rsqrt %228 : vector<16x1xf32>
    %230 = vector.broadcast %229 : vector<16x1xf32> to vector<16x32xf32>
    %231 = arith.mulf %221, %230 : vector<16x32xf32>
    %232 = vector.broadcast %214 : vector<1x32xf32> to vector<16x32xf32>
    %233 = arith.mulf %231, %232 : vector<16x32xf32>
    %234 = vector.broadcast %215 : vector<1x32xf32> to vector<16x32xf32>
    %235 = arith.addf %233, %234 : vector<16x32xf32>
    %236 = arith.truncf %235 : vector<16x32xf32> to vector<16x32xbf16>
    %c0_132 = arith.constant 0 : index
    %c0_133 = arith.constant 0 : index
    %237 = vector.load %arg40[%c0_132, %c0_133] : memref<32x64xbf16, #tpu.memory_space<vmem>>, vector<32x64xbf16>
    %cst_134 = arith.constant dense<0.000000e+00> : vector<16x64xf32>
    %238 = tpu.matmul %236, %237, %cst_134 {dimension_numbers = #tpu.dot_dimension_numbers<[1], [0], [0], [1], [0, 0, 1, 1], [], []>} : vector<16x32xbf16>, vector<32x64xbf16>, vector<16x64xf32> -> vector<16x64xf32>
    %c0_135 = arith.constant 0 : index
    %c0_136 = arith.constant 0 : index
    %239 = vector.load %arg41[%c0_135, %c0_136] : memref<1x64xf32, #tpu.memory_space<vmem>>, vector<1x64xf32>
    %240 = vector.broadcast %239 : vector<1x64xf32> to vector<16x64xf32>
    %241 = arith.addf %238, %240 : vector<16x64xf32>
    %242 = arith.mulf %241, %241 : vector<16x64xf32>
    %243 = arith.mulf %241, %242 : vector<16x64xf32>
    %cst_137 = arith.constant 4.471500e-02 : f32
    %244 = vector.broadcast %cst_137 : f32 to vector<16x64xf32>
    %245 = arith.mulf %244, %243 : vector<16x64xf32>
    %246 = arith.addf %241, %245 : vector<16x64xf32>
    %cst_138 = arith.constant 0.797884583 : f32
    %247 = vector.broadcast %cst_138 : f32 to vector<16x64xf32>
    %248 = arith.mulf %247, %246 : vector<16x64xf32>
    %249 = math.tanh %248 : vector<16x64xf32>
    %cst_139 = arith.constant 1.000000e+00 : f32
    %250 = vector.broadcast %cst_139 : f32 to vector<16x64xf32>
    %251 = arith.addf %250, %249 : vector<16x64xf32>
    %cst_140 = arith.constant 5.000000e-01 : f32
    %252 = vector.broadcast %cst_140 : f32 to vector<16x64xf32>
    %253 = arith.mulf %252, %251 : vector<16x64xf32>
    %254 = arith.mulf %241, %253 : vector<16x64xf32>
    %255 = arith.truncf %254 : vector<16x64xf32> to vector<16x64xbf16>
    %c0_141 = arith.constant 0 : index
    %c0_142 = arith.constant 0 : index
    %256 = vector.load %arg42[%c0_141, %c0_142] : memref<64x32xbf16, #tpu.memory_space<vmem>>, vector<64x32xbf16>
    %cst_143 = arith.constant dense<0.000000e+00> : vector<16x32xf32>
    %257 = tpu.matmul %255, %256, %cst_143 {dimension_numbers = #tpu.dot_dimension_numbers<[1], [0], [0], [1], [0, 0, 1, 1], [], []>} : vector<16x64xbf16>, vector<64x32xbf16>, vector<16x32xf32> -> vector<16x32xf32>
    %c0_144 = arith.constant 0 : index
    %c0_145 = arith.constant 0 : index
    %258 = vector.load %arg43[%c0_144, %c0_145] : memref<1x32xf32, #tpu.memory_space<vmem>>, vector<1x32xf32>
    %259 = vector.broadcast %258 : vector<1x32xf32> to vector<16x32xf32>
    %260 = arith.addf %257, %259 : vector<16x32xf32>
    %261 = vector.extract_strided_slice %11 {offsets = [0, 32], sizes = [16, 32], strides = [1, 1]} : vector<16x128xf32> to vector<16x32xf32>
    %262 = arith.addf %260, %261 : vector<16x32xf32>
    %263 = arith.addf %262, %209 : vector<16x32xf32>
    %c0_146 = arith.constant 0 : index
    %c0_147 = arith.constant 0 : index
    %264 = vector.load %arg44[%c0_146, %c0_147] : memref<8x16xf32, #tpu.memory_space<vmem>>, vector<8x16xf32>
    %cst_148 = arith.constant dense<0.000000e+00> : vector<8x32xf32>
    %265 = tpu.matmul %264, %263, %cst_148 {dimension_numbers = #tpu.dot_dimension_numbers<[1], [0], [0], [1], [0, 0, 1, 1], [], []>} : vector<8x16xf32>, vector<16x32xf32>, vector<8x32xf32> -> vector<8x32xf32>
    %c0_149 = arith.constant 0 : index
    %c0_150 = arith.constant 0 : index
    %266 = vector.load %arg45[%c0_149, %c0_150] : memref<8x16xf32, #tpu.memory_space<vmem>>, vector<8x16xf32>
    %cst_151 = arith.constant dense<0.000000e+00> : vector<8x32xf32>
    %267 = tpu.matmul %266, %263, %cst_151 {dimension_numbers = #tpu.dot_dimension_numbers<[1], [0], [0], [1], [0, 0, 1, 1], [], []>} : vector<8x16xf32>, vector<16x32xf32>, vector<8x32xf32> -> vector<8x32xf32>
    %268 = tpu.concatenate %265, %267 in 1 : vector<8x32xf32>, vector<8x32xf32> -> vector<8x64xf32>
    %269 = arith.truncf %268 : vector<8x64xf32> to vector<8x64xbf16>
    %c0_152 = arith.constant 0 : index
    %c0_153 = arith.constant 0 : index
    %270 = vector.load %arg46[%c0_152, %c0_153] : memref<64x64xbf16, #tpu.memory_space<vmem>>, vector<64x64xbf16>
    %cst_154 = arith.constant dense<0.000000e+00> : vector<8x64xf32>
    %271 = tpu.matmul %269, %270, %cst_154 {dimension_numbers = #tpu.dot_dimension_numbers<[1], [0], [0], [1], [0, 0, 1, 1], [], []>} : vector<8x64xbf16>, vector<64x64xbf16>, vector<8x64xf32> -> vector<8x64xf32>
    %c0_155 = arith.constant 0 : index
    %c0_156 = arith.constant 0 : index
    %272 = vector.load %arg47[%c0_155, %c0_156] : memref<1x64xf32, #tpu.memory_space<vmem>>, vector<1x64xf32>
    %273 = vector.broadcast %272 : vector<1x64xf32> to vector<8x64xf32>
    %274 = arith.addf %271, %273 : vector<8x64xf32>
    %c0_157 = arith.constant 0 : index
    %c0_158 = arith.constant 0 : index
    %275 = vector.load %arg48[%c0_157, %c0_158] : memref<8x8xf32, #tpu.memory_space<vmem>>, vector<8x8xf32>
    %c0_159 = arith.constant 0 : index
    %c0_160 = arith.constant 0 : index
    %276 = vector.load %arg8[%c0_159, %c0_160] : memref<8x64xf32, #tpu.memory_space<vmem>>, vector<8x64xf32>
    %cst_161 = arith.constant dense<0.000000e+00> : vector<8x64xf32>
    %277 = tpu.matmul %275, %276, %cst_161 {dimension_numbers = #tpu.dot_dimension_numbers<[1], [0], [0], [1], [0, 0, 1, 1], [], []>} : vector<8x8xf32>, vector<8x64xf32>, vector<8x64xf32> -> vector<8x64xf32>
    %278 = arith.addf %274, %277 : vector<8x64xf32>
    %c0_162 = arith.constant 0 : index
    %c0_163 = arith.constant 0 : index
    %279 = vector.load %arg49[%c0_162, %c0_163] : memref<1x64xf32, #tpu.memory_space<vmem>>, vector<1x64xf32>
    %c0_164 = arith.constant 0 : index
    %c0_165 = arith.constant 0 : index
    %280 = vector.load %arg50[%c0_164, %c0_165] : memref<1x64xf32, #tpu.memory_space<vmem>>, vector<1x64xf32>
    %cst_166 = arith.constant dense<0.000000e+00> : vector<8xf32>
    %281 = vector.multi_reduction <add>, %278, %cst_166 [1] : vector<8x64xf32> to vector<8xf32>
    %282 = vector.shape_cast %281 : vector<8xf32> to vector<8x1xf32>
    %cst_167 = arith.constant 6.400000e+01 : f32
    %283 = vector.broadcast %cst_167 : f32 to vector<8x1xf32>
    %284 = arith.divf %282, %283 : vector<8x1xf32>
    %285 = vector.broadcast %284 : vector<8x1xf32> to vector<8x64xf32>
    %286 = arith.subf %278, %285 : vector<8x64xf32>
    %287 = arith.mulf %286, %286 : vector<8x64xf32>
    %cst_168 = arith.constant dense<0.000000e+00> : vector<8xf32>
    %288 = vector.multi_reduction <add>, %287, %cst_168 [1] : vector<8x64xf32> to vector<8xf32>
    %289 = vector.shape_cast %288 : vector<8xf32> to vector<8x1xf32>
    %cst_169 = arith.constant 6.400000e+01 : f32
    %290 = vector.broadcast %cst_169 : f32 to vector<8x1xf32>
    %291 = arith.divf %289, %290 : vector<8x1xf32>
    %cst_170 = arith.constant 9.99999974E-6 : f32
    %292 = vector.broadcast %cst_170 : f32 to vector<8x1xf32>
    %293 = arith.addf %291, %292 : vector<8x1xf32>
    %294 = math.rsqrt %293 : vector<8x1xf32>
    %295 = vector.broadcast %294 : vector<8x1xf32> to vector<8x64xf32>
    %296 = arith.mulf %286, %295 : vector<8x64xf32>
    %297 = vector.broadcast %279 : vector<1x64xf32> to vector<8x64xf32>
    %298 = arith.mulf %296, %297 : vector<8x64xf32>
    %299 = vector.broadcast %280 : vector<1x64xf32> to vector<8x64xf32>
    %300 = arith.addf %298, %299 : vector<8x64xf32>
    %c0_171 = arith.constant 0 : index
    %c0_172 = arith.constant 0 : index
    %301 = vector.load %arg51[%c0_171, %c0_172] : memref<1x64xf32, #tpu.memory_space<vmem>>, vector<1x64xf32>
    %302 = vector.broadcast %301 : vector<1x64xf32> to vector<8x64xf32>
    %303 = arith.mulf %300, %302 : vector<8x64xf32>
    %304 = arith.mulf %303, %303 : vector<8x64xf32>
    %305 = arith.mulf %303, %304 : vector<8x64xf32>
    %cst_173 = arith.constant 4.471500e-02 : f32
    %306 = vector.broadcast %cst_173 : f32 to vector<8x64xf32>
    %307 = arith.mulf %306, %305 : vector<8x64xf32>
    %308 = arith.addf %303, %307 : vector<8x64xf32>
    %cst_174 = arith.constant 0.797884583 : f32
    %309 = vector.broadcast %cst_174 : f32 to vector<8x64xf32>
    %310 = arith.mulf %309, %308 : vector<8x64xf32>
    %311 = math.tanh %310 : vector<8x64xf32>
    %cst_175 = arith.constant 1.000000e+00 : f32
    %312 = vector.broadcast %cst_175 : f32 to vector<8x64xf32>
    %313 = arith.addf %312, %311 : vector<8x64xf32>
    %cst_176 = arith.constant 5.000000e-01 : f32
    %314 = vector.broadcast %cst_176 : f32 to vector<8x64xf32>
    %315 = arith.mulf %314, %313 : vector<8x64xf32>
    %316 = arith.mulf %303, %315 : vector<8x64xf32>
    %317 = arith.truncf %316 : vector<8x64xf32> to vector<8x64xbf16>
    %c0_177 = arith.constant 0 : index
    %c0_178 = arith.constant 0 : index
    %318 = vector.load %arg52[%c0_177, %c0_178] : memref<64x128xbf16, #tpu.memory_space<vmem>>, vector<64x128xbf16>
    %cst_179 = arith.constant dense<0.000000e+00> : vector<8x128xf32>
    %319 = tpu.matmul %317, %318, %cst_179 {dimension_numbers = #tpu.dot_dimension_numbers<[1], [0], [0], [1], [0, 0, 1, 1], [], []>} : vector<8x64xbf16>, vector<64x128xbf16>, vector<8x128xf32> -> vector<8x128xf32>
    %c0_180 = arith.constant 0 : index
    %c0_181 = arith.constant 0 : index
    %320 = vector.load %arg53[%c0_180, %c0_181] : memref<1x128xf32, #tpu.memory_space<vmem>>, vector<1x128xf32>
    %321 = vector.broadcast %320 : vector<1x128xf32> to vector<8x128xf32>
    %322 = arith.addf %319, %321 : vector<8x128xf32>
    %323 = vector.extract_strided_slice %322 {offsets = [0, 0], sizes = [8, 64], strides = [1, 1]} : vector<8x128xf32> to vector<8x64xf32>
    %324 = vector.extract_strided_slice %322 {offsets = [0, 64], sizes = [8, 64], strides = [1, 1]} : vector<8x128xf32> to vector<8x64xf32>
    %325 = arith.negf %324 : vector<8x64xf32>
    %326 = math.exp %325 : vector<8x64xf32>
    %cst_182 = arith.constant 1.000000e+00 : f32
    %327 = vector.broadcast %cst_182 : f32 to vector<8x64xf32>
    %328 = arith.addf %327, %326 : vector<8x64xf32>
    %329 = arith.divf %327, %328 : vector<8x64xf32>
    %330 = arith.mulf %323, %329 : vector<8x64xf32>
    %331 = vector.extract_strided_slice %17 {offsets = [0, 0], sizes = [8, 64], strides = [1, 1]} : vector<8x128xf32> to vector<8x64xf32>
    %332 = arith.addf %330, %331 : vector<8x64xf32>
    %333 = arith.addf %332, %274 : vector<8x64xf32>
    %c0_183 = arith.constant 0 : index
    %c0_184 = arith.constant 0 : index
    %334 = vector.load %arg48[%c0_183, %c0_184] : memref<8x8xf32, #tpu.memory_space<vmem>>, vector<8x8xf32>
    %c0_185 = arith.constant 0 : index
    %c0_186 = arith.constant 0 : index
    %335 = vector.load %arg9[%c0_185, %c0_186] : memref<8x64xf32, #tpu.memory_space<vmem>>, vector<8x64xf32>
    %cst_187 = arith.constant dense<0.000000e+00> : vector<8x64xf32>
    %336 = tpu.matmul %334, %335, %cst_187 {dimension_numbers = #tpu.dot_dimension_numbers<[1], [0], [0], [1], [0, 0, 1, 1], [], []>} : vector<8x8xf32>, vector<8x64xf32>, vector<8x64xf32> -> vector<8x64xf32>
    %337 = arith.addf %333, %336 : vector<8x64xf32>
    %c0_188 = arith.constant 0 : index
    %c0_189 = arith.constant 0 : index
    %338 = vector.load %arg54[%c0_188, %c0_189] : memref<1x64xf32, #tpu.memory_space<vmem>>, vector<1x64xf32>
    %c0_190 = arith.constant 0 : index
    %c0_191 = arith.constant 0 : index
    %339 = vector.load %arg55[%c0_190, %c0_191] : memref<1x64xf32, #tpu.memory_space<vmem>>, vector<1x64xf32>
    %cst_192 = arith.constant dense<0.000000e+00> : vector<8xf32>
    %340 = vector.multi_reduction <add>, %337, %cst_192 [1] : vector<8x64xf32> to vector<8xf32>
    %341 = vector.shape_cast %340 : vector<8xf32> to vector<8x1xf32>
    %cst_193 = arith.constant 6.400000e+01 : f32
    %342 = vector.broadcast %cst_193 : f32 to vector<8x1xf32>
    %343 = arith.divf %341, %342 : vector<8x1xf32>
    %344 = vector.broadcast %343 : vector<8x1xf32> to vector<8x64xf32>
    %345 = arith.subf %337, %344 : vector<8x64xf32>
    %346 = arith.mulf %345, %345 : vector<8x64xf32>
    %cst_194 = arith.constant dense<0.000000e+00> : vector<8xf32>
    %347 = vector.multi_reduction <add>, %346, %cst_194 [1] : vector<8x64xf32> to vector<8xf32>
    %348 = vector.shape_cast %347 : vector<8xf32> to vector<8x1xf32>
    %cst_195 = arith.constant 6.400000e+01 : f32
    %349 = vector.broadcast %cst_195 : f32 to vector<8x1xf32>
    %350 = arith.divf %348, %349 : vector<8x1xf32>
    %cst_196 = arith.constant 9.99999974E-6 : f32
    %351 = vector.broadcast %cst_196 : f32 to vector<8x1xf32>
    %352 = arith.addf %350, %351 : vector<8x1xf32>
    %353 = math.rsqrt %352 : vector<8x1xf32>
    %354 = vector.broadcast %353 : vector<8x1xf32> to vector<8x64xf32>
    %355 = arith.mulf %345, %354 : vector<8x64xf32>
    %356 = vector.broadcast %338 : vector<1x64xf32> to vector<8x64xf32>
    %357 = arith.mulf %355, %356 : vector<8x64xf32>
    %358 = vector.broadcast %339 : vector<1x64xf32> to vector<8x64xf32>
    %359 = arith.addf %357, %358 : vector<8x64xf32>
    %360 = arith.truncf %359 : vector<8x64xf32> to vector<8x64xbf16>
    %c0_197 = arith.constant 0 : index
    %c0_198 = arith.constant 0 : index
    %361 = vector.load %arg56[%c0_197, %c0_198] : memref<64x128xbf16, #tpu.memory_space<vmem>>, vector<64x128xbf16>
    %cst_199 = arith.constant dense<0.000000e+00> : vector<8x128xf32>
    %362 = tpu.matmul %360, %361, %cst_199 {dimension_numbers = #tpu.dot_dimension_numbers<[1], [0], [0], [1], [0, 0, 1, 1], [], []>} : vector<8x64xbf16>, vector<64x128xbf16>, vector<8x128xf32> -> vector<8x128xf32>
    %c0_200 = arith.constant 0 : index
    %c0_201 = arith.constant 0 : index
    %363 = vector.load %arg57[%c0_200, %c0_201] : memref<1x128xf32, #tpu.memory_space<vmem>>, vector<1x128xf32>
    %364 = vector.broadcast %363 : vector<1x128xf32> to vector<8x128xf32>
    %365 = arith.addf %362, %364 : vector<8x128xf32>
    %366 = arith.mulf %365, %365 : vector<8x128xf32>
    %367 = arith.mulf %365, %366 : vector<8x128xf32>
    %cst_202 = arith.constant 4.471500e-02 : f32
    %368 = vector.broadcast %cst_202 : f32 to vector<8x128xf32>
    %369 = arith.mulf %368, %367 : vector<8x128xf32>
    %370 = arith.addf %365, %369 : vector<8x128xf32>
    %cst_203 = arith.constant 0.797884583 : f32
    %371 = vector.broadcast %cst_203 : f32 to vector<8x128xf32>
    %372 = arith.mulf %371, %370 : vector<8x128xf32>
    %373 = math.tanh %372 : vector<8x128xf32>
    %cst_204 = arith.constant 1.000000e+00 : f32
    %374 = vector.broadcast %cst_204 : f32 to vector<8x128xf32>
    %375 = arith.addf %374, %373 : vector<8x128xf32>
    %cst_205 = arith.constant 5.000000e-01 : f32
    %376 = vector.broadcast %cst_205 : f32 to vector<8x128xf32>
    %377 = arith.mulf %376, %375 : vector<8x128xf32>
    %378 = arith.mulf %365, %377 : vector<8x128xf32>
    %379 = arith.truncf %378 : vector<8x128xf32> to vector<8x128xbf16>
    %c0_206 = arith.constant 0 : index
    %c0_207 = arith.constant 0 : index
    %380 = vector.load %arg58[%c0_206, %c0_207] : memref<128x64xbf16, #tpu.memory_space<vmem>>, vector<128x64xbf16>
    %cst_208 = arith.constant dense<0.000000e+00> : vector<8x64xf32>
    %381 = tpu.matmul %379, %380, %cst_208 {dimension_numbers = #tpu.dot_dimension_numbers<[1], [0], [0], [1], [0, 0, 1, 1], [], []>} : vector<8x128xbf16>, vector<128x64xbf16>, vector<8x64xf32> -> vector<8x64xf32>
    %c0_209 = arith.constant 0 : index
    %c0_210 = arith.constant 0 : index
    %382 = vector.load %arg59[%c0_209, %c0_210] : memref<1x64xf32, #tpu.memory_space<vmem>>, vector<1x64xf32>
    %383 = vector.broadcast %382 : vector<1x64xf32> to vector<8x64xf32>
    %384 = arith.addf %381, %383 : vector<8x64xf32>
    %385 = vector.extract_strided_slice %17 {offsets = [0, 64], sizes = [8, 64], strides = [1, 1]} : vector<8x128xf32> to vector<8x64xf32>
    %386 = arith.addf %384, %385 : vector<8x64xf32>
    %387 = arith.addf %386, %333 : vector<8x64xf32>
    %388 = arith.addf %387, %274 : vector<8x64xf32>
    %389 = arith.truncf %388 : vector<8x64xf32> to vector<8x64xbf16>
    %c0_211 = arith.constant 0 : index
    %c0_212 = arith.constant 0 : index
    %390 = vector.load %arg62[%c0_211, %c0_212] : memref<64x64xbf16, #tpu.memory_space<vmem>>, vector<64x64xbf16>
    %cst_213 = arith.constant dense<0.000000e+00> : vector<8x64xf32>
    %391 = tpu.matmul %389, %390, %cst_213 {dimension_numbers = #tpu.dot_dimension_numbers<[1], [0], [0], [1], [0, 0, 1, 1], [], []>} : vector<8x64xbf16>, vector<64x64xbf16>, vector<8x64xf32> -> vector<8x64xf32>
    %c0_214 = arith.constant 0 : index
    %c0_215 = arith.constant 0 : index
    %392 = vector.load %arg63[%c0_214, %c0_215] : memref<1x64xf32, #tpu.memory_space<vmem>>, vector<1x64xf32>
    %393 = vector.broadcast %392 : vector<1x64xf32> to vector<8x64xf32>
    %394 = arith.addf %391, %393 : vector<8x64xf32>
    %c0_216 = arith.constant 0 : index
    %c0_217 = arith.constant 0 : index
    %395 = vector.load %arg60[%c0_216, %c0_217] : memref<16x8xf32, #tpu.memory_space<vmem>>, vector<16x8xf32>
    %396 = vector.extract_strided_slice %394 {offsets = [0, 0], sizes = [8, 32], strides = [1, 1]} : vector<8x64xf32> to vector<8x32xf32>
    %cst_218 = arith.constant dense<0.000000e+00> : vector<16x32xf32>
    %397 = tpu.matmul %395, %396, %cst_218 {dimension_numbers = #tpu.dot_dimension_numbers<[1], [0], [0], [1], [0, 0, 1, 1], [], []>} : vector<16x8xf32>, vector<8x32xf32>, vector<16x32xf32> -> vector<16x32xf32>
    %c0_219 = arith.constant 0 : index
    %c0_220 = arith.constant 0 : index
    %398 = vector.load %arg61[%c0_219, %c0_220] : memref<16x8xf32, #tpu.memory_space<vmem>>, vector<16x8xf32>
    %399 = vector.extract_strided_slice %394 {offsets = [0, 32], sizes = [8, 32], strides = [1, 1]} : vector<8x64xf32> to vector<8x32xf32>
    %cst_221 = arith.constant dense<0.000000e+00> : vector<16x32xf32>
    %400 = tpu.matmul %398, %399, %cst_221 {dimension_numbers = #tpu.dot_dimension_numbers<[1], [0], [0], [1], [0, 0, 1, 1], [], []>} : vector<16x8xf32>, vector<8x32xf32>, vector<16x32xf32> -> vector<16x32xf32>
    %401 = arith.addf %397, %400 : vector<16x32xf32>
    %402 = arith.addf %401, %263 : vector<16x32xf32>
    %c0_222 = arith.constant 0 : index
    %c0_223 = arith.constant 0 : index
    %403 = vector.load %arg32[%c0_222, %c0_223] : memref<16x8xf32, #tpu.memory_space<vmem>>, vector<16x8xf32>
    %c0_224 = arith.constant 0 : index
    %c0_225 = arith.constant 0 : index
    %404 = vector.load %arg10[%c0_224, %c0_225] : memref<8x32xf32, #tpu.memory_space<vmem>>, vector<8x32xf32>
    %cst_226 = arith.constant dense<0.000000e+00> : vector<16x32xf32>
    %405 = tpu.matmul %403, %404, %cst_226 {dimension_numbers = #tpu.dot_dimension_numbers<[1], [0], [0], [1], [0, 0, 1, 1], [], []>} : vector<16x8xf32>, vector<8x32xf32>, vector<16x32xf32> -> vector<16x32xf32>
    %406 = arith.addf %402, %405 : vector<16x32xf32>
    %c0_227 = arith.constant 0 : index
    %c0_228 = arith.constant 0 : index
    %407 = vector.load %arg64[%c0_227, %c0_228] : memref<1x32xf32, #tpu.memory_space<vmem>>, vector<1x32xf32>
    %c0_229 = arith.constant 0 : index
    %c0_230 = arith.constant 0 : index
    %408 = vector.load %arg65[%c0_229, %c0_230] : memref<1x32xf32, #tpu.memory_space<vmem>>, vector<1x32xf32>
    %cst_231 = arith.constant dense<0.000000e+00> : vector<16xf32>
    %409 = vector.multi_reduction <add>, %406, %cst_231 [1] : vector<16x32xf32> to vector<16xf32>
    %410 = vector.shape_cast %409 : vector<16xf32> to vector<16x1xf32>
    %cst_232 = arith.constant 3.200000e+01 : f32
    %411 = vector.broadcast %cst_232 : f32 to vector<16x1xf32>
    %412 = arith.divf %410, %411 : vector<16x1xf32>
    %413 = vector.broadcast %412 : vector<16x1xf32> to vector<16x32xf32>
    %414 = arith.subf %406, %413 : vector<16x32xf32>
    %415 = arith.mulf %414, %414 : vector<16x32xf32>
    %cst_233 = arith.constant dense<0.000000e+00> : vector<16xf32>
    %416 = vector.multi_reduction <add>, %415, %cst_233 [1] : vector<16x32xf32> to vector<16xf32>
    %417 = vector.shape_cast %416 : vector<16xf32> to vector<16x1xf32>
    %cst_234 = arith.constant 3.200000e+01 : f32
    %418 = vector.broadcast %cst_234 : f32 to vector<16x1xf32>
    %419 = arith.divf %417, %418 : vector<16x1xf32>
    %cst_235 = arith.constant 9.99999974E-6 : f32
    %420 = vector.broadcast %cst_235 : f32 to vector<16x1xf32>
    %421 = arith.addf %419, %420 : vector<16x1xf32>
    %422 = math.rsqrt %421 : vector<16x1xf32>
    %423 = vector.broadcast %422 : vector<16x1xf32> to vector<16x32xf32>
    %424 = arith.mulf %414, %423 : vector<16x32xf32>
    %425 = vector.broadcast %407 : vector<1x32xf32> to vector<16x32xf32>
    %426 = arith.mulf %424, %425 : vector<16x32xf32>
    %427 = vector.broadcast %408 : vector<1x32xf32> to vector<16x32xf32>
    %428 = arith.addf %426, %427 : vector<16x32xf32>
    %c0_236 = arith.constant 0 : index
    %c0_237 = arith.constant 0 : index
    %429 = vector.load %arg66[%c0_236, %c0_237] : memref<1x32xf32, #tpu.memory_space<vmem>>, vector<1x32xf32>
    %430 = vector.broadcast %429 : vector<1x32xf32> to vector<16x32xf32>
    %431 = arith.mulf %428, %430 : vector<16x32xf32>
    %432 = arith.mulf %431, %431 : vector<16x32xf32>
    %433 = arith.mulf %431, %432 : vector<16x32xf32>
    %cst_238 = arith.constant 4.471500e-02 : f32
    %434 = vector.broadcast %cst_238 : f32 to vector<16x32xf32>
    %435 = arith.mulf %434, %433 : vector<16x32xf32>
    %436 = arith.addf %431, %435 : vector<16x32xf32>
    %cst_239 = arith.constant 0.797884583 : f32
    %437 = vector.broadcast %cst_239 : f32 to vector<16x32xf32>
    %438 = arith.mulf %437, %436 : vector<16x32xf32>
    %439 = math.tanh %438 : vector<16x32xf32>
    %cst_240 = arith.constant 1.000000e+00 : f32
    %440 = vector.broadcast %cst_240 : f32 to vector<16x32xf32>
    %441 = arith.addf %440, %439 : vector<16x32xf32>
    %cst_241 = arith.constant 5.000000e-01 : f32
    %442 = vector.broadcast %cst_241 : f32 to vector<16x32xf32>
    %443 = arith.mulf %442, %441 : vector<16x32xf32>
    %444 = arith.mulf %431, %443 : vector<16x32xf32>
    %445 = arith.truncf %444 : vector<16x32xf32> to vector<16x32xbf16>
    %c0_242 = arith.constant 0 : index
    %c0_243 = arith.constant 0 : index
    %446 = vector.load %arg67[%c0_242, %c0_243] : memref<32x64xbf16, #tpu.memory_space<vmem>>, vector<32x64xbf16>
    %cst_244 = arith.constant dense<0.000000e+00> : vector<16x64xf32>
    %447 = tpu.matmul %445, %446, %cst_244 {dimension_numbers = #tpu.dot_dimension_numbers<[1], [0], [0], [1], [0, 0, 1, 1], [], []>} : vector<16x32xbf16>, vector<32x64xbf16>, vector<16x64xf32> -> vector<16x64xf32>
    %c0_245 = arith.constant 0 : index
    %c0_246 = arith.constant 0 : index
    %448 = vector.load %arg68[%c0_245, %c0_246] : memref<1x64xf32, #tpu.memory_space<vmem>>, vector<1x64xf32>
    %449 = vector.broadcast %448 : vector<1x64xf32> to vector<16x64xf32>
    %450 = arith.addf %447, %449 : vector<16x64xf32>
    %451 = vector.extract_strided_slice %450 {offsets = [0, 0], sizes = [16, 32], strides = [1, 1]} : vector<16x64xf32> to vector<16x32xf32>
    %452 = vector.extract_strided_slice %450 {offsets = [0, 32], sizes = [16, 32], strides = [1, 1]} : vector<16x64xf32> to vector<16x32xf32>
    %453 = arith.negf %452 : vector<16x32xf32>
    %454 = math.exp %453 : vector<16x32xf32>
    %cst_247 = arith.constant 1.000000e+00 : f32
    %455 = vector.broadcast %cst_247 : f32 to vector<16x32xf32>
    %456 = arith.addf %455, %454 : vector<16x32xf32>
    %457 = arith.divf %455, %456 : vector<16x32xf32>
    %458 = arith.mulf %451, %457 : vector<16x32xf32>
    %459 = vector.extract_strided_slice %11 {offsets = [0, 64], sizes = [16, 32], strides = [1, 1]} : vector<16x128xf32> to vector<16x32xf32>
    %460 = arith.addf %458, %459 : vector<16x32xf32>
    %461 = arith.addf %460, %402 : vector<16x32xf32>
    %462 = arith.addf %461, %209 : vector<16x32xf32>
    %c0_248 = arith.constant 0 : index
    %c0_249 = arith.constant 0 : index
    %463 = vector.load %arg32[%c0_248, %c0_249] : memref<16x8xf32, #tpu.memory_space<vmem>>, vector<16x8xf32>
    %c0_250 = arith.constant 0 : index
    %c0_251 = arith.constant 0 : index
    %464 = vector.load %arg11[%c0_250, %c0_251] : memref<8x32xf32, #tpu.memory_space<vmem>>, vector<8x32xf32>
    %cst_252 = arith.constant dense<0.000000e+00> : vector<16x32xf32>
    %465 = tpu.matmul %463, %464, %cst_252 {dimension_numbers = #tpu.dot_dimension_numbers<[1], [0], [0], [1], [0, 0, 1, 1], [], []>} : vector<16x8xf32>, vector<8x32xf32>, vector<16x32xf32> -> vector<16x32xf32>
    %466 = arith.addf %462, %465 : vector<16x32xf32>
    %c0_253 = arith.constant 0 : index
    %c0_254 = arith.constant 0 : index
    %467 = vector.load %arg69[%c0_253, %c0_254] : memref<1x32xf32, #tpu.memory_space<vmem>>, vector<1x32xf32>
    %c0_255 = arith.constant 0 : index
    %c0_256 = arith.constant 0 : index
    %468 = vector.load %arg70[%c0_255, %c0_256] : memref<1x32xf32, #tpu.memory_space<vmem>>, vector<1x32xf32>
    %cst_257 = arith.constant dense<0.000000e+00> : vector<16xf32>
    %469 = vector.multi_reduction <add>, %466, %cst_257 [1] : vector<16x32xf32> to vector<16xf32>
    %470 = vector.shape_cast %469 : vector<16xf32> to vector<16x1xf32>
    %cst_258 = arith.constant 3.200000e+01 : f32
    %471 = vector.broadcast %cst_258 : f32 to vector<16x1xf32>
    %472 = arith.divf %470, %471 : vector<16x1xf32>
    %473 = vector.broadcast %472 : vector<16x1xf32> to vector<16x32xf32>
    %474 = arith.subf %466, %473 : vector<16x32xf32>
    %475 = arith.mulf %474, %474 : vector<16x32xf32>
    %cst_259 = arith.constant dense<0.000000e+00> : vector<16xf32>
    %476 = vector.multi_reduction <add>, %475, %cst_259 [1] : vector<16x32xf32> to vector<16xf32>
    %477 = vector.shape_cast %476 : vector<16xf32> to vector<16x1xf32>
    %cst_260 = arith.constant 3.200000e+01 : f32
    %478 = vector.broadcast %cst_260 : f32 to vector<16x1xf32>
    %479 = arith.divf %477, %478 : vector<16x1xf32>
    %cst_261 = arith.constant 9.99999974E-6 : f32
    %480 = vector.broadcast %cst_261 : f32 to vector<16x1xf32>
    %481 = arith.addf %479, %480 : vector<16x1xf32>
    %482 = math.rsqrt %481 : vector<16x1xf32>
    %483 = vector.broadcast %482 : vector<16x1xf32> to vector<16x32xf32>
    %484 = arith.mulf %474, %483 : vector<16x32xf32>
    %485 = vector.broadcast %467 : vector<1x32xf32> to vector<16x32xf32>
    %486 = arith.mulf %484, %485 : vector<16x32xf32>
    %487 = vector.broadcast %468 : vector<1x32xf32> to vector<16x32xf32>
    %488 = arith.addf %486, %487 : vector<16x32xf32>
    %489 = arith.truncf %488 : vector<16x32xf32> to vector<16x32xbf16>
    %c0_262 = arith.constant 0 : index
    %c0_263 = arith.constant 0 : index
    %490 = vector.load %arg71[%c0_262, %c0_263] : memref<32x64xbf16, #tpu.memory_space<vmem>>, vector<32x64xbf16>
    %cst_264 = arith.constant dense<0.000000e+00> : vector<16x64xf32>
    %491 = tpu.matmul %489, %490, %cst_264 {dimension_numbers = #tpu.dot_dimension_numbers<[1], [0], [0], [1], [0, 0, 1, 1], [], []>} : vector<16x32xbf16>, vector<32x64xbf16>, vector<16x64xf32> -> vector<16x64xf32>
    %c0_265 = arith.constant 0 : index
    %c0_266 = arith.constant 0 : index
    %492 = vector.load %arg72[%c0_265, %c0_266] : memref<1x64xf32, #tpu.memory_space<vmem>>, vector<1x64xf32>
    %493 = vector.broadcast %492 : vector<1x64xf32> to vector<16x64xf32>
    %494 = arith.addf %491, %493 : vector<16x64xf32>
    %495 = arith.mulf %494, %494 : vector<16x64xf32>
    %496 = arith.mulf %494, %495 : vector<16x64xf32>
    %cst_267 = arith.constant 4.471500e-02 : f32
    %497 = vector.broadcast %cst_267 : f32 to vector<16x64xf32>
    %498 = arith.mulf %497, %496 : vector<16x64xf32>
    %499 = arith.addf %494, %498 : vector<16x64xf32>
    %cst_268 = arith.constant 0.797884583 : f32
    %500 = vector.broadcast %cst_268 : f32 to vector<16x64xf32>
    %501 = arith.mulf %500, %499 : vector<16x64xf32>
    %502 = math.tanh %501 : vector<16x64xf32>
    %cst_269 = arith.constant 1.000000e+00 : f32
    %503 = vector.broadcast %cst_269 : f32 to vector<16x64xf32>
    %504 = arith.addf %503, %502 : vector<16x64xf32>
    %cst_270 = arith.constant 5.000000e-01 : f32
    %505 = vector.broadcast %cst_270 : f32 to vector<16x64xf32>
    %506 = arith.mulf %505, %504 : vector<16x64xf32>
    %507 = arith.mulf %494, %506 : vector<16x64xf32>
    %508 = arith.truncf %507 : vector<16x64xf32> to vector<16x64xbf16>
    %c0_271 = arith.constant 0 : index
    %c0_272 = arith.constant 0 : index
    %509 = vector.load %arg73[%c0_271, %c0_272] : memref<64x32xbf16, #tpu.memory_space<vmem>>, vector<64x32xbf16>
    %cst_273 = arith.constant dense<0.000000e+00> : vector<16x32xf32>
    %510 = tpu.matmul %508, %509, %cst_273 {dimension_numbers = #tpu.dot_dimension_numbers<[1], [0], [0], [1], [0, 0, 1, 1], [], []>} : vector<16x64xbf16>, vector<64x32xbf16>, vector<16x32xf32> -> vector<16x32xf32>
    %c0_274 = arith.constant 0 : index
    %c0_275 = arith.constant 0 : index
    %511 = vector.load %arg74[%c0_274, %c0_275] : memref<1x32xf32, #tpu.memory_space<vmem>>, vector<1x32xf32>
    %512 = vector.broadcast %511 : vector<1x32xf32> to vector<16x32xf32>
    %513 = arith.addf %510, %512 : vector<16x32xf32>
    %514 = vector.extract_strided_slice %11 {offsets = [0, 96], sizes = [16, 32], strides = [1, 1]} : vector<16x128xf32> to vector<16x32xf32>
    %515 = arith.addf %513, %514 : vector<16x32xf32>
    %516 = arith.addf %515, %462 : vector<16x32xf32>
    %517 = arith.addf %516, %150 : vector<16x32xf32>
    %518 = arith.truncf %517 : vector<16x32xf32> to vector<16x32xbf16>
    %c0_276 = arith.constant 0 : index
    %c0_277 = arith.constant 0 : index
    %519 = vector.load %arg77[%c0_276, %c0_277] : memref<32x32xbf16, #tpu.memory_space<vmem>>, vector<32x32xbf16>
    %cst_278 = arith.constant dense<0.000000e+00> : vector<16x32xf32>
    %520 = tpu.matmul %518, %519, %cst_278 {dimension_numbers = #tpu.dot_dimension_numbers<[1], [0], [0], [1], [0, 0, 1, 1], [], []>} : vector<16x32xbf16>, vector<32x32xbf16>, vector<16x32xf32> -> vector<16x32xf32>
    %c0_279 = arith.constant 0 : index
    %c0_280 = arith.constant 0 : index
    %521 = vector.load %arg78[%c0_279, %c0_280] : memref<1x32xf32, #tpu.memory_space<vmem>>, vector<1x32xf32>
    %522 = vector.broadcast %521 : vector<1x32xf32> to vector<16x32xf32>
    %523 = arith.addf %520, %522 : vector<16x32xf32>
    %c0_281 = arith.constant 0 : index
    %c0_282 = arith.constant 0 : index
    %524 = vector.load %arg75[%c0_281, %c0_282] : memref<32x16xf32, #tpu.memory_space<vmem>>, vector<32x16xf32>
    %525 = vector.extract_strided_slice %523 {offsets = [0, 0], sizes = [16, 16], strides = [1, 1]} : vector<16x32xf32> to vector<16x16xf32>
    %cst_283 = arith.constant dense<0.000000e+00> : vector<32x16xf32>
    %526 = tpu.matmul %524, %525, %cst_283 {dimension_numbers = #tpu.dot_dimension_numbers<[1], [0], [0], [1], [0, 0, 1, 1], [], []>} : vector<32x16xf32>, vector<16x16xf32>, vector<32x16xf32> -> vector<32x16xf32>
    %c0_284 = arith.constant 0 : index
    %c0_285 = arith.constant 0 : index
    %527 = vector.load %arg76[%c0_284, %c0_285] : memref<32x16xf32, #tpu.memory_space<vmem>>, vector<32x16xf32>
    %528 = vector.extract_strided_slice %523 {offsets = [0, 16], sizes = [16, 16], strides = [1, 1]} : vector<16x32xf32> to vector<16x16xf32>
    %cst_286 = arith.constant dense<0.000000e+00> : vector<32x16xf32>
    %529 = tpu.matmul %527, %528, %cst_286 {dimension_numbers = #tpu.dot_dimension_numbers<[1], [0], [0], [1], [0, 0, 1, 1], [], []>} : vector<32x16xf32>, vector<16x16xf32>, vector<32x16xf32> -> vector<32x16xf32>
    %530 = arith.addf %526, %529 : vector<32x16xf32>
    %531 = arith.addf %530, %139 : vector<32x16xf32>
    %c0_287 = arith.constant 0 : index
    %c0_288 = arith.constant 0 : index
    %532 = vector.load %arg16[%c0_287, %c0_288] : memref<32x8xf32, #tpu.memory_space<vmem>>, vector<32x8xf32>
    %c0_289 = arith.constant 0 : index
    %c0_290 = arith.constant 0 : index
    %533 = vector.load %arg12[%c0_289, %c0_290] : memref<8x16xf32, #tpu.memory_space<vmem>>, vector<8x16xf32>
    %cst_291 = arith.constant dense<0.000000e+00> : vector<32x16xf32>
    %534 = tpu.matmul %532, %533, %cst_291 {dimension_numbers = #tpu.dot_dimension_numbers<[1], [0], [0], [1], [0, 0, 1, 1], [], []>} : vector<32x8xf32>, vector<8x16xf32>, vector<32x16xf32> -> vector<32x16xf32>
    %535 = arith.addf %531, %534 : vector<32x16xf32>
    %c0_292 = arith.constant 0 : index
    %c0_293 = arith.constant 0 : index
    %536 = vector.load %arg79[%c0_292, %c0_293] : memref<1x16xf32, #tpu.memory_space<vmem>>, vector<1x16xf32>
    %c0_294 = arith.constant 0 : index
    %c0_295 = arith.constant 0 : index
    %537 = vector.load %arg80[%c0_294, %c0_295] : memref<1x16xf32, #tpu.memory_space<vmem>>, vector<1x16xf32>
    %cst_296 = arith.constant dense<0.000000e+00> : vector<32xf32>
    %538 = vector.multi_reduction <add>, %535, %cst_296 [1] : vector<32x16xf32> to vector<32xf32>
    %539 = vector.shape_cast %538 : vector<32xf32> to vector<32x1xf32>
    %cst_297 = arith.constant 1.600000e+01 : f32
    %540 = vector.broadcast %cst_297 : f32 to vector<32x1xf32>
    %541 = arith.divf %539, %540 : vector<32x1xf32>
    %542 = vector.broadcast %541 : vector<32x1xf32> to vector<32x16xf32>
    %543 = arith.subf %535, %542 : vector<32x16xf32>
    %544 = arith.mulf %543, %543 : vector<32x16xf32>
    %cst_298 = arith.constant dense<0.000000e+00> : vector<32xf32>
    %545 = vector.multi_reduction <add>, %544, %cst_298 [1] : vector<32x16xf32> to vector<32xf32>
    %546 = vector.shape_cast %545 : vector<32xf32> to vector<32x1xf32>
    %cst_299 = arith.constant 1.600000e+01 : f32
    %547 = vector.broadcast %cst_299 : f32 to vector<32x1xf32>
    %548 = arith.divf %546, %547 : vector<32x1xf32>
    %cst_300 = arith.constant 9.99999974E-6 : f32
    %549 = vector.broadcast %cst_300 : f32 to vector<32x1xf32>
    %550 = arith.addf %548, %549 : vector<32x1xf32>
    %551 = math.rsqrt %550 : vector<32x1xf32>
    %552 = vector.broadcast %551 : vector<32x1xf32> to vector<32x16xf32>
    %553 = arith.mulf %543, %552 : vector<32x16xf32>
    %554 = vector.broadcast %536 : vector<1x16xf32> to vector<32x16xf32>
    %555 = arith.mulf %553, %554 : vector<32x16xf32>
    %556 = vector.broadcast %537 : vector<1x16xf32> to vector<32x16xf32>
    %557 = arith.addf %555, %556 : vector<32x16xf32>
    %c0_301 = arith.constant 0 : index
    %c0_302 = arith.constant 0 : index
    %558 = vector.load %arg81[%c0_301, %c0_302] : memref<1x16xf32, #tpu.memory_space<vmem>>, vector<1x16xf32>
    %559 = vector.broadcast %558 : vector<1x16xf32> to vector<32x16xf32>
    %560 = arith.mulf %557, %559 : vector<32x16xf32>
    %561 = arith.mulf %560, %560 : vector<32x16xf32>
    %562 = arith.mulf %560, %561 : vector<32x16xf32>
    %cst_303 = arith.constant 4.471500e-02 : f32
    %563 = vector.broadcast %cst_303 : f32 to vector<32x16xf32>
    %564 = arith.mulf %563, %562 : vector<32x16xf32>
    %565 = arith.addf %560, %564 : vector<32x16xf32>
    %cst_304 = arith.constant 0.797884583 : f32
    %566 = vector.broadcast %cst_304 : f32 to vector<32x16xf32>
    %567 = arith.mulf %566, %565 : vector<32x16xf32>
    %568 = math.tanh %567 : vector<32x16xf32>
    %cst_305 = arith.constant 1.000000e+00 : f32
    %569 = vector.broadcast %cst_305 : f32 to vector<32x16xf32>
    %570 = arith.addf %569, %568 : vector<32x16xf32>
    %cst_306 = arith.constant 5.000000e-01 : f32
    %571 = vector.broadcast %cst_306 : f32 to vector<32x16xf32>
    %572 = arith.mulf %571, %570 : vector<32x16xf32>
    %573 = arith.mulf %560, %572 : vector<32x16xf32>
    %574 = arith.truncf %573 : vector<32x16xf32> to vector<32x16xbf16>
    %c0_307 = arith.constant 0 : index
    %c0_308 = arith.constant 0 : index
    %575 = vector.load %arg82[%c0_307, %c0_308] : memref<16x32xbf16, #tpu.memory_space<vmem>>, vector<16x32xbf16>
    %cst_309 = arith.constant dense<0.000000e+00> : vector<32x32xf32>
    %576 = tpu.matmul %574, %575, %cst_309 {dimension_numbers = #tpu.dot_dimension_numbers<[1], [0], [0], [1], [0, 0, 1, 1], [], []>} : vector<32x16xbf16>, vector<16x32xbf16>, vector<32x32xf32> -> vector<32x32xf32>
    %c0_310 = arith.constant 0 : index
    %c0_311 = arith.constant 0 : index
    %577 = vector.load %arg83[%c0_310, %c0_311] : memref<1x32xf32, #tpu.memory_space<vmem>>, vector<1x32xf32>
    %578 = vector.broadcast %577 : vector<1x32xf32> to vector<32x32xf32>
    %579 = arith.addf %576, %578 : vector<32x32xf32>
    %580 = vector.extract_strided_slice %579 {offsets = [0, 0], sizes = [32, 16], strides = [1, 1]} : vector<32x32xf32> to vector<32x16xf32>
    %581 = vector.extract_strided_slice %579 {offsets = [0, 16], sizes = [32, 16], strides = [1, 1]} : vector<32x32xf32> to vector<32x16xf32>
    %582 = arith.negf %581 : vector<32x16xf32>
    %583 = math.exp %582 : vector<32x16xf32>
    %cst_312 = arith.constant 1.000000e+00 : f32
    %584 = vector.broadcast %cst_312 : f32 to vector<32x16xf32>
    %585 = arith.addf %584, %583 : vector<32x16xf32>
    %586 = arith.divf %584, %585 : vector<32x16xf32>
    %587 = arith.mulf %580, %586 : vector<32x16xf32>
    %588 = vector.extract_strided_slice %5 {offsets = [0, 32], sizes = [32, 16], strides = [1, 1]} : vector<32x64xf32> to vector<32x16xf32>
    %589 = arith.addf %587, %588 : vector<32x16xf32>
    %590 = arith.addf %589, %531 : vector<32x16xf32>
    %591 = arith.addf %590, %85 : vector<32x16xf32>
    %c0_313 = arith.constant 0 : index
    %c0_314 = arith.constant 0 : index
    %592 = vector.load %arg16[%c0_313, %c0_314] : memref<32x8xf32, #tpu.memory_space<vmem>>, vector<32x8xf32>
    %c0_315 = arith.constant 0 : index
    %c0_316 = arith.constant 0 : index
    %593 = vector.load %arg13[%c0_315, %c0_316] : memref<8x16xf32, #tpu.memory_space<vmem>>, vector<8x16xf32>
    %cst_317 = arith.constant dense<0.000000e+00> : vector<32x16xf32>
    %594 = tpu.matmul %592, %593, %cst_317 {dimension_numbers = #tpu.dot_dimension_numbers<[1], [0], [0], [1], [0, 0, 1, 1], [], []>} : vector<32x8xf32>, vector<8x16xf32>, vector<32x16xf32> -> vector<32x16xf32>
    %595 = arith.addf %591, %594 : vector<32x16xf32>
    %c0_318 = arith.constant 0 : index
    %c0_319 = arith.constant 0 : index
    %596 = vector.load %arg84[%c0_318, %c0_319] : memref<1x16xf32, #tpu.memory_space<vmem>>, vector<1x16xf32>
    %c0_320 = arith.constant 0 : index
    %c0_321 = arith.constant 0 : index
    %597 = vector.load %arg85[%c0_320, %c0_321] : memref<1x16xf32, #tpu.memory_space<vmem>>, vector<1x16xf32>
    %cst_322 = arith.constant dense<0.000000e+00> : vector<32xf32>
    %598 = vector.multi_reduction <add>, %595, %cst_322 [1] : vector<32x16xf32> to vector<32xf32>
    %599 = vector.shape_cast %598 : vector<32xf32> to vector<32x1xf32>
    %cst_323 = arith.constant 1.600000e+01 : f32
    %600 = vector.broadcast %cst_323 : f32 to vector<32x1xf32>
    %601 = arith.divf %599, %600 : vector<32x1xf32>
    %602 = vector.broadcast %601 : vector<32x1xf32> to vector<32x16xf32>
    %603 = arith.subf %595, %602 : vector<32x16xf32>
    %604 = arith.mulf %603, %603 : vector<32x16xf32>
    %cst_324 = arith.constant dense<0.000000e+00> : vector<32xf32>
    %605 = vector.multi_reduction <add>, %604, %cst_324 [1] : vector<32x16xf32> to vector<32xf32>
    %606 = vector.shape_cast %605 : vector<32xf32> to vector<32x1xf32>
    %cst_325 = arith.constant 1.600000e+01 : f32
    %607 = vector.broadcast %cst_325 : f32 to vector<32x1xf32>
    %608 = arith.divf %606, %607 : vector<32x1xf32>
    %cst_326 = arith.constant 9.99999974E-6 : f32
    %609 = vector.broadcast %cst_326 : f32 to vector<32x1xf32>
    %610 = arith.addf %608, %609 : vector<32x1xf32>
    %611 = math.rsqrt %610 : vector<32x1xf32>
    %612 = vector.broadcast %611 : vector<32x1xf32> to vector<32x16xf32>
    %613 = arith.mulf %603, %612 : vector<32x16xf32>
    %614 = vector.broadcast %596 : vector<1x16xf32> to vector<32x16xf32>
    %615 = arith.mulf %613, %614 : vector<32x16xf32>
    %616 = vector.broadcast %597 : vector<1x16xf32> to vector<32x16xf32>
    %617 = arith.addf %615, %616 : vector<32x16xf32>
    %618 = arith.truncf %617 : vector<32x16xf32> to vector<32x16xbf16>
    %c0_327 = arith.constant 0 : index
    %c0_328 = arith.constant 0 : index
    %619 = vector.load %arg86[%c0_327, %c0_328] : memref<16x32xbf16, #tpu.memory_space<vmem>>, vector<16x32xbf16>
    %cst_329 = arith.constant dense<0.000000e+00> : vector<32x32xf32>
    %620 = tpu.matmul %618, %619, %cst_329 {dimension_numbers = #tpu.dot_dimension_numbers<[1], [0], [0], [1], [0, 0, 1, 1], [], []>} : vector<32x16xbf16>, vector<16x32xbf16>, vector<32x32xf32> -> vector<32x32xf32>
    %c0_330 = arith.constant 0 : index
    %c0_331 = arith.constant 0 : index
    %621 = vector.load %arg87[%c0_330, %c0_331] : memref<1x32xf32, #tpu.memory_space<vmem>>, vector<1x32xf32>
    %622 = vector.broadcast %621 : vector<1x32xf32> to vector<32x32xf32>
    %623 = arith.addf %620, %622 : vector<32x32xf32>
    %624 = arith.mulf %623, %623 : vector<32x32xf32>
    %625 = arith.mulf %623, %624 : vector<32x32xf32>
    %cst_332 = arith.constant 4.471500e-02 : f32
    %626 = vector.broadcast %cst_332 : f32 to vector<32x32xf32>
    %627 = arith.mulf %626, %625 : vector<32x32xf32>
    %628 = arith.addf %623, %627 : vector<32x32xf32>
    %cst_333 = arith.constant 0.797884583 : f32
    %629 = vector.broadcast %cst_333 : f32 to vector<32x32xf32>
    %630 = arith.mulf %629, %628 : vector<32x32xf32>
    %631 = math.tanh %630 : vector<32x32xf32>
    %cst_334 = arith.constant 1.000000e+00 : f32
    %632 = vector.broadcast %cst_334 : f32 to vector<32x32xf32>
    %633 = arith.addf %632, %631 : vector<32x32xf32>
    %cst_335 = arith.constant 5.000000e-01 : f32
    %634 = vector.broadcast %cst_335 : f32 to vector<32x32xf32>
    %635 = arith.mulf %634, %633 : vector<32x32xf32>
    %636 = arith.mulf %623, %635 : vector<32x32xf32>
    %637 = arith.truncf %636 : vector<32x32xf32> to vector<32x32xbf16>
    %c0_336 = arith.constant 0 : index
    %c0_337 = arith.constant 0 : index
    %638 = vector.load %arg88[%c0_336, %c0_337] : memref<32x16xbf16, #tpu.memory_space<vmem>>, vector<32x16xbf16>
    %cst_338 = arith.constant dense<0.000000e+00> : vector<32x16xf32>
    %639 = tpu.matmul %637, %638, %cst_338 {dimension_numbers = #tpu.dot_dimension_numbers<[1], [0], [0], [1], [0, 0, 1, 1], [], []>} : vector<32x32xbf16>, vector<32x16xbf16>, vector<32x16xf32> -> vector<32x16xf32>
    %c0_339 = arith.constant 0 : index
    %c0_340 = arith.constant 0 : index
    %640 = vector.load %arg89[%c0_339, %c0_340] : memref<1x16xf32, #tpu.memory_space<vmem>>, vector<1x16xf32>
    %641 = vector.broadcast %640 : vector<1x16xf32> to vector<32x16xf32>
    %642 = arith.addf %639, %641 : vector<32x16xf32>
    %643 = vector.extract_strided_slice %5 {offsets = [0, 48], sizes = [32, 16], strides = [1, 1]} : vector<32x64xf32> to vector<32x16xf32>
    %644 = arith.addf %642, %643 : vector<32x16xf32>
    %645 = arith.addf %644, %591 : vector<32x16xf32>
    %646 = arith.addf %645, %26 : vector<32x16xf32>
    %c0_341 = arith.constant 0 : index
    %c0_342 = arith.constant 0 : index
    %647 = vector.load %arg96[%c0_341, %c0_342] : memref<1x16xf32, #tpu.memory_space<vmem>>, vector<1x16xf32>
    %c0_343 = arith.constant 0 : index
    %c0_344 = arith.constant 0 : index
    %648 = vector.load %arg97[%c0_343, %c0_344] : memref<1x16xf32, #tpu.memory_space<vmem>>, vector<1x16xf32>
    %cst_345 = arith.constant dense<0.000000e+00> : vector<32xf32>
    %649 = vector.multi_reduction <add>, %646, %cst_345 [1] : vector<32x16xf32> to vector<32xf32>
    %650 = vector.shape_cast %649 : vector<32xf32> to vector<32x1xf32>
    %cst_346 = arith.constant 1.600000e+01 : f32
    %651 = vector.broadcast %cst_346 : f32 to vector<32x1xf32>
    %652 = arith.divf %650, %651 : vector<32x1xf32>
    %653 = vector.broadcast %652 : vector<32x1xf32> to vector<32x16xf32>
    %654 = arith.subf %646, %653 : vector<32x16xf32>
    %655 = arith.mulf %654, %654 : vector<32x16xf32>
    %cst_347 = arith.constant dense<0.000000e+00> : vector<32xf32>
    %656 = vector.multi_reduction <add>, %655, %cst_347 [1] : vector<32x16xf32> to vector<32xf32>
    %657 = vector.shape_cast %656 : vector<32xf32> to vector<32x1xf32>
    %cst_348 = arith.constant 1.600000e+01 : f32
    %658 = vector.broadcast %cst_348 : f32 to vector<32x1xf32>
    %659 = arith.divf %657, %658 : vector<32x1xf32>
    %cst_349 = arith.constant 9.99999974E-6 : f32
    %660 = vector.broadcast %cst_349 : f32 to vector<32x1xf32>
    %661 = arith.addf %659, %660 : vector<32x1xf32>
    %662 = math.rsqrt %661 : vector<32x1xf32>
    %663 = vector.broadcast %662 : vector<32x1xf32> to vector<32x16xf32>
    %664 = arith.mulf %654, %663 : vector<32x16xf32>
    %665 = vector.broadcast %647 : vector<1x16xf32> to vector<32x16xf32>
    %666 = arith.mulf %664, %665 : vector<32x16xf32>
    %667 = vector.broadcast %648 : vector<1x16xf32> to vector<32x16xf32>
    %668 = arith.addf %666, %667 : vector<32x16xf32>
    %669 = arith.truncf %668 : vector<32x16xf32> to vector<32x16xbf16>
    %c0_350 = arith.constant 0 : index
    %c0_351 = arith.constant 0 : index
    %670 = vector.load %arg98[%c0_350, %c0_351] : memref<16x16xbf16, #tpu.memory_space<vmem>>, vector<16x16xbf16>
    %cst_352 = arith.constant dense<0.000000e+00> : vector<32x16xf32>
    %671 = tpu.matmul %669, %670, %cst_352 {dimension_numbers = #tpu.dot_dimension_numbers<[1], [0], [0], [1], [0, 0, 1, 1], [], []>} : vector<32x16xbf16>, vector<16x16xbf16>, vector<32x16xf32> -> vector<32x16xf32>
    %c0_353 = arith.constant 0 : index
    %c0_354 = arith.constant 0 : index
    %672 = vector.load %arg99[%c0_353, %c0_354] : memref<1x16xf32, #tpu.memory_space<vmem>>, vector<1x16xf32>
    %673 = vector.broadcast %672 : vector<1x16xf32> to vector<32x16xf32>
    %674 = arith.addf %671, %673 : vector<32x16xf32>
    %cst_355 = arith.constant 0.000000e+00 : f32
    %675 = vector.broadcast %cst_355 : f32 to vector<32x16xf32>
    %676 = arith.maximumf %674, %675 : vector<32x16xf32>
    %677 = arith.truncf %676 : vector<32x16xf32> to vector<32x16xbf16>
    %c0_356 = arith.constant 0 : index
    %c0_357 = arith.constant 0 : index
    %678 = vector.load %arg100[%c0_356, %c0_357] : memref<16x128xbf16, #tpu.memory_space<vmem>>, vector<16x128xbf16>
    %cst_358 = arith.constant dense<0.000000e+00> : vector<32x128xf32>
    %679 = tpu.matmul %677, %678, %cst_358 {dimension_numbers = #tpu.dot_dimension_numbers<[1], [0], [0], [1], [0, 0, 1, 1], [], []>} : vector<32x16xbf16>, vector<16x128xbf16>, vector<32x128xf32> -> vector<32x128xf32>
    %c0_359 = arith.constant 0 : index
    %c0_360 = arith.constant 0 : index
    %680 = vector.load %arg101[%c0_359, %c0_360] : memref<1x128xf32, #tpu.memory_space<vmem>>, vector<1x128xf32>
    %681 = vector.broadcast %680 : vector<1x128xf32> to vector<32x128xf32>
    %682 = arith.addf %679, %681 : vector<32x128xf32>
    %c0_361 = arith.constant 0 : index
    %c0_362 = arith.constant 0 : index
    %683 = vector.load %arg102[%c0_361, %c0_362] : memref<32x128xf32, #tpu.memory_space<vmem>>, vector<32x128xf32>
    tpu.vector_store %arg102[%c0_361, %c0_362], %682 {strides = array<i32>} : memref<32x128xf32, #tpu.memory_space<vmem>>, vector<32x128xf32>,
    return
  }
}

</mosaic_0001>

<bundles_post_ra>
// kernel: mul.11
= control target key start
LH: loop header
LB: loop body
LE: loop exit
PB: predicated region body
PF: predicated region fallthrough
CT: control target
= control target key end

     0   :  { %3 = vsyncpa [#allocation1], 0  ;;  %s63_s9 = smov [#allocation0]   ;;  %s97_s0 = inlined_call_operand.hbm [shape: f32[2,1,16], index: 0, kind: input, shape index: {}]   ;;  %s98_s1 = inlined_call_operand.vmem [shape: f32[2,1,16], index: 1, kind: input, shape index: {}]   ;;  %s99_s2 = inlined_call_operand.vmem [shape: bf16[2,1,16], index: 2, kind: output, shape index: {}]  }
   0x1   :  { %s7_s10 = sshll.u32 %s63_s9, 4  ;;  %s8_s10 = int_to_ptr.vmem [resolvable:$true] %s7_s10 }
   0x2   :  { %s49_s11 = scalar_lea.vmem %s8_s10, 32  ;;  %p54_p1 = scmp.lt.s32.totalorder %s8_s10, %s8_s10 }
   0x3   :  { %p50_p0 = scmp.ne.s32.totalorder %s8_s10, %s49_s11  ;;  %p55_p2 = scmp.lt.s32.totalorder %s49_s11, %s49_s11 }
   0x5   :  { %p56_p3 = por %p55_p2, %p54_p1 }
   0x7   :  { %p57_p4 = pnand %p56_p3, %p50_p0 }
   0x9   :  { %60 = shalt.err (!%p57_p4)
}
   0xa   :  { %s64_s12 = smov 16   ;;  %s65_s13 = smov 1  }
   0xb   :  { %13 = dma.hbm_to_vmem [thread:$0]  %s97_s0, 32, %s8_s10, [#allocation1], %s64_s12, %s64_s12, %s65_s13  }
   0xc   :  { %61 = dma.done.wait [#allocation1], 32  }
   0xd   :  { %62 = vsyncadd [#allocation1], 4294967264  ;;  %v15_v0 = vld [vmem:[#allocation0] sm:$0x1]  ;;  %v24_v2 = vld [vmem:[#allocation0 + $0x1] sm:$0x1] }
   0xe   :  { %v16_v1 = vld [vmem:[%s98_s1] sm:$0x1]  ;;  %v35_v4 = vld [vmem:[%s98_s1 + $0x1] sm:$0x1]  ;;  %v66_v6 = vmov 0.0  }
   0xf   :  { %v19_v3 = vmul.f32 %v16_v1, %v15_v0  ;;  %v29_v5 = vmul.f32 %v35_v4, %v24_v2 }
  0x11   :  { %v21_v7 = vpack.c.bf16 %v66_v6, %v19_v3  ;;  %v32_v8 = vpack.c.bf16 %v66_v6, %v29_v5 }
  0x13   :  { %22 = vst [vmem:[%s99_s2] sm:$0x1] %v21_v7  ;;  %36 = vst [vmem:[%s99_s2 + $0x1] sm:$0x1] %v32_v8 }
  0x14   :  { %34 = vsyncpa [#allocation1], 1 }

// kernel: _lambda_.1
= control target key start
LH: loop header
LB: loop body
LE: loop exit
PB: predicated region body
PF: predicated region fallthrough
CT: control target
= control target key end

     0   :  { %s7222_s6 = smov 1   ;;  %s7223_s10 = smov 2   ;;  %s8565_s0 = inlined_call_operand.smem [shape: u32[103], index: -1, kind: input, shape index: {}] }
   0x1   :  { %s7371_s5 = sld [smem:[%s8565_s0]]   ;;  %s7224_s14 = smov 3  }
   0x2   :  { %s7376_s9 = sld [smem:[%s8565_s0 + %s7222_s6]]   ;;  %s7225_s18 = smov 4  }
   0x3   :  { %s7381_s13 = sld [smem:[%s8565_s0 + %s7223_s10]]   ;;  %s7226_s22 = smov 5  }
   0x4   :  { %s7386_s17 = sld [smem:[%s8565_s0 + %s7224_s14]]   ;;  %s7227_s26 = smov 6  }
   0x5   :  { %s7391_s21 = sld [smem:[%s8565_s0 + %s7225_s18]]   ;;  %s7228_s30 = smov 7  }
   0x6   :  { %s7396_s25 = sld [smem:[%s8565_s0 + %s7226_s22]]   ;;  %s7229_s4 = smov 8  }
   0x7   :  { %8591 = sst [smem:[#allocation64_spill]] %s7371_s5  ;;  %s7230_s10 = smov 9  }
   0x8   :  { %8592 = sst [smem:[#allocation65_spill]] %s7376_s9  ;;  %s7231_s15 = smov 10  }
   0x9   :  { %8593 = sst [smem:[#allocation66_spill]] %s7381_s13  ;;  %s7232_s20 = smov 11  }
   0xa   :  { %8594 = sst [smem:[#allocation67_spill]] %s7386_s17  ;;  %s7234_s1 = smov 13  }
   0xb   :  { %8595 = sst [smem:[#allocation68_spill]] %s7391_s21  ;;  %s7235_s7 = smov 14  }
   0xc   :  { %8596 = sst [smem:[#allocation69_spill]] %s7396_s25  ;;  %s7237_s22 = smov 16  }
   0xd   :  { %s7401_s29 = sld [smem:[%s8565_s0 + %s7227_s26]]   ;;  %s7233_s26 = smov 12  }
   0xe   :  { %s7406_s3 = sld [smem:[%s8565_s0 + %s7228_s30]]   ;;  %s7238_s28 = smov 17  }
   0xf   :  { %s7411_s8 = sld [smem:[%s8565_s0 + %s7229_s4]]  }
  0x10   :  { %s7416_s14 = sld [smem:[%s8565_s0 + %s7230_s10]]  }
  0x11   :  { %s7421_s19 = sld [smem:[%s8565_s0 + %s7231_s15]]   ;;  %s7236_s15 = smov 15  }
  0x12   :  { %s7426_s24 = sld [smem:[%s8565_s0 + %s7232_s20]]  }
  0x13   :  { %8597 = sst [smem:[#allocation70_spill]] %s7401_s29 }
  0x14   :  { %8598 = sst [smem:[#allocation71_spill]] %s7406_s3 }
  0x15   :  { %8599 = sst [smem:[#allocation72_spill]] %s7411_s8 }
  0x16   :  { %8600 = sst [smem:[#allocation73_spill]] %s7416_s14 }
  0x17   :  { %8601 = sst [smem:[#allocation74_spill]] %s7421_s19 }
  0x18   :  { %8602 = sst [smem:[#allocation75_spill]] %s7426_s24 }
  0x19   :  { %s7431_s30 = sld [smem:[%s8565_s0 + %s7233_s26]]  }
  0x1a   :  { %s7436_s6 = sld [smem:[%s8565_s0 + %s7234_s1]]  }
  0x1b   :  { %s7441_s12 = sld [smem:[%s8565_s0 + %s7235_s7]]   ;;  %s7239_s7 = smov 18  }
  0x1c   :  { %s7446_s20 = sld [smem:[%s8565_s0 + %s7236_s15]]   ;;  %s7240_s15 = smov 19  }
  0x1d   :  { %s7451_s27 = sld [smem:[%s8565_s0 + %s7237_s22]]   ;;  %s7241_s22 = smov 20  }
  0x1e   :  { %s7456_s4 = sld [smem:[%s8565_s0 + %s7238_s28]]   ;;  %s7242_s28 = smov 21  }
  0x1f   :  { %8603 = sst [smem:[#allocation76_spill]] %s7431_s30 }
  0x20   :  { %8604 = sst [smem:[#allocation77_spill]] %s7436_s6 }
  0x21   :  { %8605 = sst [smem:[#allocation78_spill]] %s7441_s12 }
  0x22   :  { %s7461_s6 = sld [smem:[%s8565_s0 + %s7239_s7]]   ;;  %s7243_s7 = smov 22  }
  0x23   :  { %8606 = sst [smem:[#allocation79_spill]] %s7451_s27 }
  0x24   :  { %8607 = sst [smem:[#allocation80_spill]] %s7456_s4 }
  0x25   :  { %s7466_s30 = sld [smem:[%s8565_s0 + %s7240_s15]]   ;;  %s7244_s15 = smov 23  }
  0x26   :  { %s7471_s24 = sld [smem:[%s8565_s0 + %s7241_s22]]   ;;  %s7245_s22 = smov 24  }
  0x27   :  { %s7476_s19 = sld [smem:[%s8565_s0 + %s7242_s28]]   ;;  %s7246_s28 = smov 25  }
  0x28   :  { %8608 = sst [smem:[#allocation81_spill]] %s7461_s6 }
  0x29   :  { %s7481_s14 = sld [smem:[%s8565_s0 + %s7243_s7]]   ;;  %s7247_s7 = smov 26  }
  0x2a   :  { %s7486_s8 = sld [smem:[%s8565_s0 + %s7244_s15]]   ;;  %s7248_s15 = smov 27  }
  0x2b   :  { %8609 = sst [smem:[#allocation82_spill]] %s7466_s30 }
  0x2c   :  { %s7491_s3 = sld [smem:[%s8565_s0 + %s7245_s22]]   ;;  %s7249_s22 = smov 28  }
  0x2d   :  { %8610 = sst [smem:[#allocation83_spill]] %s7476_s19 }
  0x2e   :  { %s7496_s29 = sld [smem:[%s8565_s0 + %s7246_s28]]   ;;  %s7250_s28 = smov 29  }
  0x2f   :  { %8611 = sst [smem:[#allocation84_spill]] %s7481_s14 }
  0x30   :  { %8612 = sst [smem:[#allocation85_spill]] %s7486_s8 }
  0x31   :  { %s7501_s14 = sld [smem:[%s8565_s0 + %s7247_s7]]   ;;  %s7251_s7 = smov 30  }
  0x32   :  { %s7506_s8 = sld [smem:[%s8565_s0 + %s7248_s15]]   ;;  %s7252_s15 = smov 31  }
  0x33   :  { %s7511_s6 = sld [smem:[%s8565_s0 + %s7249_s22]]   ;;  %s7253_s22 = smov 32  }
  0x34   :  { %8613 = sst [smem:[#allocation86_spill]] %s7496_s29 }
  0x35   :  { %s7516_s4 = sld [smem:[%s8565_s0 + %s7250_s28]]   ;;  %s7254_s28 = smov 33  }
  0x36   :  { %s7526_s25 = sld [smem:[%s8565_s0 + %s7252_s15]]   ;;  %s7256_s15 = smov 35  }
  0x37   :  { %8614 = sst [smem:[#allocation87_spill]] %s7501_s14 }
  0x38   :  { %s7521_s14 = sld [smem:[%s8565_s0 + %s7251_s7]]   ;;  %s7255_s7 = smov 34  }
  0x39   :  { %8615 = sst [smem:[#allocation88_spill]] %s7511_s6 }
  0x3a   :  { %s7531_s6 = sld [smem:[%s8565_s0 + %s7253_s22]]   ;;  %s7257_s22 = smov 36  }
  0x3b   :  { %8616 = sst [smem:[#allocation89_spill]] %s7516_s4 }
  0x3c   :  { %8618 = sst [smem:[#allocation91_spill]] %s7526_s25 }
  0x3d   :  { %s7536_s4 = sld [smem:[%s8565_s0 + %s7254_s28]]   ;;  %s7258_s28 = smov 37  }
  0x3e   :  { %8617 = sst [smem:[#allocation90_spill]] %s7521_s14 }
  0x3f   :  { %s7541_s14 = sld [smem:[%s8565_s0 + %s7255_s7]]   ;;  %s7259_s7 = smov 38  }
  0x40   :  { %8619 = sst [smem:[#allocation92_spill]] %s7531_s6 }
  0x41   :  { %s7546_s27 = sld [smem:[%s8565_s0 + %s7256_s15]]   ;;  %s7260_s15 = smov 39  }
  0x42   :  { %s7551_s6 = sld [smem:[%s8565_s0 + %s7257_s22]]   ;;  %s7261_s22 = smov 40  }
  0x43   :  { %8620 = sst [smem:[#allocation93_spill]] %s7536_s4 }
  0x44   :  { %s7556_s4 = sld [smem:[%s8565_s0 + %s7258_s28]]   ;;  %s7262_s28 = smov 41  }
  0x45   :  { %8621 = sst [smem:[#allocation94_spill]] %s7541_s14 }
  0x46   :  { %s7561_s14 = sld [smem:[%s8565_s0 + %s7259_s7]]   ;;  %s7263_s7 = smov 42  }
  0x47   :  { %s7566_s17 = sld [smem:[%s8565_s0 + %s7260_s15]]   ;;  %s7264_s15 = smov 43  }
  0x48   :  { %8622 = sst [smem:[#allocation95_spill]] %s7551_s6 }
  0x49   :  { %s7571_s6 = sld [smem:[%s8565_s0 + %s7261_s22]]   ;;  %s7265_s22 = smov 44  }
  0x4a   :  { %8623 = sst [smem:[#allocation96_spill]] %s7556_s4 }
  0x4b   :  { %s7576_s21 = sld [smem:[%s8565_s0 + %s7262_s28]]   ;;  %s7266_s28 = smov 45  }
  0x4c   :  { %8624 = sst [smem:[#allocation97_spill]] %s7561_s14 }
  0x4d   :  { %8625 = sst [smem:[#allocation98_spill]] %s7566_s17 }
  0x4e   :  { %s7581_s14 = sld [smem:[%s8565_s0 + %s7263_s7]]   ;;  %s7267_s7 = smov 46  }
  0x4f   :  { %8626 = sst [smem:[#allocation99_spill]] %s7571_s6 }
  0x50   :  { %s7586_s17 = sld [smem:[%s8565_s0 + %s7264_s15]]   ;;  %s7268_s15 = smov 47  }
  0x51   :  { %s7591_s6 = sld [smem:[%s8565_s0 + %s7265_s22]]   ;;  %s7269_s22 = smov 48  }
  0x52   :  { %s7596_s5 = sld [smem:[%s8565_s0 + %s7266_s28]]   ;;  %s7270_s28 = smov 49  }
  0x53   :  { %s7606_s13 = sld [smem:[%s8565_s0 + %s7268_s15]]   ;;  %s7272_s15 = smov 51  }
  0x54   :  { %8627 = sst [smem:[#allocation100_spill]] %s7581_s14 }
  0x55   :  { %s7601_s14 = sld [smem:[%s8565_s0 + %s7267_s7]]   ;;  %s7271_s7 = smov 50  }
  0x56   :  { %8628 = sst [smem:[#allocation101_spill]] %s7586_s17 }
  0x57   :  { %s7611_s9 = sld [smem:[%s8565_s0 + %s7269_s22]]   ;;  %s7273_s22 = smov 52  }
  0x58   :  { %8629 = sst [smem:[#allocation102_spill]] %s7596_s5 }
  0x59   :  { %s7616_s5 = sld [smem:[%s8565_s0 + %s7270_s28]]   ;;  %s7274_s28 = smov 53  }
  0x5a   :  { %s7626_s17 = sld [smem:[%s8565_s0 + %s7272_s15]]   ;;  %s7276_s15 = smov 55  }
  0x5b   :  { %8630 = sst [smem:[#allocation103_spill]] %s7601_s14 }
  0x5c   :  { %s7621_s14 = sld [smem:[%s8565_s0 + %s7271_s7]]   ;;  %s7275_s7 = smov 54  }
  0x5d   :  { %8631 = sst [smem:[#allocation104_spill]] %s7611_s9 }
  0x5e   :  { %s7631_s9 = sld [smem:[%s8565_s0 + %s7273_s22]]   ;;  %s7277_s22 = smov 56  }
  0x5f   :  { %8632 = sst [smem:[#allocation105_spill]] %s7616_s5 }
  0x60   :  { %8634 = sst [smem:[#allocation107_spill]] %s7626_s17 }
  0x61   :  { %s7636_s5 = sld [smem:[%s8565_s0 + %s7274_s28]]   ;;  %s7278_s28 = smov 57  }
  0x62   :  { %8633 = sst [smem:[#allocation106_spill]] %s7621_s14 }
  0x63   :  { %s7641_s14 = sld [smem:[%s8565_s0 + %s7275_s7]]   ;;  %s7279_s7 = smov 58  }
  0x64   :  { %8635 = sst [smem:[#allocation108_spill]] %s7631_s9 }
  0x65   :  { %s7646_s17 = sld [smem:[%s8565_s0 + %s7276_s15]]   ;;  %s7280_s15 = smov 59  }
  0x66   :  { %s7651_s9 = sld [smem:[%s8565_s0 + %s7277_s22]]   ;;  %s7281_s22 = smov 60  }
  0x67   :  { %s7656_s4 = sld [smem:[%s8565_s0 + %s7278_s28]]   ;;  %s7282_s28 = smov 61  }
  0x69   :  { %8636 = sst [smem:[#allocation109_spill]] %s7641_s14 }
  0x6a   :  { %s7661_s14 = sld [smem:[%s8565_s0 + %s7279_s7]]   ;;  %s7283_s7 = smov 62  }
  0x6b   :  { %8637 = sst [smem:[#allocation110_spill]] %s7646_s17 }
  0x6c   :  { %8638 = sst [smem:[#allocation111_spill]] %s7651_s9 }
  0x6d   :  { %8639 = sst [smem:[#allocation112_spill]] %s7656_s4 }
  0x6e   :  { %s7666_s17 = sld [smem:[%s8565_s0 + %s7280_s15]]   ;;  %s7284_s15 = smov 63  }
  0x6f   :  { %s7671_s9 = sld [smem:[%s8565_s0 + %s7281_s22]]   ;;  %s7285_s22 = smov 64  }
  0x70   :  { %8640 = sst [smem:[#allocation113_spill]] %s7661_s14 }
  0x71   :  { %s7676_s4 = sld [smem:[%s8565_s0 + %s7282_s28]]   ;;  %s7286_s28 = smov 65  }
  0x72   :  { %s7681_s14 = sld [smem:[%s8565_s0 + %s7283_s7]]   ;;  %s7287_s7 = smov 66  }
  0x73   :  { %s7686_s25 = sld [smem:[%s8565_s0 + %s7284_s15]]   ;;  %s7288_s15 = smov 67  }
  0x75   :  { %8641 = sst [smem:[#allocation114_spill]] %s7671_s9 }
  0x76   :  { %s7691_s9 = sld [smem:[%s8565_s0 + %s7285_s22]]   ;;  %s7289_s22 = smov 68  }
  0x77   :  { %8642 = sst [smem:[#allocation115_spill]] %s7676_s4 }
  0x78   :  { %8643 = sst [smem:[#allocation116_spill]] %s7681_s14 }
  0x79   :  { %8644 = sst [smem:[#allocation117_spill]] %s7686_s25 }
  0x7a   :  { %s7696_s4 = sld [smem:[%s8565_s0 + %s7286_s28]]   ;;  %s7290_s28 = smov 69  }
  0x7b   :  { %s7701_s14 = sld [smem:[%s8565_s0 + %s7287_s7]]   ;;  %s7291_s7 = smov 70  }
  0x7c   :  { %8645 = sst [smem:[#allocation118_spill]] %s7691_s9 }
  0x7d   :  { %s7706_s25 = sld [smem:[%s8565_s0 + %s7288_s15]]   ;;  %s7292_s15 = smov 71  }
  0x7e   :  { %s7711_s9 = sld [smem:[%s8565_s0 + %s7289_s22]]   ;;  %s7293_s22 = smov 72  }
  0x7f   :  { %s7721_s29 = sld [smem:[%s8565_s0 + %s7291_s7]]   ;;  %s7295_s7 = smov 74  }
  0x80   :  { %8646 = sst [smem:[#allocation119_spill]] %s7696_s4 }
  0x81   :  { %s7716_s4 = sld [smem:[%s8565_s0 + %s7290_s28]]   ;;  %s7294_s28 = smov 73  }
  0x83   :  { %8647 = sst [smem:[#allocation120_spill]] %s7706_s25 }
  0x84   :  { %8648 = sst [smem:[#allocation121_spill]] %s7711_s9 }
  0x85   :  { %8650 = sst [smem:[#allocation123_spill]] %s7721_s29 }
  0x86   :  { %s7726_s25 = sld [smem:[%s8565_s0 + %s7292_s15]]   ;;  %s7296_s15 = smov 75  }
  0x87   :  { %8649 = sst [smem:[#allocation122_spill]] %s7716_s4 }
  0x88   :  { %s7731_s9 = sld [smem:[%s8565_s0 + %s7293_s22]]   ;;  %s7297_s22 = smov 76  }
  0x89   :  { %s7736_s4 = sld [smem:[%s8565_s0 + %s7294_s28]]   ;;  %s7298_s28 = smov 77  }
  0x8a   :  { %s7741_s29 = sld [smem:[%s8565_s0 + %s7295_s7]]   ;;  %s7299_s7 = smov 78  }
  0x8b   :  { %s7751_s19 = sld [smem:[%s8565_s0 + %s7297_s22]]   ;;  %s7301_s22 = smov 80  }
  0x8c   :  { %8651 = sst [smem:[#allocation124_spill]] %s7726_s25 }
  0x8d   :  { %s7746_s25 = sld [smem:[%s8565_s0 + %s7296_s15]]   ;;  %s7300_s15 = smov 79  }
  0x8f   :  { %8652 = sst [smem:[#allocation125_spill]] %s7736_s4 }
  0x90   :  { %8653 = sst [smem:[#allocation126_spill]] %s7741_s29 }
  0x91   :  { %8655 = sst [smem:[#allocation128_spill]] %s7751_s19 }
  0x92   :  { %s7756_s4 = sld [smem:[%s8565_s0 + %s7298_s28]]   ;;  %s7302_s28 = smov 81  }
  0x93   :  { %8654 = sst [smem:[#allocation127_spill]] %s7746_s25 }
  0x94   :  { %s7761_s29 = sld [smem:[%s8565_s0 + %s7299_s7]]   ;;  %s7303_s7 = smov 82  }
  0x95   :  { %s7766_s25 = sld [smem:[%s8565_s0 + %s7300_s15]]   ;;  %s7304_s15 = smov 83  }
  0x96   :  { %s7771_s19 = sld [smem:[%s8565_s0 + %s7301_s22]]   ;;  %s7305_s22 = smov 84  }
  0x97   :  { %s7781_s30 = sld [smem:[%s8565_s0 + %s7303_s7]]   ;;  %s7307_s7 = smov 86  }
  0x98   :  { %8656 = sst [smem:[#allocation129_spill]] %s7756_s4 }
  0x99   :  { %s7776_s4 = sld [smem:[%s8565_s0 + %s7302_s28]]   ;;  %s7306_s28 = smov 85  }
  0x9b   :  { %8657 = sst [smem:[#allocation130_spill]] %s7766_s25 }
  0x9c   :  { %8658 = sst [smem:[#allocation131_spill]] %s7771_s19 }
  0x9d   :  { %8660 = sst [smem:[#allocation133_spill]] %s7781_s30 }
  0x9e   :  { %s7786_s25 = sld [smem:[%s8565_s0 + %s7304_s15]]   ;;  %s7308_s15 = smov 87  }
  0x9f   :  { %8659 = sst [smem:[#allocation132_spill]] %s7776_s4 }
  0xa0   :  { %s7791_s19 = sld [smem:[%s8565_s0 + %s7305_s22]]   ;;  %s7309_s22 = smov 88  }
  0xa1   :  { %s7796_s4 = sld [smem:[%s8565_s0 + %s7306_s28]]   ;;  %s7310_s28 = smov 89  }
  0xa2   :  { %s7801_s30 = sld [smem:[%s8565_s0 + %s7307_s7]]   ;;  %s7311_s7 = smov 90  }
  0xa3   :  { %s7806_s12 = sld [smem:[%s8565_s0 + %s7308_s15]]   ;;  %s7312_s15 = smov 91  }
  0xa6   :  { %8661 = sst [smem:[#allocation134_spill]] %s7791_s19 }
  0xa7   :  { %8662 = sst [smem:[#allocation135_spill]] %s7796_s4 }
  0xa8   :  { %8663 = sst [smem:[#allocation136_spill]] %s7801_s30 }
  0xa9   :  { %8664 = sst [smem:[#allocation137_spill]] %s7806_s12 }
  0xaa   :  { %s7811_s19 = sld [smem:[%s8565_s0 + %s7309_s22]]   ;;  %s7313_s22 = smov 92  }
  0xab   :  { %s7816_s4 = sld [smem:[%s8565_s0 + %s7310_s28]]   ;;  %s7314_s28 = smov 93  }
  0xac   :  { %s7821_s30 = sld [smem:[%s8565_s0 + %s7311_s7]]   ;;  %s7315_s7 = smov 94  }
  0xad   :  { %s7826_s12 = sld [smem:[%s8565_s0 + %s7312_s15]]   ;;  %s7316_s15 = smov 95  }
  0xb0   :  { %8665 = sst [smem:[#allocation138_spill]] %s7811_s19 }
  0xb1   :  { %8666 = sst [smem:[#allocation139_spill]] %s7816_s4 }
  0xb2   :  { %8667 = sst [smem:[#allocation140_spill]] %s7821_s30 }
  0xb3   :  { %8668 = sst [smem:[#allocation141_spill]] %s7826_s12 }
  0xb4   :  { %s7831_s19 = sld [smem:[%s8565_s0 + %s7313_s22]]   ;;  %s7317_s22 = smov 96  }
  0xb5   :  { %s7836_s4 = sld [smem:[%s8565_s0 + %s7314_s28]]   ;;  %s7318_s28 = smov 97  }
  0xb6   :  { %s7841_s30 = sld [smem:[%s8565_s0 + %s7315_s7]]   ;;  %s7319_s7 = smov 98  }
  0xb7   :  { %s7846_s12 = sld [smem:[%s8565_s0 + %s7316_s15]]   ;;  %s7320_s15 = smov 99  }
  0xba   :  { %8669 = sst [smem:[#allocation142_spill]] %s7831_s19 }
  0xbb   :  { %8670 = sst [smem:[#allocation143_spill]] %s7836_s4 }
  0xbc   :  { %8671 = sst [smem:[#allocation144_spill]] %s7841_s30 }
  0xbd   :  { %8672 = sst [smem:[#allocation145_spill]] %s7846_s12 }
  0xbe   :  { %s7851_s19 = sld [smem:[%s8565_s0 + %s7317_s22]]   ;;  %s7321_s22 = smov 100  }
  0xbf   :  { %s7856_s4 = sld [smem:[%s8565_s0 + %s7318_s28]]   ;;  %s7322_s28 = smov 101  }
  0xc0   :  { %s7861_s30 = sld [smem:[%s8565_s0 + %s7319_s7]]   ;;  %s7323_s7 = smov 102  }
  0xc1   :  { %s7866_s12 = sld [smem:[%s8565_s0 + %s7320_s15]]  }
  0xc4   :  { %8673 = sst [smem:[#allocation146_spill]] %s7851_s19 }
  0xc5   :  { %8674 = sst [smem:[#allocation147_spill]] %s7856_s4 }
  0xc6   :  { %8675 = sst [smem:[#allocation148_spill]] %s7861_s30 }
  0xc7   :  { %s7871_s19 = sld [smem:[%s8565_s0 + %s7321_s22]]  }
  0xc8   :  { %s7876_s4 = sld [smem:[%s8565_s0 + %s7322_s28]]  }
  0xc9   :  { %s7881_s30 = sld [smem:[%s8565_s0 + %s7323_s7]]  }
  0xca   :  { %210 = vsyncpa [#allocation3], 0 }
  0xcb   :  { %211 = vsyncpa [#allocation5], 0 }
  0xcc   :  { %212 = vsyncpa [#allocation8], 0 }
  0xcd   :  { %213 = vsyncpa [#allocation11], 0 }
  0xce   :  { %214 = vsyncpa [#allocation14], 0 }
  0xcf   :  { %215 = vsyncpa [#allocation17], 0 }
  0xd0   :  { %216 = vsyncpa [#allocation20], 0 }
  0xd1   :  { %217 = vsyncpa [#allocation23], 0 }
  0xd2   :  { %218 = vsyncpa [#allocation26], 0 }
  0xd3   :  { %219 = vsyncpa [#allocation29], 0 }
  0xd4   :  { %220 = vsyncpa [#allocation32], 0 }
  0xd5   :  { %221 = vsyncpa [#allocation35], 0 }
  0xd6   :  { %222 = vsyncpa [#allocation38], 0 }
  0xd7   :  { %223 = vsyncpa [#allocation41], 0 }
  0xd8   :  { %224 = vsyncpa [#allocation44], 0 }
  0xd9   :  { %225 = vsyncpa [#allocation47], 0  ;;  %s7324_s15 = smov [#allocation4]   ;;  %s7325_s0 = smov [#allocation7]  }
  0xda   :  { %s270_s16 = sshll.u32 %s7324_s15, 4  ;;  %s295_s18 = sshll.u32 %s7325_s0, 4  ;;  %s271_s16 = int_to_ptr.vmem [resolvable:$true] %s270_s16  ;;  %s296_s18 = int_to_ptr.vmem [resolvable:$true] %s295_s18 }
  0xdb   :  { %s6598_s22 = scalar_lea.vmem %s271_s16, 16  ;;  %s6602_s23 = scalar_lea.vmem %s271_s16, 32 }
  0xdc   :  { %p6599_p0 = scmp.ne.s32.totalorder %s271_s16, %s6598_s22  ;;  %p6603_p1 = scmp.lt.s32.totalorder %s271_s16, %s271_s16 }
  0xdd   :  { %p6604_p2 = scmp.lt.s32.totalorder %s6602_s23, %s6598_s22 }
  0xdf   :  { %p6605_p3 = por %p6604_p2, %p6603_p1 }
  0xe1   :  { %p6606_p4 = pnand %p6605_p3, %p6599_p0 }
  0xe3   :  { %6609 = shalt.err (!%p6606_p4)
}
  0xe4   :  { %273 = dma.hbm_to_vmem [thread:$0]  %s7446_s20, 16, %s271_s16, [#allocation5]  }
  0xe5   :  { %s6618_s26 = scalar_lea.vmem %s296_s18, 128  ;;  %p6623_p6 = scmp.lt.s32.totalorder %s296_s18, %s296_s18 }
  0xe6   :  { %p6619_p5 = scmp.ne.s32.totalorder %s296_s18, %s6618_s26  ;;  %p6624_p7 = scmp.lt.s32.totalorder %s6618_s26, %s6618_s26 }
  0xe8   :  { %p6625_p8 = por %p6624_p7, %p6623_p6 }
  0xea   :  { %p6626_p9 = pnand %p6625_p8, %p6619_p5 }
  0xec   :  { %6629 = shalt.err (!%p6626_p9)
}
  0xed   :  { %s7326_s28 = smov 64   ;;  %s7327_s1 = smov 4  }
  0xee   :  { %301 = dma.hbm_to_vmem [thread:$0]  %s7471_s24, 128, %s296_s18, [#allocation8], %s7326_s28, %s7326_s28, %s7327_s1  }
  0xef   :  { %s7328_s2 = smov [#allocation10]   ;;  %s7329_s10 = smov [#allocation13]  }
  0xf0   :  { %s321_s7 = sshll.u32 %s7328_s2, 4  ;;  %s346_s11 = sshll.u32 %s7329_s10, 4  ;;  %s322_s7 = int_to_ptr.vmem [resolvable:$true] %s321_s7  ;;  %s347_s11 = int_to_ptr.vmem [resolvable:$true] %s346_s11 }
  0xf1   :  { %s6638_s20 = scalar_lea.vmem %s322_s7, 128  ;;  %p6643_p11 = scmp.lt.s32.totalorder %s322_s7, %s322_s7 }
  0xf2   :  { %p6639_p10 = scmp.ne.s32.totalorder %s322_s7, %s6638_s20  ;;  %p6644_p12 = scmp.lt.s32.totalorder %s6638_s20, %s6638_s20 }
  0xf4   :  { %p6645_p13 = por %p6644_p12, %p6643_p11 }
  0xf6   :  { %p6646_p0 = pnand %p6645_p13, %p6639_p10 }
  0xf8   :  { %6649 = shalt.err (!%p6646_p0)
}
  0xf9   :  { %327 = dma.hbm_to_vmem [thread:$0]  %s7491_s3, 128, %s322_s7, [#allocation11], %s7326_s28, %s7326_s28, %s7327_s1  }
  0xfa   :  { %s6658_s15 = scalar_lea.vmem %s347_s11, 16  ;;  %s6662_s24 = scalar_lea.vmem %s347_s11, 32 }
  0xfb   :  { %p6659_p1 = scmp.ne.s32.totalorder %s347_s11, %s6658_s15  ;;  %p6663_p2 = scmp.lt.s32.totalorder %s347_s11, %s347_s11 }
  0xfc   :  { %p6664_p3 = scmp.lt.s32.totalorder %s6662_s24, %s6658_s15 }
  0xfe   :  { %p6665_p4 = por %p6664_p3, %p6663_p2 }
 0x100   :  { %p6666_p5 = pnand %p6665_p4, %p6659_p1 }
 0x102   :  { %6669 = shalt.err (!%p6666_p5)
}
 0x103   :  { %349 = dma.hbm_to_vmem [thread:$0]  %s7506_s8, 16, %s347_s11, [#allocation14]  }
 0x104   :  { %s7330_s16 = smov [#allocation16]   ;;  %s7331_s18 = smov [#allocation19]  }
 0x105   :  { %s378_s0 = sshll.u32 %s7330_s16, 4  ;;  %s406_s22 = sshll.u32 %s7331_s18, 4  ;;  %s379_s0 = int_to_ptr.vmem [resolvable:$true] %s378_s0  ;;  %s407_s22 = int_to_ptr.vmem [resolvable:$true] %s406_s22 }
 0x106   :  { %s6678_s23 = scalar_lea.vmem %s379_s0, 16  ;;  %s6682_s26 = scalar_lea.vmem %s379_s0, 32 }
 0x107   :  { %p6679_p6 = scmp.ne.s32.totalorder %s379_s0, %s6678_s23  ;;  %p6683_p7 = scmp.lt.s32.totalorder %s379_s0, %s379_s0 }
 0x108   :  { %p6684_p8 = scmp.lt.s32.totalorder %s6682_s26, %s6678_s23 }
 0x10a   :  { %p6685_p9 = por %p6684_p8, %p6683_p7 }
 0x10c   :  { %p6686_p10 = pnand %p6685_p9, %p6679_p6 }
 0x10e   :  { %6689 = shalt.err (!%p6686_p10)
}
 0x10f   :  { %381 = dma.hbm_to_vmem [thread:$0]  %s7546_s27, 16, %s379_s0, [#allocation17]  }
 0x110   :  { %s6698_s3 = scalar_lea.vmem %s407_s22, 16  ;;  %s6702_s1 = scalar_lea.vmem %s407_s22, 32 }
 0x111   :  { %p6699_p11 = scmp.ne.s32.totalorder %s407_s22, %s6698_s3  ;;  %p6703_p12 = scmp.lt.s32.totalorder %s407_s22, %s407_s22 }
 0x112   :  { %p6704_p13 = scmp.lt.s32.totalorder %s6702_s1, %s6698_s3 }
 0x114   :  { %p6705_p0 = por %p6704_p13, %p6703_p12 }
 0x116   :  { %p6706_p1 = pnand %p6705_p0, %p6699_p11 }
 0x118   :  { %6709 = shalt.err (!%p6706_p1)
}
 0x119   :  { %409 = dma.hbm_to_vmem [thread:$0]  %s7576_s21, 16, %s407_s22, [#allocation20]  }
 0x11a   :  { %s7332_s8 = smov [#allocation22]   ;;  %s7333_s7 = smov [#allocation25]  }
 0x11b   :  { %s428_s2 = sshll.u32 %s7332_s8, 4  ;;  %s450_s10 = sshll.u32 %s7333_s7, 4  ;;  %s429_s2 = int_to_ptr.vmem [resolvable:$true] %s428_s2  ;;  %s451_s10 = int_to_ptr.vmem [resolvable:$true] %s450_s10 }
 0x11c   :  { %s6718_s11 = scalar_lea.vmem %s429_s2, 128  ;;  %p6723_p3 = scmp.lt.s32.totalorder %s429_s2, %s429_s2 }
 0x11d   :  { %p6719_p2 = scmp.ne.s32.totalorder %s429_s2, %s6718_s11  ;;  %p6724_p4 = scmp.lt.s32.totalorder %s6718_s11, %s6718_s11 }
 0x11f   :  { %p6725_p5 = por %p6724_p4, %p6723_p3 }
 0x121   :  { %p6726_p6 = pnand %p6725_p5, %p6719_p2 }
 0x123   :  { %6729 = shalt.err (!%p6726_p6)
}
 0x124   :  { %431 = dma.hbm_to_vmem [thread:$0]  %s7591_s6, 128, %s429_s2, [#allocation23]  }
 0x125   :  { %s6738_s27 = scalar_lea.vmem %s451_s10, 16  ;;  %s6742_s20 = scalar_lea.vmem %s451_s10, 32 }
 0x126   :  { %p6739_p7 = scmp.ne.s32.totalorder %s451_s10, %s6738_s27  ;;  %p6743_p8 = scmp.lt.s32.totalorder %s451_s10, %s451_s10 }
 0x127   :  { %p6744_p9 = scmp.lt.s32.totalorder %s6742_s20, %s6738_s27 }
 0x129   :  { %p6745_p10 = por %p6744_p9, %p6743_p8 }
 0x12b   :  { %p6746_p11 = pnand %p6745_p10, %p6739_p7 }
 0x12d   :  { %6749 = shalt.err (!%p6746_p11)
}
 0x12e   :  { %453 = dma.hbm_to_vmem [thread:$0]  %s7606_s13, 16, %s451_s10, [#allocation26]  }
 0x12f   :  { %s7334_s21 = smov [#allocation28]   ;;  %s7335_s24 = smov [#allocation31]  }
 0x130   :  { %s478_s15 = sshll.u32 %s7334_s21, 4  ;;  %s506_s16 = sshll.u32 %s7335_s24, 4  ;;  %s479_s15 = int_to_ptr.vmem [resolvable:$true] %s478_s15  ;;  %s507_s16 = int_to_ptr.vmem [resolvable:$true] %s506_s16 }
 0x131   :  { %s6758_s0 = scalar_lea.vmem %s479_s15, 16  ;;  %s6762_s18 = scalar_lea.vmem %s479_s15, 32 }
 0x132   :  { %p6759_p12 = scmp.ne.s32.totalorder %s479_s15, %s6758_s0  ;;  %p6763_p13 = scmp.lt.s32.totalorder %s479_s15, %s479_s15 }
 0x133   :  { %p6764_p0 = scmp.lt.s32.totalorder %s6762_s18, %s6758_s0 }
 0x135   :  { %p6765_p1 = por %p6764_p0, %p6763_p13 }
 0x137   :  { %p6766_p2 = pnand %p6765_p1, %p6759_p12 }
 0x139   :  { %6769 = shalt.err (!%p6766_p2)
}
 0x13a   :  { %481 = dma.hbm_to_vmem [thread:$0]  %s7636_s5, 16, %s479_s15, [#allocation29]  }
 0x13b   :  { %s6778_s6 = scalar_lea.vmem %s507_s16, 16  ;;  %s6782_s22 = scalar_lea.vmem %s507_s16, 32 }
 0x13c   :  { %p6779_p3 = scmp.ne.s32.totalorder %s507_s16, %s6778_s6  ;;  %p6783_p4 = scmp.lt.s32.totalorder %s507_s16, %s507_s16 }
 0x13d   :  { %p6784_p5 = scmp.lt.s32.totalorder %s6782_s22, %s6778_s6 }
 0x13f   :  { %p6785_p6 = por %p6784_p5, %p6783_p4 }
 0x141   :  { %p6786_p7 = pnand %p6785_p6, %p6779_p3 }
 0x143   :  { %6789 = shalt.err (!%p6786_p7)
}
 0x144   :  { %509 = dma.hbm_to_vmem [thread:$0]  %s7666_s17, 16, %s507_s16, [#allocation32]  }
 0x145   :  { %s7336_s13 = smov [#allocation34]   ;;  %s7337_s26 = smov [#allocation37]  }
 0x146   :  { %s536_s23 = sshll.u32 %s7336_s13, 4  ;;  %s564_s3 = sshll.u32 %s7337_s26, 4  ;;  %s537_s23 = int_to_ptr.vmem [resolvable:$true] %s536_s23  ;;  %s565_s3 = int_to_ptr.vmem [resolvable:$true] %s564_s3 }
 0x147   :  { %s6798_s1 = scalar_lea.vmem %s537_s23, 16  ;;  %s6802_s8 = scalar_lea.vmem %s537_s23, 32 }
 0x148   :  { %p6799_p8 = scmp.ne.s32.totalorder %s537_s23, %s6798_s1  ;;  %p6803_p9 = scmp.lt.s32.totalorder %s537_s23, %s537_s23 }
 0x149   :  { %p6804_p10 = scmp.lt.s32.totalorder %s6802_s8, %s6798_s1 }
 0x14b   :  { %p6805_p11 = por %p6804_p10, %p6803_p9 }
 0x14d   :  { %p6806_p12 = pnand %p6805_p11, %p6799_p8 }
 0x14f   :  { %6809 = shalt.err (!%p6806_p12)
}
 0x150   :  { %539 = dma.hbm_to_vmem [thread:$0]  %s7701_s14, 16, %s537_s23, [#allocation35]  }
 0x151   :  { %s6818_s5 = scalar_lea.vmem %s565_s3, 16  ;;  %s6822_s2 = scalar_lea.vmem %s565_s3, 32 }
 0x152   :  { %p6819_p13 = scmp.ne.s32.totalorder %s565_s3, %s6818_s5  ;;  %p6823_p0 = scmp.lt.s32.totalorder %s565_s3, %s565_s3 }
 0x153   :  { %p6824_p1 = scmp.lt.s32.totalorder %s6822_s2, %s6818_s5 }
 0x155   :  { %p6825_p2 = por %p6824_p1, %p6823_p0 }
 0x157   :  { %p6826_p3 = pnand %p6825_p2, %p6819_p13 }
 0x159   :  { %6829 = shalt.err (!%p6826_p3)
}
 0x15a   :  { %567 = dma.hbm_to_vmem [thread:$0]  %s7731_s9, 16, %s565_s3, [#allocation38]  }
 0x15b   :  { %s7338_s17 = smov [#allocation40]   ;;  %s7339_s10 = smov [#allocation43]  }
 0x15c   :  { %s592_s7 = sshll.u32 %s7338_s17, 4  ;;  %s618_s11 = sshll.u32 %s7339_s10, 4  ;;  %s593_s7 = int_to_ptr.vmem [resolvable:$true] %s592_s7  ;;  %s619_s11 = int_to_ptr.vmem [resolvable:$true] %s618_s11 }
 0x15d   :  { %s6838_s27 = scalar_lea.vmem %s593_s7, 16  ;;  %s6842_s20 = scalar_lea.vmem %s593_s7, 32 }
 0x15e   :  { %p6839_p4 = scmp.ne.s32.totalorder %s593_s7, %s6838_s27  ;;  %p6843_p5 = scmp.lt.s32.totalorder %s593_s7, %s593_s7 }
 0x15f   :  { %p6844_p6 = scmp.lt.s32.totalorder %s6842_s20, %s6838_s27 }
 0x161   :  { %p6845_p7 = por %p6844_p6, %p6843_p5 }
 0x163   :  { %p6846_p8 = pnand %p6845_p7, %p6839_p4 }
 0x165   :  { %6849 = shalt.err (!%p6846_p8)
}
 0x166   :  { %595 = dma.hbm_to_vmem [thread:$0]  %s7761_s29, 16, %s593_s7, [#allocation41]  }
 0x167   :  { %s6858_s14 = scalar_lea.vmem %s619_s11, 16  ;;  %s6862_s21 = scalar_lea.vmem %s619_s11, 32 }
 0x168   :  { %p6859_p9 = scmp.ne.s32.totalorder %s619_s11, %s6858_s14  ;;  %p6863_p10 = scmp.lt.s32.totalorder %s619_s11, %s619_s11 }
 0x169   :  { %p6864_p11 = scmp.lt.s32.totalorder %s6862_s21, %s6858_s14 }
 0x16b   :  { %p6865_p12 = por %p6864_p11, %p6863_p10 }
 0x16d   :  { %p6866_p13 = pnand %p6865_p12, %p6859_p9 }
 0x16f   :  { %6869 = shalt.err (!%p6866_p13)
}
 0x170   :  { %621 = dma.hbm_to_vmem [thread:$0]  %s7786_s25, 16, %s619_s11, [#allocation44]  }
 0x171   :  { %s7340_s9 = smov [#allocation2]   ;;  %s7341_s24 = smov [#allocation6]  }
 0x172   :  { %s260_s15 = sshll.u32 %s7340_s9, 4  ;;  %s286_s16 = sshll.u32 %s7341_s24, 4  ;;  %s261_s15 = int_to_ptr.vmem [resolvable:$true] %s260_s15  ;;  %s287_s16 = int_to_ptr.vmem [resolvable:$true] %s286_s16 }
 0x173   :  { %s6878_s0 = scalar_lea.vmem %s261_s15, 64  ;;  %p6883_p1 = scmp.lt.s32.totalorder %s261_s15, %s261_s15 }
 0x174   :  { %p6879_p0 = scmp.ne.s32.totalorder %s261_s15, %s6878_s0  ;;  %p6884_p2 = scmp.lt.s32.totalorder %s6878_s0, %s6878_s0 }
 0x176   :  { %p6885_p3 = por %p6884_p2, %p6883_p1 }
 0x178   :  { %p6886_p4 = pnand %p6885_p3, %p6879_p0 }
 0x17a   :  { %6889 = shalt.err (!%p6886_p4)
}
 0x17b   :  { %s8676_s29 = sld [smem:[#allocation78_spill]]  ;;  %s6898_s18 = scalar_lea.vmem %s287_s16, 16 }
 0x17c   :  { %p6899_p5 = scmp.ne.s32.totalorder %s287_s16, %s6898_s18  ;;  %s6902_s6 = scalar_lea.vmem %s287_s16, 32 }
 0x17d   :  { %p6903_p6 = scmp.lt.s32.totalorder %s287_s16, %s287_s16  ;;  %p6904_p7 = scmp.lt.s32.totalorder %s6902_s6, %s6898_s18 }
 0x17f   :  { %p6905_p8 = por %p6904_p7, %p6903_p6 }
 0x181   :  { %263 = dma.hbm_to_vmem [thread:$0]  %s8676_s29, 64, %s261_s15, [#allocation3]  }
 0x182   :  { %p6906_p9 = pnand %p6905_p8, %p6899_p5 }
 0x184   :  { %6909 = shalt.err (!%p6906_p9)
}
 0x185   :  { %s8677_s25 = sld [smem:[#allocation82_spill]]  ;;  %s7342_s22 = smov [#allocation9]  }
 0x186   :  { %s308_s13 = sshll.u32 %s7342_s22, 4  ;;  %s7343_s23 = smov [#allocation12]   ;;  %s309_s13 = int_to_ptr.vmem [resolvable:$true] %s308_s13 }
 0x187   :  { %s334_s26 = sshll.u32 %s7343_s23, 4  ;;  %s6918_s3 = scalar_lea.vmem %s309_s13, 16  ;;  %s335_s26 = int_to_ptr.vmem [resolvable:$true] %s334_s26 }
 0x188   :  { %p6919_p10 = scmp.ne.s32.totalorder %s309_s13, %s6918_s3  ;;  %s6922_s1 = scalar_lea.vmem %s309_s13, 32 }
 0x189   :  { %p6923_p11 = scmp.lt.s32.totalorder %s309_s13, %s309_s13  ;;  %p6924_p12 = scmp.lt.s32.totalorder %s6922_s1, %s6918_s3 }
 0x18b   :  { %289 = dma.hbm_to_vmem [thread:$0]  %s8677_s25, 16, %s287_s16, [#allocation5]  }
 0x18c   :  { %p6925_p13 = por %p6924_p12, %p6923_p11 }
 0x18e   :  { %p6926_p0 = pnand %p6925_p13, %p6919_p10 }
 0x190   :  { %6929 = shalt.err (!%p6926_p0)
}
 0x191   :  { %s8678_s8 = sld [smem:[#allocation83_spill]]  ;;  %s6938_s5 = scalar_lea.vmem %s335_s26, 16 }
 0x192   :  { %p6939_p1 = scmp.ne.s32.totalorder %s335_s26, %s6938_s5  ;;  %s6942_s2 = scalar_lea.vmem %s335_s26, 32 }
 0x193   :  { %p6943_p2 = scmp.lt.s32.totalorder %s335_s26, %s335_s26  ;;  %p6944_p3 = scmp.lt.s32.totalorder %s6942_s2, %s6938_s5 }
 0x195   :  { %p6945_p4 = por %p6944_p3, %p6943_p2 }
 0x197   :  { %311 = dma.hbm_to_vmem [thread:$0]  %s8678_s8, 16, %s309_s13, [#allocation8]  }
 0x198   :  { %p6946_p5 = pnand %p6945_p4, %p6939_p1 }
 0x19a   :  { %6949 = shalt.err (!%p6946_p5)
}
 0x19b   :  { %s8679_s17 = sld [smem:[#allocation86_spill]]  ;;  %s7344_s7 = smov [#allocation15]  }
 0x19c   :  { %s362_s10 = sshll.u32 %s7344_s7, 4  ;;  %s7345_s11 = smov [#allocation18]   ;;  %s363_s10 = int_to_ptr.vmem [resolvable:$true] %s362_s10 }
 0x19d   :  { %s390_s27 = sshll.u32 %s7345_s11, 4  ;;  %s6958_s20 = scalar_lea.vmem %s363_s10, 16  ;;  %s391_s27 = int_to_ptr.vmem [resolvable:$true] %s390_s27 }
 0x19e   :  { %p6959_p6 = scmp.ne.s32.totalorder %s363_s10, %s6958_s20  ;;  %s6962_s14 = scalar_lea.vmem %s363_s10, 32 }
 0x19f   :  { %p6963_p7 = scmp.lt.s32.totalorder %s363_s10, %s363_s10  ;;  %p6964_p8 = scmp.lt.s32.totalorder %s6962_s14, %s6958_s20 }
 0x1a1   :  { %337 = dma.hbm_to_vmem [thread:$0]  %s8679_s17, 16, %s335_s26, [#allocation11]  }
 0x1a2   :  { %p6965_p9 = por %p6964_p8, %p6963_p7 }
 0x1a4   :  { %p6966_p10 = pnand %p6965_p9, %p6959_p6 }
 0x1a6   :  { %6969 = shalt.err (!%p6966_p10)
}
 0x1a7   :  { %s8680_s21 = sld [smem:[#allocation91_spill]]  ;;  %s6978_s9 = scalar_lea.vmem %s391_s27, 16 }
 0x1a8   :  { %p6979_p11 = scmp.ne.s32.totalorder %s391_s27, %s6978_s9  ;;  %s6982_s15 = scalar_lea.vmem %s391_s27, 32 }
 0x1a9   :  { %p6983_p12 = scmp.lt.s32.totalorder %s391_s27, %s391_s27  ;;  %p6984_p13 = scmp.lt.s32.totalorder %s6982_s15, %s6978_s9 }
 0x1ab   :  { %p6985_p0 = por %p6984_p13, %p6983_p12 }
 0x1ad   :  { %365 = dma.hbm_to_vmem [thread:$0]  %s8680_s21, 16, %s363_s10, [#allocation14]  }
 0x1ae   :  { %p6986_p1 = pnand %p6985_p0, %p6979_p11 }
 0x1b0   :  { %6989 = shalt.err (!%p6986_p1)
}
 0x1b1   :  { %s8681_s24 = sld [smem:[#allocation96_spill]]  ;;  %s7346_s16 = smov [#allocation21]  }
 0x1b2   :  { %s418_s0 = sshll.u32 %s7346_s16, 4  ;;  %s7347_s29 = smov [#allocation24]   ;;  %s419_s0 = int_to_ptr.vmem [resolvable:$true] %s418_s0 }
 0x1b3   :  { %s438_s18 = sshll.u32 %s7347_s29, 4  ;;  %s6998_s6 = scalar_lea.vmem %s419_s0, 16  ;;  %s439_s18 = int_to_ptr.vmem [resolvable:$true] %s438_s18 }
 0x1b4   :  { %p6999_p2 = scmp.ne.s32.totalorder %s419_s0, %s6998_s6  ;;  %s7002_s25 = scalar_lea.vmem %s419_s0, 32 }
 0x1b5   :  { %p7003_p3 = scmp.lt.s32.totalorder %s419_s0, %s419_s0  ;;  %p7004_p4 = scmp.lt.s32.totalorder %s7002_s25, %s6998_s6 }
 0x1b7   :  { %393 = dma.hbm_to_vmem [thread:$0]  %s8681_s24, 16, %s391_s27, [#allocation17]  }
 0x1b8   :  { %p7005_p5 = por %p7004_p4, %p7003_p3 }
 0x1ba   :  { %p7006_p6 = pnand %p7005_p5, %p6999_p2 }
 0x1bc   :  { %7009 = shalt.err (!%p7006_p6)
}
 0x1bd   :  { %s8682_s22 = sld [smem:[#allocation101_spill]]  ;;  %s7018_s13 = scalar_lea.vmem %s439_s18, 128 }
 0x1be   :  { %p7019_p7 = scmp.ne.s32.totalorder %s439_s18, %s7018_s13  ;;  %p7023_p8 = scmp.lt.s32.totalorder %s439_s18, %s439_s18 }
 0x1bf   :  { %p7024_p9 = scmp.lt.s32.totalorder %s7018_s13, %s7018_s13 }
 0x1c1   :  { %p7025_p10 = por %p7024_p9, %p7023_p8 }
 0x1c3   :  { %421 = dma.hbm_to_vmem [thread:$0]  %s8682_s22, 16, %s419_s0, [#allocation20]  }
 0x1c4   :  { %p7026_p11 = pnand %p7025_p10, %p7019_p7 }
 0x1c6   :  { %7029 = shalt.err (!%p7026_p11)
}
 0x1c7   :  { %s8683_s23 = sld [smem:[#allocation102_spill]]  ;;  %s7348_s26 = smov [#allocation27]  }
 0x1c8   :  { %s466_s3 = sshll.u32 %s7348_s26, 4  ;;  %s7349_s1 = smov [#allocation30]   ;;  %s467_s3 = int_to_ptr.vmem [resolvable:$true] %s466_s3 }
 0x1c9   :  { %s494_s8 = sshll.u32 %s7349_s1, 4  ;;  %s7038_s5 = scalar_lea.vmem %s467_s3, 16  ;;  %s495_s8 = int_to_ptr.vmem [resolvable:$true] %s494_s8 }
 0x1ca   :  { %p7039_p12 = scmp.ne.s32.totalorder %s467_s3, %s7038_s5  ;;  %s7042_s2 = scalar_lea.vmem %s467_s3, 32 }
 0x1cb   :  { %p7043_p13 = scmp.lt.s32.totalorder %s467_s3, %s467_s3  ;;  %p7044_p0 = scmp.lt.s32.totalorder %s7042_s2, %s7038_s5 }
 0x1cd   :  { %441 = dma.hbm_to_vmem [thread:$0]  %s8683_s23, 128, %s439_s18, [#allocation23]  }
 0x1ce   :  { %p7045_p1 = por %p7044_p0, %p7043_p13 }
 0x1d0   :  { %p7046_p2 = pnand %p7045_p1, %p7039_p12 }
 0x1d2   :  { %7049 = shalt.err (!%p7046_p2)
}
 0x1d3   :  { %s8684_s17 = sld [smem:[#allocation107_spill]]  ;;  %s7058_s7 = scalar_lea.vmem %s495_s8, 16 }
 0x1d4   :  { %p7059_p3 = scmp.ne.s32.totalorder %s495_s8, %s7058_s7  ;;  %s7062_s10 = scalar_lea.vmem %s495_s8, 32 }
 0x1d5   :  { %p7063_p4 = scmp.lt.s32.totalorder %s495_s8, %s495_s8  ;;  %p7064_p5 = scmp.lt.s32.totalorder %s7062_s10, %s7058_s7 }
 0x1d7   :  { %p7065_p6 = por %p7064_p5, %p7063_p4 }
 0x1d9   :  { %469 = dma.hbm_to_vmem [thread:$0]  %s8684_s17, 16, %s467_s3, [#allocation26]  }
 0x1da   :  { %p7066_p7 = pnand %p7065_p6, %p7059_p3 }
 0x1dc   :  { %7069 = shalt.err (!%p7066_p7)
}
 0x1dd   :  { %s8685_s11 = sld [smem:[#allocation112_spill]]  ;;  %s7350_s27 = smov [#allocation33]  }
 0x1de   :  { %s522_s20 = sshll.u32 %s7350_s27, 4  ;;  %s7351_s14 = smov [#allocation36]   ;;  %s523_s20 = int_to_ptr.vmem [resolvable:$true] %s522_s20 }
 0x1df   :  { %s548_s21 = sshll.u32 %s7351_s14, 4  ;;  %s7078_s9 = scalar_lea.vmem %s523_s20, 16  ;;  %s549_s21 = int_to_ptr.vmem [resolvable:$true] %s548_s21 }
 0x1e0   :  { %p7079_p8 = scmp.ne.s32.totalorder %s523_s20, %s7078_s9  ;;  %s7082_s15 = scalar_lea.vmem %s523_s20, 32 }
 0x1e1   :  { %p7083_p9 = scmp.lt.s32.totalorder %s523_s20, %s523_s20  ;;  %p7084_p10 = scmp.lt.s32.totalorder %s7082_s15, %s7078_s9 }
 0x1e3   :  { %497 = dma.hbm_to_vmem [thread:$0]  %s8685_s11, 16, %s495_s8, [#allocation29]  }
 0x1e4   :  { %p7085_p11 = por %p7084_p10, %p7083_p9 }
 0x1e6   :  { %p7086_p12 = pnand %p7085_p11, %p7079_p8 }
 0x1e8   :  { %7089 = shalt.err (!%p7086_p12)
}
 0x1e9   :  { %s8686_s24 = sld [smem:[#allocation117_spill]]  ;;  %s7098_s16 = scalar_lea.vmem %s549_s21, 16 }
 0x1ea   :  { %p7099_p13 = scmp.ne.s32.totalorder %s549_s21, %s7098_s16  ;;  %s7102_s0 = scalar_lea.vmem %s549_s21, 32 }
 0x1eb   :  { %p7103_p0 = scmp.lt.s32.totalorder %s549_s21, %s549_s21  ;;  %p7104_p1 = scmp.lt.s32.totalorder %s7102_s0, %s7098_s16 }
 0x1ed   :  { %p7105_p2 = por %p7104_p1, %p7103_p0 }
 0x1ef   :  { %525 = dma.hbm_to_vmem [thread:$0]  %s8686_s24, 16, %s523_s20, [#allocation32]  }
 0x1f0   :  { %p7106_p3 = pnand %p7105_p2, %p7099_p13 }
 0x1f2   :  { %7109 = shalt.err (!%p7106_p3)
}
 0x1f3   :  { %s8687_s29 = sld [smem:[#allocation121_spill]]  ;;  %s7352_s18 = smov [#allocation39]  }
 0x1f4   :  { %s576_s6 = sshll.u32 %s7352_s18, 4  ;;  %s7353_s25 = smov [#allocation42]   ;;  %s577_s6 = int_to_ptr.vmem [resolvable:$true] %s576_s6 }
 0x1f5   :  { %s606_s22 = sshll.u32 %s7353_s25, 4  ;;  %s7118_s13 = scalar_lea.vmem %s577_s6, 16  ;;  %s607_s22 = int_to_ptr.vmem [resolvable:$true] %s606_s22 }
 0x1f6   :  { %p7119_p4 = scmp.ne.s32.totalorder %s577_s6, %s7118_s13  ;;  %s7122_s23 = scalar_lea.vmem %s577_s6, 32 }
 0x1f7   :  { %p7123_p5 = scmp.lt.s32.totalorder %s577_s6, %s577_s6  ;;  %p7124_p6 = scmp.lt.s32.totalorder %s7122_s23, %s7118_s13 }
 0x1f9   :  { %551 = dma.hbm_to_vmem [thread:$0]  %s8687_s29, 16, %s549_s21, [#allocation35]  }
 0x1fa   :  { %p7125_p7 = por %p7124_p6, %p7123_p5 }
 0x1fc   :  { %p7126_p8 = pnand %p7125_p7, %p7119_p4 }
 0x1fe   :  { %7129 = shalt.err (!%p7126_p8)
}
 0x1ff   :  { %s8688_s26 = sld [smem:[#allocation126_spill]]  ;;  %s7138_s3 = scalar_lea.vmem %s607_s22, 16 }
 0x200   :  { %p7139_p9 = scmp.ne.s32.totalorder %s607_s22, %s7138_s3  ;;  %s7142_s1 = scalar_lea.vmem %s607_s22, 32 }
 0x201   :  { %p7143_p10 = scmp.lt.s32.totalorder %s607_s22, %s607_s22  ;;  %p7144_p11 = scmp.lt.s32.totalorder %s7142_s1, %s7138_s3 }
 0x203   :  { %p7145_p12 = por %p7144_p11, %p7143_p10 }
 0x205   :  { %579 = dma.hbm_to_vmem [thread:$0]  %s8688_s26, 16, %s577_s6, [#allocation38]  }
 0x206   :  { %p7146_p13 = pnand %p7145_p12, %p7139_p9 }
 0x208   :  { %7149 = shalt.err (!%p7146_p13)
}
 0x209   :  { %s8689_s8 = sld [smem:[#allocation132_spill]]  ;;  %s7354_s5 = smov [#allocation45]  }
 0x20a   :  { %s634_s2 = sshll.u32 %s7354_s5, 4  ;;  %s7355_s17 = smov [#allocation46]   ;;  %s635_s2 = int_to_ptr.vmem [resolvable:$true] %s634_s2 }
 0x20b   :  { %s646_s7 = sshll.u32 %s7355_s17, 4  ;;  %s7158_s10 = scalar_lea.vmem %s635_s2, 16  ;;  %s647_s7 = int_to_ptr.vmem [resolvable:$true] %s646_s7 }
 0x20c   :  { %p7159_p0 = scmp.ne.s32.totalorder %s635_s2, %s7158_s10  ;;  %s7162_s11 = scalar_lea.vmem %s635_s2, 32 }
 0x20d   :  { %p7163_p1 = scmp.lt.s32.totalorder %s635_s2, %s635_s2  ;;  %p7164_p2 = scmp.lt.s32.totalorder %s7162_s11, %s7158_s10 }
 0x20f   :  { %609 = dma.hbm_to_vmem [thread:$0]  %s8689_s8, 16, %s607_s22, [#allocation41]  }
 0x210   :  { %p7165_p3 = por %p7164_p2, %p7163_p1 }
 0x212   :  { %p7166_p4 = pnand %p7165_p3, %p7159_p0 }
 0x214   :  { %7169 = shalt.err (!%p7166_p4)
}
 0x215   :  { %s8690_s27 = sld [smem:[#allocation137_spill]]  ;;  %s7178_s20 = scalar_lea.vmem %s647_s7, 16 }
 0x216   :  { %p7179_p5 = scmp.ne.s32.totalorder %s647_s7, %s7178_s20  ;;  %s7182_s14 = scalar_lea.vmem %s647_s7, 32 }
 0x217   :  { %p7183_p6 = scmp.lt.s32.totalorder %s647_s7, %s647_s7  ;;  %p7184_p7 = scmp.lt.s32.totalorder %s7182_s14, %s7178_s20 }
 0x219   :  { %p7185_p8 = por %p7184_p7, %p7183_p6 }
 0x21b   :  { %637 = dma.hbm_to_vmem [thread:$0]  %s8690_s27, 16, %s635_s2, [#allocation44]  }
 0x21c   :  { %p7186_p9 = pnand %p7185_p8, %p7179_p5 }
 0x21e   :  { %7189 = shalt.err (!%p7186_p9)
}
 0x21f   :  { %s8691_s21 = sld [smem:[#allocation139_spill]] }
 0x225   :  { %649 = dma.hbm_to_vmem [thread:$0]  %s8691_s21, 16, %s647_s7, [#allocation47]  }
 0x226   :  { %7190 = dma.done.wait [#allocation3], 64  }
 0x227   :  { %7191 = vsyncadd [#allocation3], 4294967232 }
 0x228   :  { %7192 = dma.done.wait [#allocation5], 32  }
 0x229   :  { %7193 = vsyncadd [#allocation5], 4294967264 }
 0x22a   :  { %7194 = dma.done.wait [#allocation8], 144  }
 0x22b   :  { %7195 = vsyncadd [#allocation8], 4294967152 }
 0x22c   :  { %7196 = dma.done.wait [#allocation11], 144  }
 0x22d   :  { %7197 = vsyncadd [#allocation11], 4294967152 }
 0x22e   :  { %7198 = dma.done.wait [#allocation14], 32  }
 0x22f   :  { %7199 = vsyncadd [#allocation14], 4294967264 }
 0x230   :  { %7200 = dma.done.wait [#allocation17], 32  }
 0x231   :  { %7201 = vsyncadd [#allocation17], 4294967264 }
 0x232   :  { %7202 = dma.done.wait [#allocation20], 32  }
 0x233   :  { %7203 = vsyncadd [#allocation20], 4294967264 }
 0x234   :  { %7204 = dma.done.wait [#allocation23], 256  }
 0x235   :  { %7205 = vsyncadd [#allocation23], 4294967040 }
 0x236   :  { %7206 = dma.done.wait [#allocation26], 32  }
 0x237   :  { %7207 = vsyncadd [#allocation26], 4294967264 }
 0x238   :  { %7208 = dma.done.wait [#allocation29], 32  }
 0x239   :  { %7209 = vsyncadd [#allocation29], 4294967264 }
 0x23a   :  { %7210 = dma.done.wait [#allocation32], 32  }
 0x23b   :  { %7211 = vsyncadd [#allocation32], 4294967264 }
 0x23c   :  { %7212 = dma.done.wait [#allocation35], 32  }
 0x23d   :  { %7213 = vsyncadd [#allocation35], 4294967264 }
 0x23e   :  { %7214 = dma.done.wait [#allocation38], 32  }
 0x23f   :  { %7215 = vsyncadd [#allocation38], 4294967264 }
 0x240   :  { %7216 = dma.done.wait [#allocation41], 32  }
 0x241   :  { %7217 = vsyncadd [#allocation41], 4294967264 }
 0x242   :  { %7218 = dma.done.wait [#allocation44], 32  }
 0x243   :  { %7219 = vsyncadd [#allocation44], 4294967264 }
 0x244   :  { %7220 = dma.done.wait [#allocation47], 16  }
 0x245   :  { %7221 = vsyncadd [#allocation47], 4294967280  ;;  %s8692_s9 = sld [smem:[#allocation140_spill]]  ;;  %v7356_v0 = vmov 0.0   ;;  %vm7357_vm0 = vmmov 0   ;;  %vm794_vm1 = vcmask 1043456  }
 0x246   :  { %s8693_s15 = sld [smem:[#allocation142_spill]]  ;;  %5876 = vmatprep.subr.bf16.mxu1 %v7356_v0  ;;  %5878 = vmatprep.mubr.msk.bf16.mxu1 %vm7357_vm0, %v7356_v0  ;;  %vm787_vm2 = vcmask 64512   ;;  %v970_v8 = vld [vmem:[#allocation2] sm:$0xf]  ;;  %v5515_v34 = vld [vmem:[#allocation4] ss:$0 sm:$0xff] }
 0x247   :  { %s8694_s24 = sld [smem:[#allocation65_spill]]  ;;  %v985_v10 = vsel %vm794_vm1, %v970_v8, 0  ;;  %vm1148_vm3 = vcmask 130048   ;;  %s7358_s3 = smov 112   ;;  %vm1690_vm4 = vcmask 261120   ;;  %vm2514_vm5 = vcmask 523264  }
 0x248   :  { %s8695_s16 = sld [smem:[#allocation66_spill]]  ;;  %s7359_s27 = smov 16  }
 0x249   :  { %s8696_s0 = sld [smem:[#allocation144_spill]] }
 0x24a   :  { %s8697_s29 = sld [smem:[#allocation64_spill]] }
 0x24b   :  { %v769_v1 = vld [vmem:[%s8692_s9] sm:$0xf]  ;;  %s8698_s18 = sld [smem:[#allocation68_spill]] }
 0x24c   :  { %v849_v2 = vld [vmem:[%s8693_s15] sm:$0xf]  ;;  %6216 = vmatprep.subr.msk.bf16.mxu0 %vm794_vm1, %v769_v1  ;;  %v796_v3 = vsel %vm794_vm1, %v769_v1, 0  ;;  %s8699_s6 = sld [smem:[#allocation67_spill]] }
 0x24d   :  { %v866_v4 = vsel %vm794_vm1, %v849_v2, 0  ;;  %v6364_v5 = vld [vmem:[%s8694_s24] sm:$0xff]   ;;  %v6365_v6 = vld [vmem:[%s8694_s24 + $0x8] sm:$0xff]   ;;  %5871 = vmatpush3.bf16.msra.mxu0 %v796_v3  ;;  %s8700_s25 = sld [smem:[#allocation79_spill]]  ;;  %s7360_s24 = smov 96  }
 0x24e   :  { %5877 = vmatpush3.bf16.msra.mxu1 %v866_v4  ;;  %5872 = vmatprep.mubr.msk.bf16.mxu0 %vm787_vm2, %v6364_v5  ;;  %v6366_v7 = vld [vmem:[%s8695_s16] sm:$0xff]   ;;  %s8701_s22 = sld [smem:[#allocation69_spill]] }
 0x24f   :  { %5882 = vmatprep.subr.bf16.mxu0 %v7356_v0  ;;  %6217 = vmatprep.subr.msk.bf16.mxu1 %vm794_vm1, %v970_v8  ;;  %v910_v9 = vld [vmem:[%s8696_s0] sm:$0xf]  ;;  %s8702_s13 = sld [smem:[#allocation80_spill]] }
 0x250   :  { %v964_v11 = vld [vmem:[%s8697_s29] sm:$0xff]  ;;  %v965_v12 = vld [vmem:[%s8697_s29 + $0x8] sm:$0xff]  ;;  %5873 = vmatmul.mubr.msk.bf16.vlgmr.msra.gmra.mxu0 %vm787_vm2, %v6365_v6  ;;  %v922_v13 = vsel %vm794_vm1, %v910_v9, 0  ;;  %v966_v15 = vld [vmem:[%s8697_s29 + $0x10] sm:$0xff]  ;;  %s8703_s23 = sld [smem:[#allocation81_spill]] }
 0x251   :  { %5879 = vmatmul.mubr.msk.bf16.vlgmr.msra.gmra.mxu1 %vm787_vm2, %v6366_v7  ;;  %v968_v14 = vpack.c.bf16 %v965_v12, %v964_v11  ;;  %5883 = vmatpush3.bf16.msra.mxu0 %v922_v13  ;;  %v967_v16 = vld [vmem:[%s8697_s29 + $0x18] sm:$0xff]  ;;  %v1044_v17 = vld [vmem:[%s8698_s18] sm:$0xff]  ;;  %s8704_s26 = sld [smem:[#allocation141_spill]] }
 0x252   :  { %5889 = vmatpush3.bf16.msra.mxu1 %v985_v10  ;;  %5884 = vmatprep.mubr.msk.bf16.mxu0 %vm7357_vm0, %v7356_v0  ;;  %v909_v18 = vld [vmem:[%s8699_s6] sm:$0xf]  ;;  %v969_v19 = vpack.c.bf16 %v967_v16, %v966_v15  ;;  %s8705_s1 = sld [smem:[#allocation84_spill]] }
 0x253   :  { %5890 = vmatprep.mubr.msk.bf16.mxu1 %vm787_vm2, %v968_v14  ;;  %5894 = vmatprep.subr.mxu0 %v1044_v17  ;;  %v1040_v20 = vld [vmem:[%s8700_s25] sm:$0xff]  ;;  %v7947_v21 = vld [vmem:[%s8700_s25 + $0x10] sm:$0xff]  ;;  %v7955_v22 = vld [vmem:[%s8700_s25 + $0x8] sm:$0xff]  ;;  %s8706_s8 = sld [smem:[#allocation85_spill]] }
 0x254   :  { %6214 = vmatprep.subr.mxu1 %v1044_v17  ;;  %v7958_v23 = vld [vmem:[%s8700_s25 + $0x18] sm:$0xff]  ;;  %s8707_s5 = sld [smem:[#allocation87_spill]] }
 0x255   :  { %s8708_s2 = sld [smem:[#allocation89_spill]] }
 0x256   :  { %s8709_s17 = sld [smem:[#allocation88_spill]] }
 0x257   :  { %s8710_s7 = sld [smem:[#allocation90_spill]] }
 0x258   :  { %5885 = vmatmul.mubr.msk.bf16.vlgmr.msra.gmra.mxu0 %vm787_vm2, %v909_v18  ;;  %v6367_v18 = vld [vmem:[#allocation7] sm:$0xff]   ;;  %s8711_s10 = sld [smem:[#allocation70_spill]] }
 0x259   :  { %5891 = vmatmul.mubr.msk.bf16.vlgmr.msra.gmra.mxu1 %vm787_vm2, %v969_v19  ;;  %5895 = vmatpush3.msra.mxu0 %v1044_v17  ;;  %v1393_v19 = vld [vmem:[%s8701_s22] sm:$0xff]  ;;  %s8712_s11 = sld [smem:[#allocation92_spill]] }
 0x25a   :  { %6215 = vmatpush3.msra.mxu1 %v1044_v17  ;;  %5896 = vmatprep.mubr.msk.f32.mxu0 %vm787_vm2, %v1040_v20  ;;  %s8713_s20 = sld [smem:[#allocation95_spill]] }
 0x25b   :  { %5899 = vmatprep.mubr.msk.f32.mxu1 %vm787_vm2, %v7947_v21  ;;  %5902 = vmatprep.subr.bf16.mxu1 %v6367_v18  ;;  %s8714_s14 = sld [smem:[#allocation71_spill]] }
 0x25c   :  { %5908 = vmatprep.subr.mxu0 %v1393_v19  ;;  %s8715_s21 = sld [smem:[#allocation93_spill]] }
 0x25d   :  { %s8716_s9 = sld [smem:[#allocation94_spill]] }
 0x25e   :  { %s8717_s15 = sld [smem:[#allocation143_spill]] }
 0x25f   :  { %s8718_s16 = sld [smem:[#allocation99_spill]] }
 0x260   :  { %5897 = vmatmul.mubr.msk.f32.vlgmr.msra.gmra.mxu0 %vm787_vm2, %v7955_v22  ;;  %s8719_s0 = sld [smem:[#allocation97_spill]] }
 0x261   :  { %5900 = vmatmul.mubr.msk.f32.vlgmr.msra.gmra.mxu1 %vm787_vm2, %v7958_v23  ;;  %5910 = vmatprep.mubr.msk.f32.mxu0 %vm787_vm2, %v1040_v20  ;;  %s8720_s29 = sld [smem:[#allocation98_spill]] }
 0x262   :  { %5903 = vmatpush3.bf16.msra.mxu1 %v6367_v18  ;;  %5909 = vmatpush3.msra.mxu0 %v1393_v19  ;;  %s8721_s18 = sld [smem:[#allocation100_spill]] }
 0x263   :  { %s8722_s6 = sld [smem:[#allocation103_spill]] }
 0x264   :  { %5911 = vmatmul.mubr.msk.f32.vlgmr.msra.gmra.mxu0 %vm787_vm2, %v7955_v22  ;;  %s8723_s22 = sld [smem:[#allocation72_spill]] }
 0x265   :  { %5913 = vmatprep.mubr.msk.f32.mxu0 %vm787_vm2, %v7947_v21 }
 0x268   :  { %5914 = vmatmul.mubr.msk.f32.gmra.mxu0 %vm787_vm2, %v7958_v23  ;;  %v5522_v23 = vld [vmem:[%s8702_s13] ss:$0 sm:$0xff]  ;;  %s8724_s13 = sld [smem:[#allocation104_spill]] }
 0x310   :  { %v7965_v24 = vpop.f32.mrf.mxu0 }
 0x311   :  { %v7967_v25 = vpop.f32.mrf.mxu1 }
 0x312   :  { %v7969_v26 = vpop.f32.mrf.mxu0 }
 0x313   :  { %v5880_v27 = vpop.f32.mrf.mxu1 }
 0x314   :  { %v7971_v28 = vpop.f32.mrf.mxu0 }
 0x315   :  { %v7973_v29 = vpop.f32.mrf.mxu1 }
 0x316   :  { %v7975_v30 = vpop.f32.mrf.mxu0 }
 0x317   :  { %v5881_v31 = vpop.f32.mrf.mxu1 }
 0x318   :  { %v7977_v32 = vpop.f32.mrf.mxu0 }
 0x319   :  { %v5892_v33 = vpop.f32.mrf.mxu1 }
 0x31a   :  { %v5886_v35 = vpop.f32.mrf.mxu0  ;;  %v1030_v39 = vadd.f32 %v5892_v33, %v5515_v34 }
 0x31b   :  { %v1021_v36 = vpop.f32.mrf.mxu1 }
 0x31c   :  { %v961_v37 = vpop.f32.mrf.mxu0  ;;  %v1022_v40 = vadd.f32 %v5515_v34, %v1021_v36  ;;  %v7979_v47 = vmax.f32 %v1030_v39, 0.0 }
 0x31d   :  { %v5893_v38 = vpop.f32.mrf.mxu1 }
 0x31e   :  { %v1033_v41 = vadd.f32 %v5893_v38, %v5515_v34  ;;  %v5887_v42 = vpop.f32.mrf.mxu0  ;;  %v7981_v48 = vmax.f32 %v1022_v40, 0.0 }
 0x31f   :  { %v1024_v43 = vpop.f32.mrf.mxu1  ;;  %v5523_v42 = vld [vmem:[%s8703_s23] ss:$0 sm:$0xff]  ;;  %s7361_s23 = smov 32  }
 0x320   :  { %v1025_v44 = vadd.f32 %v5515_v34, %v1024_v43  ;;  %v5898_v45 = vpop.f32.mrf.mxu0  ;;  %v7983_v49 = vmax.f32 %v1033_v41, 0.0 }
 0x321   :  { %v5901_v46 = vpop.f32.mrf.mxu1 }
 0x322   :  { %v7985_v50 = vmax.f32 %v1025_v44, 0.0  ;;  %v1123_v51 = vpop.f32.mrf.mxu0  ;;  %v1145_v56 = vadd.f32 %v5901_v46, %v7983_v49 }
 0x323   :  { %v1133_v52 = vpop.f32.mrf.mxu1  ;;  %v1142_v53 = vadd.f32 %v1123_v51, %v7981_v48 }
 0x324   :  { %v1144_v54 = vadd.f32 %v1133_v52, %v7979_v47  ;;  %v1143_v55 = vadd.f32 %v5898_v45, %v7985_v50  ;;  %v1158_v59 = vsel %vm1148_vm3, %v1145_v56, 0.0  ;;  %v5524_v45 = vld [vmem:[#allocation6] ss:$0 sm:$0xff] }
 0x325   :  { %v1149_v58 = vsel %vm1148_vm3, %v1142_v53, 0.0 }
 0x326   :  { %v1155_v57 = vsel %vm1148_vm3, %v1144_v54, 0.0  ;;  %1150 = vadd.xlane.f32.xlu0 %v1149_v58  ;;  %v1152_v60 = vsel %vm1148_vm3, %v1143_v55, 0.0 }
 0x327   :  { %1156 = vadd.xlane.f32.xlu1 %v1155_v57 }
 0x32a   :  { %1153 = vadd.xlane.f32.xlu0 %v1152_v60 }
 0x32b   :  { %1159 = vadd.xlane.f32.xlu1 %v1158_v59 }
 0x3af   :  { %v1151_v62 = vpop.xlane.xlu0 %1150 }
 0x3b0   :  { %v1157_v61 = vpop.xlane.xlu1 %1156  ;;  %v1162_v1 = vmul.f32 0.0625, %v1151_v62 }
 0x3b1   :  { %v1164_v63 = vmul.f32 0.0625, %v1157_v61 }
 0x3b2   :  { %v1166_v3 = vsub.f32 %v1142_v53, %v1162_v1 }
 0x3b3   :  { %v1168_v2 = vsub.f32 %v1144_v54, %v1164_v63  ;;  %v1154_v5 = vpop.xlane.xlu0 %1153 }
 0x3b4   :  { %v1160_v4 = vpop.xlane.xlu1 %1159  ;;  %v1163_v7 = vmul.f32 0.0625, %v1154_v5  ;;  %v1170_v8 = vmul.f32 %v1166_v3, %v1166_v3 }
 0x3b5   :  { %v1165_v6 = vmul.f32 0.0625, %v1160_v4  ;;  %v1172_v12 = vmul.f32 %v1168_v2, %v1168_v2 }
 0x3b6   :  { %v1167_v10 = vsub.f32 %v1143_v55, %v1163_v7  ;;  %v1174_v11 = vsel %vm1148_vm3, %v1170_v8, 0.0 }
 0x3b7   :  { %v1169_v9 = vsub.f32 %v1145_v56, %v1165_v6  ;;  %1175 = vadd.xlane.f32.xlu0 %v1174_v11  ;;  %v1180_v14 = vsel %vm1148_vm3, %v1172_v12, 0.0 }
 0x3b8   :  { %v1171_v13 = vmul.f32 %v1167_v10, %v1167_v10 }
 0x3b9   :  { %v1173_v16 = vmul.f32 %v1169_v9, %v1169_v9 }
 0x3ba   :  { %v1177_v15 = vsel %vm1148_vm3, %v1171_v13, 0.0 }
 0x3bb   :  { %1181 = vadd.xlane.f32.xlu0 %v1180_v14  ;;  %1178 = vadd.xlane.f32.xlu1 %v1177_v15  ;;  %v1183_v17 = vsel %vm1148_vm3, %v1173_v16, 0.0 }
 0x3bf   :  { %1184 = vadd.xlane.f32.xlu1 %v1183_v17 }
 0x440   :  { %v1176_v20 = vpop.xlane.xlu0 %1175 }
 0x441   :  { %v1186_v27 = vmul.f32 0.0625, %v1176_v20 }
 0x443   :  { %v1190_v31 = vadd.f32 1e-05, %v1186_v27 }
 0x444   :  { %v1179_v33 = vpop.xlane.xlu1 %1178  ;;  %v1182_v34 = vpop.xlane.xlu0 %1181 }
 0x445   :  { %6421 = vrsqrt.f32 %v1190_v31  ;;  %v1187_v35 = vmul.f32 0.0625, %v1179_v33  ;;  %v1188_v36 = vmul.f32 0.0625, %v1182_v34 }
 0x447   :  { %v1191_v37 = vadd.f32 1e-05, %v1187_v35  ;;  %v1192_v38 = vadd.f32 1e-05, %v1188_v36 }
 0x448   :  { %v1185_v39 = vpop.xlane.xlu1 %1184 }
 0x449   :  { %6423 = vrsqrt.f32 %v1191_v37  ;;  %v1189_v22 = vmul.f32 0.0625, %v1185_v39 }
 0x44a   :  { %6425 = vrsqrt.f32 %v1192_v38 }
 0x44b   :  { %v1193_v21 = vadd.f32 1e-05, %v1189_v22 }
 0x44d   :  { %6427 = vrsqrt.f32 %v1193_v21 }
 0x452   :  { %v6422_v40 = vpop.eup %6421 }
 0x453   :  { %v1198_v41 = vmul.f32 %v6422_v40, %v1166_v3 }
 0x455   :  { %v1208_v43 = vmul.f32 %v5522_v23, %v1198_v41 }
 0x456   :  { %v6424_v44 = vpop.eup %6423 }
 0x457   :  { %v6426_v46 = vpop.eup %6425  ;;  %v1199_v51 = vmul.f32 %v6424_v44, %v1167_v10  ;;  %v1218_v52 = vadd.f32 %v5523_v42, %v1208_v43 }
 0x458   :  { %v1200_v53 = vmul.f32 %v6426_v46, %v1168_v2 }
 0x459   :  { %v1209_v54 = vmul.f32 %v5522_v23, %v1199_v51  ;;  %v1229_v55 = vmul.f32 %v5524_v45, %v1218_v52  ;;  %v5525_v52 = vld [vmem:[#allocation9] ss:$0 sm:$0xff] }
 0x45a   :  { %v6428_v56 = vpop.eup %6427  ;;  %v1210_v57 = vmul.f32 %v5522_v23, %v1200_v53 }
 0x45b   :  { %v1201_v58 = vmul.f32 %v6428_v56, %v1169_v9  ;;  %v1219_v59 = vadd.f32 %v5523_v42, %v1209_v54  ;;  %v1233_v60 = vmul.f32 %v1229_v55, %v1229_v55 }
 0x45c   :  { %v1220_v61 = vadd.f32 %v5523_v42, %v1210_v57 }
 0x45d   :  { %v1211_v62 = vmul.f32 %v5522_v23, %v1201_v58  ;;  %v1230_v63 = vmul.f32 %v5524_v45, %v1219_v59  ;;  %v1237_v1 = vmul.f32 %v1233_v60, %v1229_v55 }
 0x45e   :  { %v1231_v3 = vmul.f32 %v5524_v45, %v1220_v61 }
 0x45f   :  { %v1221_v4 = vadd.f32 %v5523_v42, %v1211_v62  ;;  %v1234_v5 = vmul.f32 %v1230_v63, %v1230_v63  ;;  %v1241_v6 = vmul.f32 0.044715, %v1237_v1 }
 0x460   :  { %v1235_v7 = vmul.f32 %v1231_v3, %v1231_v3 }
 0x461   :  { %v1232_v8 = vmul.f32 %v5524_v45, %v1221_v4  ;;  %v1238_v10 = vmul.f32 %v1234_v5, %v1230_v63  ;;  %v1245_v11 = vadd.f32 %v1241_v6, %v1229_v55 }
 0x462   :  { %v1239_v2 = vmul.f32 %v1235_v7, %v1231_v3 }
 0x463   :  { %v1242_v12 = vmul.f32 0.044715, %v1238_v10  ;;  %v1249_v13 = vmul.f32 0.7978846, %v1245_v11  ;;  %v1236_v14 = vmul.f32 %v1232_v8, %v1232_v8 }
 0x464   :  { %v1243_v15 = vmul.f32 0.044715, %v1239_v2 }
 0x465   :  { %v1246_v9 = vadd.f32 %v1242_v12, %v1230_v63  ;;  %6429 = vtanh.f32 %v1249_v13  ;;  %v1240_v16 = vmul.f32 %v1236_v14, %v1232_v8 }
 0x466   :  { %v1247_v17 = vadd.f32 %v1243_v15, %v1231_v3  ;;  %v5912_v15 = vpop.f32.mrf.mxu0 }
 0x467   :  { %v1250_v18 = vmul.f32 0.7978846, %v1246_v9  ;;  %v1244_v19 = vmul.f32 0.044715, %v1240_v16  ;;  %v5505_v9 = vld [vmem:[%s8704_s26] ss:$0 sm:$0xff] }
 0x468   :  { %v1251_v20 = vmul.f32 0.7978846, %v1247_v17  ;;  %v1460_v17 = vpop.f32.mrf.mxu0  ;;  %s8725_s26 = sld [smem:[#allocation108_spill]] }
 0x469   :  { %6431 = vtanh.f32 %v1250_v18  ;;  %v1248_v27 = vadd.f32 %v1244_v19, %v1232_v8  ;;  %v8016_v18 = vadd.f32 %v7965_v24, %v5505_v9 }
 0x46a   :  { %6433 = vtanh.f32 %v1251_v20 }
 0x46b   :  { %v1252_v31 = vmul.f32 0.7978846, %v1248_v27  ;;  %v8019_v27 = vadd.f32 %v5505_v9, %v7969_v26 }
 0x46d   :  { %6435 = vtanh.f32 %v1252_v31 }
 0x472   :  { %v6430_v33 = vpop.eup %6429 }
 0x473   :  { %v1257_v34 = vadd.f32 1.0, %v6430_v33 }
 0x475   :  { %v1261_v38 = vmul.f32 0.5, %v1257_v34  ;;  %v5915_v34 = vpop.f32.mrf.mxu0 }
 0x476   :  { %v6432_v35 = vpop.eup %6431 }
 0x477   :  { %v6434_v36 = vpop.eup %6433  ;;  %v1258_v37 = vadd.f32 1.0, %v6432_v35  ;;  %v1265_v40 = vmul.f32 %v1261_v38, %v1229_v55 }
 0x478   :  { %v1259_v39 = vadd.f32 1.0, %v6434_v36 }
 0x479   :  { %v1262_v22 = vmul.f32 0.5, %v1258_v37  ;;  %v8024_v37 = vadd.f32 %v5505_v9, %v7975_v30 }
 0x47a   :  { %v6436_v21 = vpop.eup %6435  ;;  %v1263_v42 = vmul.f32 0.5, %v1259_v39 }
 0x47b   :  { %v1266_v23 = vmul.f32 %v1262_v22, %v1230_v63  ;;  %v1260_v41 = vadd.f32 1.0, %v6436_v21  ;;  %v1470_v22 = vpop.f32.mrf.mxu0 }
 0x47c   :  { %v1267_v45 = vmul.f32 %v1263_v42, %v1231_v3 }
 0x47d   :  { %v1269_v43 = vpack.c.bf16 %v1266_v23, %v1265_v40  ;;  %v1264_v44 = vmul.f32 0.5, %v1260_v41  ;;  %v8035_v40 = vadd.f32 %v7971_v28, %v5505_v9 }
 0x47f   :  { %5904 = vmatprep.mubr.msk.bf16.mxu1 %vm1148_vm3, %v1269_v43  ;;  %v1268_v46 = vmul.f32 %v1264_v44, %v1232_v8 }
 0x481   :  { %v1270_v51 = vpack.c.bf16 %v1268_v46, %v1267_v45 }
 0x483   :  { %5905 = vmatmul.mubr.msk.bf16.vlgmr.msra.gmra.mxu1 %vm1148_vm3, %v1270_v51 }
 0x543   :  { %v5906_v53 = vpop.f32.mrf.mxu1 }
 0x544   :  { %v1335_v54 = vadd.f32 %v5906_v53, %v5525_v52 }
 0x545   :  { %v1326_v56 = vpop.f32.mrf.mxu1 }
 0x546   :  { %v5531_v57 = vmul.f32 -1.442695, %v1335_v54  ;;  %v1327_v58 = vadd.f32 %v5525_v52, %v1326_v56 }
 0x547   :  { %v5907_v59 = vpop.f32.mrf.mxu1 }
 0x548   :  { %6437 = vpow2.f32 %v5531_v57  ;;  %v5529_v55 = vmul.f32 -1.442695, %v1327_v58  ;;  %v1338_v60 = vadd.f32 %v5907_v59, %v5525_v52 }
 0x549   :  { %v1329_v61 = vpop.f32.mrf.mxu1 }
 0x54a   :  { %6439 = vpow2.f32 %v5529_v55  ;;  %v5532_v62 = vmul.f32 -1.442695, %v1338_v60  ;;  %v1330_v63 = vadd.f32 %v5525_v52, %v1329_v61 }
 0x54c   :  { %v5530_v1 = vmul.f32 -1.442695, %v1330_v63  ;;  %6441 = vpow2.f32 %v5532_v62 }
 0x54e   :  { %6443 = vpow2.f32 %v5530_v1 }
 0x555   :  { %v6438_v3 = vpop.eup %6437 }
 0x556   :  { %v1355_v4 = vadd.f32 1.0, %v6438_v3 }
 0x557   :  { %v6440_v5 = vpop.eup %6439 }
 0x558   :  { %6445 = vrcp.f32 %v1355_v4  ;;  %v1353_v6 = vadd.f32 1.0, %v6440_v5 }
 0x559   :  { %v6442_v7 = vpop.eup %6441 }
 0x55a   :  { %6447 = vrcp.f32 %v1353_v6  ;;  %v1356_v11 = vadd.f32 1.0, %v6442_v7 }
 0x55b   :  { %v6444_v8 = vpop.eup %6443 }
 0x55c   :  { %v1354_v10 = vadd.f32 1.0, %v6444_v8 }
 0x55e   :  { %6449 = vrcp.f32 %v1354_v10 }
 0x55f   :  { %6451 = vrcp.f32 %v1356_v11 }
 0x565   :  { %v6446_v2 = vpop.eup %6445 }
 0x566   :  { %1373 = vrot.lane.b32.xlu1 %v6446_v2, %s7358_s3 }
 0x567   :  { %v6448_v12 = vpop.eup %6447 }
 0x568   :  { %1369 = vrot.lane.b32.xlu0 %v6448_v12, %s7358_s3  ;;  %v6368_v12 = vld [vmem:[#allocation10] sm:$0xff]  }
 0x569   :  { %5916 = vmatprep.subr.bf16.mxu1 %v6368_v12 }
 0x56a   :  { %5917 = vmatpush3.bf16.msra.mxu1 %v6368_v12 }
 0x56b   :  { %v6450_v13 = vpop.eup %6449 }
 0x56c   :  { %1371 = vrot.lane.b32.xlu1 %v6450_v13, %s7358_s3  ;;  %v6452_v14 = vpop.eup %6451 }
 0x570   :  { %1375 = vrot.lane.b32.xlu1 %v6452_v14, %s7358_s3 }
 0x5d8   :  { %v1374_v16 = vpop.permute.xlu1 %1373 }
 0x5d9   :  { %v1383_v19 = vmul.f32 %v1374_v16, %v1335_v54 }
 0x5da   :  { %v1370_v20 = vpop.permute.xlu0 %1369 }
 0x5db   :  { %v1387_v31 = vadd.f32 %v1383_v19, %v8016_v18  ;;  %v1381_v33 = vmul.f32 %v1370_v20, %v1327_v58 }
 0x5dd   :  { %v1385_v35 = vadd.f32 %v1381_v33, %v8019_v27  ;;  %v8027_v38 = vadd.f32 %v1387_v31, %v7979_v47 }
 0x5de   :  { %v1372_v36 = vpop.permute.xlu1 %1371 }
 0x5df   :  { %v8030_v24 = vadd.f32 %v1385_v35, %v7981_v48  ;;  %v1382_v39 = vmul.f32 %v1372_v36, %v1330_v63  ;;  %v1481_v41 = vadd.f32 %v1470_v22, %v8027_v38  ;;  %v5537_v22 = vld [vmem:[%s8705_s1] ss:$0 sm:$0xff]  ;;  %s8726_s1 = sld [smem:[#allocation73_spill]] }
 0x5e1   :  { %v1386_v26 = vadd.f32 %v1382_v39, %v8024_v37  ;;  %v1479_v21 = vadd.f32 %v1460_v17, %v8030_v24  ;;  %v1491_v51 = vsel %vm1148_vm3, %v1481_v41, 0.0 }
 0x5e2   :  { %v1376_v23 = vpop.permute.xlu1 %1375 }
 0x5e3   :  { %v8039_v30 = vadd.f32 %v1386_v26, %v7985_v50  ;;  %v1384_v42 = vmul.f32 %v1376_v23, %v1338_v60  ;;  %v1485_v43 = vsel %vm1148_vm3, %v1479_v21, 0.0 }
 0x5e4   :  { %1486 = vadd.xlane.f32.xlu0 %v1485_v43  ;;  %v5538_v43 = vld [vmem:[%s8706_s8] ss:$0 sm:$0xff]  ;;  %s8727_s8 = sld [smem:[#allocation105_spill]] }
 0x5e5   :  { %v1388_v44 = vadd.f32 %v1384_v42, %v8035_v40  ;;  %v1480_v45 = vadd.f32 %v5912_v15, %v8039_v30 }
 0x5e7   :  { %v8045_v46 = vadd.f32 %v1388_v44, %v7983_v49  ;;  %v1488_v28 = vsel %vm1148_vm3, %v1480_v45, 0.0 }
 0x5e8   :  { %1489 = vadd.xlane.f32.xlu1 %v1488_v28  ;;  %1492 = vadd.xlane.f32.xlu0 %v1491_v51 }
 0x5e9   :  { %v1482_v52 = vadd.f32 %v5915_v34, %v8045_v46 }
 0x5eb   :  { %v1494_v53 = vsel %vm1148_vm3, %v1482_v52, 0.0 }
 0x5ec   :  { %1495 = vadd.xlane.f32.xlu0 %v1494_v53 }
 0x66d   :  { %v1487_v54 = vpop.xlane.xlu0 %1486 }
 0x66e   :  { %v1497_v56 = vmul.f32 0.0625, %v1487_v54 }
 0x670   :  { %v1501_v57 = vsub.f32 %v1479_v21, %v1497_v56 }
 0x671   :  { %v1490_v58 = vpop.xlane.xlu1 %1489  ;;  %v1493_v59 = vpop.xlane.xlu0 %1492 }
 0x672   :  { %v1498_v55 = vmul.f32 0.0625, %v1490_v58  ;;  %v1499_v60 = vmul.f32 0.0625, %v1493_v59  ;;  %v1505_v61 = vmul.f32 %v1501_v57, %v1501_v57 }
 0x674   :  { %v1502_v62 = vsub.f32 %v1480_v45, %v1498_v55  ;;  %v1503_v63 = vsub.f32 %v1481_v41, %v1499_v60  ;;  %v1509_v1 = vsel %vm1148_vm3, %v1505_v61, 0.0  ;;  %v6369_v55 = vld [vmem:[%s8707_s5 + $0x8] sm:$0xff]   ;;  %v6370_v60 = vld [vmem:[%s8707_s5] sm:$0xff]   ;;  %v5539_v61 = vld [vmem:[#allocation12] ss:$0 sm:$0xff]  ;;  %s8728_s5 = sld [smem:[#allocation106_spill]] }
 0x675   :  { %1510 = vadd.xlane.f32.xlu0 %v1509_v1  ;;  %v1496_v3 = vpop.xlane.xlu0 %1495  ;;  %5922 = vmatprep.subr.bf16.mxu0 %v6369_v55 }
 0x676   :  { %v1500_v4 = vmul.f32 0.0625, %v1496_v3  ;;  %v1506_v5 = vmul.f32 %v1502_v62, %v1502_v62  ;;  %v1507_v6 = vmul.f32 %v1503_v63, %v1503_v63  ;;  %5923 = vmatpush3.bf16.msra.mxu0 %v6369_v55 }
 0x677   :  { %5924 = vmatprep.subr.bf16.mxu0 %v6370_v60 }
 0x678   :  { %v1504_v7 = vsub.f32 %v1482_v52, %v1500_v4  ;;  %v1512_v8 = vsel %vm1148_vm3, %v1506_v5, 0.0  ;;  %v1515_v10 = vsel %vm1148_vm3, %v1507_v6, 0.0 }
 0x679   :  { %1513 = vadd.xlane.f32.xlu1 %v1512_v8  ;;  %1516 = vadd.xlane.f32.xlu0 %v1515_v10 }
 0x67a   :  { %v1508_v11 = vmul.f32 %v1504_v7, %v1504_v7  ;;  %5925 = vmatpush3.bf16.msra.mxu0 %v6370_v60  ;;  %v1853_v60 = vld [vmem:[%s8708_s2] sm:$0xff] }
 0x67c   :  { %v1518_v2 = vsel %vm1148_vm3, %v1508_v11, 0.0 }
 0x67d   :  { %1519 = vadd.xlane.f32.xlu1 %v1518_v2 }
 0x68e   :  { %1754 = vrot.lane.b32.xlu1 %v8016_v18, %s7358_s3 }
 0x68f   :  { %1756 = vrot.lane.b32.xlu0 %v8035_v40, %s7358_s3 }
 0x692   :  { %1752 = vrot.lane.b32.xlu1 %v8024_v37, %s7358_s3 }
 0x696   :  { %1750 = vrot.lane.b32.xlu1 %v8019_v27, %s7358_s3 }
 0x6fe   :  { %v1511_v13 = vpop.xlane.xlu0 %1510 }
 0x6ff   :  { %v1521_v14 = vmul.f32 0.0625, %v1511_v13 }
 0x701   :  { %v1525_v15 = vadd.f32 1e-05, %v1521_v14 }
 0x702   :  { %v1514_v9 = vpop.xlane.xlu1 %1513  ;;  %v1517_v16 = vpop.xlane.xlu0 %1516 }
 0x703   :  { %6453 = vrsqrt.f32 %v1525_v15  ;;  %v1522_v17 = vmul.f32 0.0625, %v1514_v9  ;;  %v1523_v19 = vmul.f32 0.0625, %v1517_v16 }
 0x705   :  { %v1526_v20 = vadd.f32 1e-05, %v1522_v17  ;;  %v1527_v31 = vadd.f32 1e-05, %v1523_v19 }
 0x706   :  { %v1520_v33 = vpop.xlane.xlu1 %1519 }
 0x707   :  { %6455 = vrsqrt.f32 %v1526_v20  ;;  %v1524_v34 = vmul.f32 0.0625, %v1520_v33 }
 0x708   :  { %6457 = vrsqrt.f32 %v1527_v31 }
 0x709   :  { %v1528_v35 = vadd.f32 1e-05, %v1524_v34 }
 0x70b   :  { %6459 = vrsqrt.f32 %v1528_v35 }
 0x710   :  { %v6454_v36 = vpop.eup %6453 }
 0x711   :  { %v1533_v39 = vmul.f32 %v6454_v36, %v1501_v57 }
 0x713   :  { %v1543_v41 = vmul.f32 %v5537_v22, %v1533_v39 }
 0x714   :  { %v6456_v26 = vpop.eup %6455 }
 0x715   :  { %v6458_v21 = vpop.eup %6457  ;;  %v1534_v23 = vmul.f32 %v6456_v26, %v1502_v62  ;;  %v1553_v51 = vadd.f32 %v5538_v43, %v1543_v41 }
 0x716   :  { %v1535_v42 = vmul.f32 %v6458_v21, %v1503_v63 }
 0x717   :  { %v1544_v44 = vmul.f32 %v5537_v22, %v1534_v23 }
 0x718   :  { %v6460_v45 = vpop.eup %6459  ;;  %v1545_v53 = vmul.f32 %v5537_v22, %v1535_v42 }
 0x719   :  { %v1536_v28 = vmul.f32 %v6460_v45, %v1504_v7  ;;  %v1554_v52 = vadd.f32 %v5538_v43, %v1544_v44 }
 0x71a   :  { %v1555_v57 = vadd.f32 %v5538_v43, %v1545_v53 }
 0x71b   :  { %v1557_v54 = vpack.c.bf16 %v1554_v52, %v1553_v51  ;;  %v1546_v56 = vmul.f32 %v5537_v22, %v1536_v28 }
 0x71d   :  { %5918 = vmatprep.mubr.msk.bf16.mxu1 %vm1148_vm3, %v1557_v54  ;;  %v1556_v58 = vadd.f32 %v5538_v43, %v1546_v56 }
 0x71f   :  { %v1558_v59 = vpack.c.bf16 %v1556_v58, %v1555_v57 }
 0x721   :  { %5919 = vmatmul.mubr.msk.bf16.vlgmr.msra.gmra.mxu1 %vm1148_vm3, %v1558_v59 }
 0x7e1   :  { %v5920_v62 = vpop.f32.mrf.mxu1 }
 0x7e2   :  { %v1623_v63 = vadd.f32 %v5920_v62, %v5539_v61  ;;  %v1755_v62 = vpop.permute.xlu1 %1754 }
 0x7e3   :  { %v1614_v1 = vpop.f32.mrf.mxu1 }
 0x7e4   :  { %v1631_v3 = vmul.f32 %v1623_v63, %v1623_v63  ;;  %v1615_v4 = vadd.f32 %v5539_v61, %v1614_v1 }
 0x7e5   :  { %v5921_v5 = vpop.f32.mrf.mxu1 }
 0x7e6   :  { %v1635_v6 = vmul.f32 %v1631_v3, %v1623_v63  ;;  %v1629_v7 = vmul.f32 %v1615_v4, %v1615_v4  ;;  %v1626_v8 = vadd.f32 %v5921_v5, %v5539_v61  ;;  %v5543_v3 = vld [vmem:[#allocation13] ss:$0 sm:$0xff] }
 0x7e7   :  { %v1617_v10 = vpop.f32.mrf.mxu1 }
 0x7e8   :  { %v1639_v11 = vmul.f32 0.044715, %v1635_v6  ;;  %v1633_v2 = vmul.f32 %v1629_v7, %v1615_v4  ;;  %v1632_v12 = vmul.f32 %v1626_v8, %v1626_v8  ;;  %v1618_v13 = vadd.f32 %v5539_v61, %v1617_v10  ;;  %v1770_v61 = vld [vmem:[%s8709_s17] sm:$0xff]  ;;  %v1753_v6 = vpop.permute.xlu1 %1752 }
 0x7e9   :  { %5938 = vmatprep.mubr.msk.f32.mxu1 %vm1690_vm4, %v1770_v61 }
 0x7ea   :  { %v1643_v14 = vadd.f32 %v1639_v11, %v1623_v63  ;;  %v1637_v15 = vmul.f32 0.044715, %v1633_v2  ;;  %v1636_v9 = vmul.f32 %v1632_v12, %v1626_v8  ;;  %v1630_v16 = vmul.f32 %v1618_v13, %v1618_v13 }
 0x7ec   :  { %v1647_v17 = vmul.f32 0.7978846, %v1643_v14  ;;  %v1641_v19 = vadd.f32 %v1637_v15, %v1615_v4  ;;  %v1640_v20 = vmul.f32 0.044715, %v1636_v9  ;;  %v1634_v31 = vmul.f32 %v1630_v16, %v1618_v13  ;;  %v1751_v9 = vpop.permute.xlu1 %1750 }
 0x7ee   :  { %v1645_v33 = vmul.f32 0.7978846, %v1641_v19  ;;  %v1644_v34 = vadd.f32 %v1640_v20, %v1626_v8  ;;  %v1638_v35 = vmul.f32 0.044715, %v1634_v31  ;;  %6461 = vtanh.f32 %v1647_v17  ;;  %v1854_v31 = vld [vmem:[%s8708_s2 + $0x8] sm:$0xff]  ;;  %s8729_s2 = sld [smem:[#allocation145_spill]] }
 0x7f0   :  { %6463 = vtanh.f32 %v1645_v33  ;;  %v1648_v36 = vmul.f32 0.7978846, %v1644_v34  ;;  %v1642_v39 = vadd.f32 %v1638_v35, %v1618_v13  ;;  %v1771_v33 = vld [vmem:[%s8709_s17 + $0x8] sm:$0xff]  ;;  %v2016_v35 = vld [vmem:[%s8711_s10] sm:$0xff]  ;;  %s8730_s17 = sld [smem:[#allocation111_spill]] }
 0x7f1   :  { %v6371_v34 = vld [vmem:[%s8710_s7 + $0x8] sm:$0xff]   ;;  %s8732_s10 = sld [smem:[#allocation110_spill]] }
 0x7f2   :  { %6465 = vtanh.f32 %v1648_v36  ;;  %v1646_v22 = vmul.f32 0.7978846, %v1642_v39  ;;  %v6372_v36 = vld [vmem:[%s8710_s7] sm:$0xff]   ;;  %s8731_s7 = sld [smem:[#allocation109_spill]] }
 0x7f3   :  { %v8115_v39 = vld [vmem:[%s8712_s11] sm:$0xff] }
 0x7f4   :  { %6467 = vtanh.f32 %v1646_v22  ;;  %v8118_v22 = vld [vmem:[%s8712_s11 + $0x8] sm:$0xff] }
 0x7fb   :  { %v6462_v26 = vpop.eup %6461 }
 0x7fc   :  { %v1655_v42 = vadd.f32 1.0, %v6462_v26 }
 0x7fd   :  { %v6464_v21 = vpop.eup %6463 }
 0x7fe   :  { %v1653_v23 = vadd.f32 1.0, %v6464_v21  ;;  %v1659_v52 = vmul.f32 0.5, %v1655_v42 }
 0x7ff   :  { %v6466_v41 = vpop.eup %6465 }
 0x800   :  { %v1656_v43 = vadd.f32 1.0, %v6466_v41  ;;  %v1657_v45 = vmul.f32 0.5, %v1653_v23  ;;  %v1663_v58 = vmul.f32 %v1659_v52, %v1623_v63 }
 0x801   :  { %v6468_v44 = vpop.eup %6467 }
 0x802   :  { %v1660_v28 = vmul.f32 0.5, %v1656_v43  ;;  %v1654_v51 = vadd.f32 1.0, %v6468_v44  ;;  %v1661_v56 = vmul.f32 %v1657_v45, %v1615_v4 }
 0x804   :  { %v1658_v53 = vmul.f32 0.5, %v1654_v51  ;;  %v1664_v54 = vmul.f32 %v1660_v28, %v1626_v8  ;;  %v1757_v8 = vpop.permute.xlu0 %1756 }
 0x806   :  { %v1662_v57 = vmul.f32 %v1658_v53, %v1618_v13  ;;  %v1666_v55 = vpack.c.bf16 %v1664_v54, %v1663_v58  ;;  %v5552_v54 = vld [vmem:[#allocation15] ss:$0 sm:$0xff] }
 0x808   :  { %v1665_v59 = vpack.c.bf16 %v1662_v57, %v1661_v56 }
 0x80a   :  { %5926 = vmatprep.mubr.msk.bf16.mxu0 %vm1690_vm4, %v1665_v59 }
 0x80b   :  { %5927 = vmatmul.mubr.msk.bf16.vlgmr.msra.gmra.mxu0 %vm1690_vm4, %v1666_v55 }
 0x80c   :  { %5949 = vmatprep.mubr.msk.f32.mxu0 %vm1690_vm4, %v1853_v60 }
 0x8cb   :  { %v5928_v1 = vpop.f32.mrf.mxu0 }
 0x8cc   :  { %v1740_v4 = vadd.f32 %v5928_v1, %v5543_v3 }
 0x8cd   :  { %v1731_v5 = vpop.f32.mrf.mxu0 }
 0x8ce   :  { %v1764_v11 = vadd.f32 %v1755_v62, %v1740_v4  ;;  %v1732_v2 = vadd.f32 %v5543_v3, %v1731_v5 }
 0x8cf   :  { %v5929_v63 = vpop.f32.mrf.mxu0 }
 0x8d0   :  { %v1743_v7 = vadd.f32 %v5929_v63, %v5543_v3  ;;  %v8079_v16 = vadd.f32 %v1764_v11, %v8027_v38  ;;  %v1762_v17 = vadd.f32 %v1751_v9, %v1732_v2  ;;  %v6374_v9 = vld [vmem:[%s8713_s20] sm:$0xff]  }
 0x8d1   :  { %v1734_v10 = vpop.f32.mrf.mxu0 }
 0x8d2   :  { %v1765_v12 = vadd.f32 %v1757_v8, %v1743_v7  ;;  %v1735_v13 = vadd.f32 %v5543_v3, %v1734_v10  ;;  %v8093_v20 = vadd.f32 %v1762_v17, %v8030_v24  ;;  %v2266_v17 = vld [vmem:[%s8714_s14] sm:$0xff]  ;;  %s8735_s14 = sld [smem:[#allocation114_spill]] }
 0x8d4   :  { %v8076_v14 = vadd.f32 %v1765_v12, %v8045_v46  ;;  %v1763_v15 = vadd.f32 %v1753_v6, %v1735_v13 }
 0x8d6   :  { %5930 = vmatprep.subr.mxu1 %v8076_v14  ;;  %5941 = vmatprep.subr.mxu0 %v8076_v14  ;;  %v8086_v19 = vadd.f32 %v1763_v15, %v8039_v30  ;;  %v6373_v15 = vld [vmem:[%s8713_s20 + $0x8] sm:$0xff]   ;;  %s8734_s20 = sld [smem:[#allocation116_spill]] }
 0x8d7   :  { %5931 = vmatpush3.msra.mxu1 %v8076_v14  ;;  %5942 = vmatpush3.msra.mxu0 %v8076_v14 }
 0x8d8   :  { %5932 = vmatprep.subr.mxu1 %v8079_v16  ;;  %5943 = vmatprep.subr.mxu0 %v8079_v16 }
 0x8d9   :  { %5933 = vmatpush3.msra.mxu1 %v8079_v16  ;;  %5944 = vmatpush3.msra.mxu0 %v8079_v16 }
 0x8da   :  { %5934 = vmatprep.subr.mxu1 %v8086_v19  ;;  %5945 = vmatprep.subr.mxu0 %v8086_v19 }
 0x8db   :  { %5935 = vmatpush3.msra.mxu1 %v8086_v19  ;;  %5946 = vmatpush3.msra.mxu0 %v8086_v19 }
 0x8dc   :  { %5936 = vmatprep.subr.mxu1 %v8093_v20  ;;  %5947 = vmatprep.subr.mxu0 %v8093_v20 }
 0x8dd   :  { %5937 = vmatpush3.msra.mxu1 %v8093_v20  ;;  %5948 = vmatpush3.msra.mxu0 %v8093_v20 }
 0x8de   :  { %5950 = vmatmul.mubr.msk.f32.vlgmr.msra.gmra.mxu0 %vm1690_vm4, %v1854_v31  ;;  %5939 = vmatmul.mubr.msk.f32.vlgmr.msra.gmra.mxu1 %vm1690_vm4, %v1771_v33 }
 0x8df   :  { %5952 = vmatprep.subr.bf16.mxu1 %v7356_v0  ;;  %5956 = vmatprep.mubr.msk.bf16.mxu1 %vm7357_vm0, %v7356_v0 }
 0x8e0   :  { %5953 = vmatpush3.bf16.msra.mxu1 %v6371_v34  ;;  %5960 = vmatprep.subr.mxu0 %v2016_v35 }
 0x8e1   :  { %5954 = vmatprep.subr.bf16.mxu1 %v7356_v0  ;;  %5961 = vmatpush3.msra.mxu0 %v2016_v35 }
 0x8e2   :  { %5962 = vmatprep.mubr.msk.f32.mxu0 %vm787_vm2, %v8115_v39  ;;  %5973 = vmatprep.subr.mxu0 %v2266_v17 }
 0x8e3   :  { %5963 = vmatmul.mubr.msk.f32.vlgmr.msra.gmra.mxu0 %vm787_vm2, %v8118_v22 }
 0x8e4   :  { %5955 = vmatpush3.bf16.msra.mxu1 %v6372_v36  ;;  %5975 = vmatprep.mubr.msk.f32.mxu0 %vm787_vm2, %v8115_v39 }
 0x8e5   :  { %5965 = vmatprep.subr.bf16.mxu1 %v7356_v0  ;;  %5974 = vmatpush3.msra.mxu0 %v2266_v17 }
 0x8e6   :  { %5978 = vmatprep.subr.bf16.mxu0 %v7356_v0 }
 0x8e7   :  { %5976 = vmatmul.mubr.msk.f32.vlgmr.msra.gmra.mxu0 %vm787_vm2, %v8118_v22 }
 0x8e8   :  { %5982 = vmatprep.mubr.msk.bf16.mxu0 %vm7357_vm0, %v7356_v0 }
 0x99e   :  { %v5951_v26 = vpop.f32.mrf.mxu0  ;;  %v5940_v41 = vpop.f32.mrf.mxu1 }
 0x9a0   :  { %v1927_v21 = vpop.f32.mrf.mxu0  ;;  %v1844_v45 = vpop.f32.mrf.mxu1 }
 0x9a1   :  { %v6359_v23 = vpack.i.bf16 %v5951_v26, %v1927_v21 }
 0x9a3   :  { %6360 = vrot.lane.b32.xlu0 %v6359_v23, %s7359_s27  ;;  %v5964_v53 = vpop.f32.mrf.mxu0  ;;  %v5558_v23 = vld [vmem:[%s8715_s21] ss:$0 sm:$0xff]  ;;  %s8733_s27 = sld [smem:[#allocation113_spill]] }
 0x9a4   :  { %s8736_s21 = sld [smem:[#allocation115_spill]] }
 0x9a5   :  { %v2089_v58 = vpop.f32.mrf.mxu0 }
 0xa15   :  { %v6361_v42 = vpop.permute.xlu0 %6360 }
 0xa16   :  { %v6363_v43 = vunpack.i.h.bf16 %v6361_v42  ;;  %v6362_v44 = vunpack.i.l.bf16 %v6361_v42  ;;  %v5559_v42 = vld [vmem:[%s8716_s9] ss:$0 sm:$0xff]  ;;  %s8737_s9 = sld [smem:[#allocation74_spill]] }
 0xa18   :  { %v1944_v28 = vsel %vm1148_vm3, %v1844_v45, %v6362_v44  ;;  %v1945_v51 = vsel %vm1148_vm3, %v5940_v41, %v6363_v43  ;;  %v5560_v45 = vld [vmem:[#allocation16] ss:$0 sm:$0xff] }
 0xa19   :  { %v1946_v52 = vpack.c.bf16 %v1945_v51, %v1944_v28 }
 0xa1b   :  { %5957 = vmatmul.mubr.msk.bf16.vlgmr.msra.gmra.mxu1 %vm1690_vm4, %v1946_v52 }
 0xa1c   :  { %5969 = vmatprep.mubr.msk.bf16.mxu1 %vm7357_vm0, %v7356_v0  ;;  %5966 = vmatpush3.bf16.msra.mxu1 %v6373_v15 }
 0xa1d   :  { %5967 = vmatprep.subr.bf16.mxu1 %v7356_v0 }
 0xa20   :  { %5968 = vmatpush3.bf16.msra.mxu1 %v6374_v9  ;;  %v5561_v9 = vld [vmem:[#allocation18] ss:$0 sm:$0xff] }
 0xa21   :  { %5986 = vmatprep.subr.bf16.mxu1 %v7356_v0 }
 0xadb   :  { %v2007_v56 = vpop.f32.mrf.mxu1 }
 0xadc   :  { %v8132_v57 = vadd.f32 %v5552_v54, %v2007_v56 }
 0xadd   :  { %v5958_v59 = vpop.f32.mrf.mxu1 }
 0xade   :  { %v2098_v55 = vadd.f32 %v2089_v58, %v8132_v57 }
 0xadf   :  { %v2010_v60 = vpop.f32.mrf.mxu1 }
 0xae0   :  { %v8135_v61 = vadd.f32 %v5552_v54, %v2010_v60  ;;  %v2102_v62 = vsel %vm1690_vm4, %v2098_v55, 0.0 }
 0xae1   :  { %2103 = vadd.xlane.f32.xlu1 %v2102_v62  ;;  %v5959_v1 = vpop.f32.mrf.mxu1 }
 0xae2   :  { %v2099_v3 = vadd.f32 %v5964_v53, %v8135_v61 }
 0xae4   :  { %v2105_v5 = vsel %vm1690_vm4, %v2099_v3, 0.0 }
 0xae5   :  { %2106 = vadd.xlane.f32.xlu0 %v2105_v5 }
 0xb6a   :  { %v2104_v4 = vpop.xlane.xlu1 %2103 }
 0xb6b   :  { %v2109_v6 = vmul.f32 0.03125, %v2104_v4 }
 0xb6d   :  { %v2111_v63 = vsub.f32 %v2098_v55, %v2109_v6 }
 0xb6e   :  { %v2107_v7 = vpop.xlane.xlu0 %2106 }
 0xb6f   :  { %v2110_v8 = vmul.f32 0.03125, %v2107_v7  ;;  %v2113_v10 = vmul.f32 %v2111_v63, %v2111_v63 }
 0xb71   :  { %v2112_v11 = vsub.f32 %v2099_v3, %v2110_v8  ;;  %v2115_v2 = vsel %vm1690_vm4, %v2113_v10, 0.0 }
 0xb72   :  { %2116 = vadd.xlane.f32.xlu0 %v2115_v2 }
 0xb73   :  { %v2114_v12 = vmul.f32 %v2112_v11, %v2112_v11 }
 0xb75   :  { %v2118_v13 = vsel %vm1690_vm4, %v2114_v12, 0.0 }
 0xb76   :  { %2119 = vadd.xlane.f32.xlu0 %v2118_v13 }
 0xbfb   :  { %v2117_v31 = vpop.xlane.xlu0 %2116 }
 0xbfc   :  { %v2121_v33 = vmul.f32 0.03125, %v2117_v31 }
 0xbfe   :  { %v2123_v34 = vadd.f32 1e-05, %v2121_v33 }
 0xbff   :  { %v2120_v35 = vpop.xlane.xlu0 %2119 }
 0xc00   :  { %6469 = vrsqrt.f32 %v2123_v34  ;;  %v2122_v36 = vmul.f32 0.03125, %v2120_v35 }
 0xc02   :  { %v2124_v26 = vadd.f32 1e-05, %v2122_v36 }
 0xc04   :  { %6471 = vrsqrt.f32 %v2124_v26 }
 0xc0d   :  { %v6470_v21 = vpop.eup %6469 }
 0xc0e   :  { %v2127_v41 = vmul.f32 %v6470_v21, %v2111_v63 }
 0xc10   :  { %v2135_v43 = vmul.f32 %v5558_v23, %v2127_v41 }
 0xc11   :  { %v6472_v44 = vpop.eup %6471 }
 0xc12   :  { %v2143_v28 = vadd.f32 %v5559_v42, %v2135_v43  ;;  %v2128_v51 = vmul.f32 %v6472_v44, %v2112_v11 }
 0xc14   :  { %v2152_v52 = vmul.f32 %v5560_v45, %v2143_v28  ;;  %v2136_v53 = vmul.f32 %v5558_v23, %v2128_v51  ;;  %v5510_v28 = vld [vmem:[%s8717_s15] ss:$0 sm:$0xff]  ;;  %s8738_s15 = sld [smem:[#allocation120_spill]] }
 0xc16   :  { %v2144_v54 = vadd.f32 %v5559_v42, %v2136_v53  ;;  %v2154_v56 = vmul.f32 %v2152_v52, %v2152_v52  ;;  %v8161_v53 = vadd.f32 %v5510_v28, %v7967_v25 }
 0xc18   :  { %v2153_v58 = vmul.f32 %v5560_v45, %v2144_v54  ;;  %v2156_v59 = vmul.f32 %v2154_v56, %v2152_v52 }
 0xc1a   :  { %v2155_v55 = vmul.f32 %v2153_v58, %v2153_v58  ;;  %v2158_v60 = vmul.f32 0.044715, %v2156_v59 }
 0xc1c   :  { %v2157_v62 = vmul.f32 %v2155_v55, %v2153_v58  ;;  %v2160_v1 = vadd.f32 %v2158_v60, %v2152_v52  ;;  %v8165_v55 = vadd.f32 %v5510_v28, %v7973_v29 }
 0xc1e   :  { %v2159_v3 = vmul.f32 0.044715, %v2157_v62  ;;  %v2162_v5 = vmul.f32 0.7978846, %v2160_v1 }
 0xc20   :  { %v2161_v4 = vadd.f32 %v2159_v3, %v2153_v58  ;;  %6473 = vtanh.f32 %v2162_v5 }
 0xc22   :  { %v2163_v6 = vmul.f32 0.7978846, %v2161_v4 }
 0xc24   :  { %6475 = vtanh.f32 %v2163_v6 }
 0xc2d   :  { %v6474_v63 = vpop.eup %6473 }
 0xc2e   :  { %v2166_v7 = vadd.f32 1.0, %v6474_v63 }
 0xc30   :  { %v2168_v11 = vmul.f32 0.5, %v2166_v7 }
 0xc31   :  { %v6476_v8 = vpop.eup %6475 }
 0xc32   :  { %v2167_v10 = vadd.f32 1.0, %v6476_v8  ;;  %v2170_v12 = vmul.f32 %v2168_v11, %v2152_v52  ;;  %v5977_v52 = vpop.f32.mrf.mxu0 }
 0xc34   :  { %v2169_v2 = vmul.f32 0.5, %v2167_v10  ;;  %v2333_v59 = vpop.f32.mrf.mxu0 }
 0xc36   :  { %v2171_v13 = vmul.f32 %v2169_v2, %v2153_v58 }
 0xc38   :  { %v2172_v15 = vpack.c.bf16 %v2171_v13, %v2170_v12 }
 0xc3a   :  { %5970 = vmatmul.mubr.msk.bf16.vlgmr.msra.gmra.mxu1 %vm1690_vm4, %v2172_v15 }
 0xc3b   :  { %5994 = vmatprep.mubr.msk.bf16.mxu1 %vm7357_vm0, %v7356_v0 }
 0xcfa   :  { %v2233_v17 = vpop.f32.mrf.mxu1 }
 0xcfb   :  { %v2234_v31 = vadd.f32 %v5561_v9, %v2233_v17  ;;  %v6376_v17 = vld [vmem:[%s8718_s16] sm:$0xff]  }
 0xcfc   :  { %v5971_v33 = vpop.f32.mrf.mxu1 }
 0xcfd   :  { %v5565_v34 = vmul.f32 -1.442695, %v2234_v31 }
 0xcfe   :  { %v2236_v35 = vpop.f32.mrf.mxu1 }
 0xcff   :  { %6477 = vpow2.f32 %v5565_v34  ;;  %v2237_v36 = vadd.f32 %v5561_v9, %v2236_v35  ;;  %v6375_v9 = vld [vmem:[%s8718_s16 + $0x8] sm:$0xff]   ;;  %s8739_s16 = sld [smem:[#allocation75_spill]] }
 0xd00   :  { %v5972_v26 = vpop.f32.mrf.mxu1  ;;  %5979 = vmatpush3.bf16.msra.mxu0 %v6375_v9 }
 0xd01   :  { %v5566_v21 = vmul.f32 -1.442695, %v2237_v36  ;;  %5980 = vmatprep.subr.bf16.mxu0 %v7356_v0 }
 0xd03   :  { %6479 = vpow2.f32 %v5566_v21 }
 0xd04   :  { %5981 = vmatpush3.bf16.msra.mxu0 %v6376_v17 }
 0xd05   :  { %5998 = vmatprep.subr.mxu0 %v7356_v0 }
 0xd0c   :  { %v6478_v23 = vpop.eup %6477 }
 0xd0d   :  { %v2246_v41 = vadd.f32 1.0, %v6478_v23 }
 0xd0f   :  { %6481 = vrcp.f32 %v2246_v41  ;;  %v5569_v41 = vld [vmem:[%s8719_s0] ss:$0 sm:$0xff]  ;;  %s8740_s0 = sld [smem:[#allocation118_spill]] }
 0xd10   :  { %v6480_v42 = vpop.eup %6479 }
 0xd11   :  { %v2247_v43 = vadd.f32 1.0, %v6480_v42 }
 0xd13   :  { %6483 = vrcp.f32 %v2247_v43 }
 0xd1c   :  { %v6482_v44 = vpop.eup %6481 }
 0xd1d   :  { %2254 = vrot.lane.b32.xlu1 %v6482_v44, %s7360_s24 }
 0xd20   :  { %v6484_v45 = vpop.eup %6483 }
 0xd21   :  { %2256 = vrot.lane.b32.xlu0 %v6484_v45, %s7360_s24  ;;  %v5570_v45 = vld [vmem:[%s8720_s29] ss:$0 sm:$0xff]  ;;  %s8741_s29 = sld [smem:[#allocation119_spill]] }
 0xd8f   :  { %v2255_v51 = vpop.permute.xlu1 %2254 }
 0xd90   :  { %v2260_v54 = vmul.f32 %v2255_v51, %v2234_v31 }
 0xd92   :  { %v2262_v56 = vadd.f32 %v2260_v54, %v8161_v53 }
 0xd93   :  { %v2257_v58 = vpop.permute.xlu0 %2256 }
 0xd94   :  { %v8168_v60 = vadd.f32 %v2262_v56, %v8132_v57  ;;  %v2261_v62 = vmul.f32 %v2257_v58, %v2237_v36  ;;  %v6377_v56 = vld [vmem:[%s8721_s18 + $0x18] sm:$0xff]   ;;  %v6378_v58 = vld [vmem:[%s8721_s18 + $0x10] sm:$0xff]  }
 0xd95   :  { %5987 = vmatpush3.bf16.msra.mxu1 %v6377_v56 }
 0xd96   :  { %v2263_v1 = vadd.f32 %v2261_v62, %v8165_v55  ;;  %v2342_v3 = vadd.f32 %v2333_v59, %v8168_v60  ;;  %5988 = vmatprep.subr.bf16.mxu1 %v7356_v0  ;;  %v6379_v59 = vld [vmem:[%s8721_s18 + $0x8] sm:$0xff]   ;;  %v6380_v62 = vld [vmem:[%s8721_s18] sm:$0xff]   ;;  %s8744_s18 = sld [smem:[#allocation123_spill]] }
 0xd98   :  { %v8173_v5 = vadd.f32 %v2263_v1, %v8135_v61  ;;  %v2346_v25 = vsel %vm1690_vm4, %v2342_v3, 0.0  ;;  %v5571_v1 = vld [vmem:[#allocation19] ss:$0 sm:$0xff] }
 0xd99   :  { %2347 = vadd.xlane.f32.xlu1 %v2346_v25  ;;  %5989 = vmatpush3.bf16.msra.mxu1 %v6378_v58 }
 0xd9a   :  { %v2343_v4 = vadd.f32 %v5977_v52, %v8173_v5  ;;  %5990 = vmatprep.subr.bf16.mxu1 %v7356_v0 }
 0xd9c   :  { %v2349_v6 = vsel %vm1690_vm4, %v2343_v4, 0.0 }
 0xd9d   :  { %2350 = vadd.xlane.f32.xlu0 %v2349_v6  ;;  %5991 = vmatpush3.bf16.msra.mxu1 %v6379_v59 }
 0xd9e   :  { %5992 = vmatprep.subr.bf16.mxu1 %v7356_v0 }
 0xda1   :  { %5993 = vmatpush3.bf16.msra.mxu1 %v6380_v62 }
 0xda2   :  { %6012 = vmatprep.subr.bf16.mxu1 %v7356_v0 }
 0xe22   :  { %v2348_v29 = vpop.xlane.xlu1 %2347 }
 0xe23   :  { %v2352_v63 = vmul.f32 0.03125, %v2348_v29 }
 0xe25   :  { %v2354_v7 = vsub.f32 %v2342_v3, %v2352_v63 }
 0xe26   :  { %v2351_v8 = vpop.xlane.xlu0 %2350 }
 0xe27   :  { %v2353_v10 = vmul.f32 0.03125, %v2351_v8  ;;  %v2356_v11 = vmul.f32 %v2354_v7, %v2354_v7 }
 0xe29   :  { %v2355_v2 = vsub.f32 %v2343_v4, %v2353_v10  ;;  %v2358_v12 = vsel %vm1690_vm4, %v2356_v11, 0.0 }
 0xe2a   :  { %2359 = vadd.xlane.f32.xlu1 %v2358_v12 }
 0xe2b   :  { %v2357_v13 = vmul.f32 %v2355_v2, %v2355_v2 }
 0xe2d   :  { %v2361_v15 = vsel %vm1690_vm4, %v2357_v13, 0.0 }
 0xe2e   :  { %2362 = vadd.xlane.f32.xlu0 %v2361_v15 }
 0xe3b   :  { %2563 = vrot.lane.b32.xlu1 %v8165_v55, %s7360_s24 }
 0xe44   :  { %2561 = vrot.lane.b32.xlu0 %v8161_v53, %s7360_s24 }
 0xeb3   :  { %v2360_v31 = vpop.xlane.xlu1 %2359 }
 0xeb4   :  { %v2364_v33 = vmul.f32 0.03125, %v2360_v31 }
 0xeb6   :  { %v2366_v34 = vadd.f32 1e-05, %v2364_v33 }
 0xeb7   :  { %v2363_v35 = vpop.xlane.xlu0 %2362 }
 0xeb8   :  { %6485 = vrsqrt.f32 %v2366_v34  ;;  %v2365_v36 = vmul.f32 0.03125, %v2363_v35 }
 0xeba   :  { %v2367_v26 = vadd.f32 1e-05, %v2365_v36 }
 0xebc   :  { %6487 = vrsqrt.f32 %v2367_v26 }
 0xec5   :  { %v6486_v21 = vpop.eup %6485 }
 0xec6   :  { %v2370_v23 = vmul.f32 %v6486_v21, %v2354_v7 }
 0xec8   :  { %v2378_v44 = vmul.f32 %v5569_v41, %v2370_v23 }
 0xec9   :  { %v6488_v42 = vpop.eup %6487 }
 0xeca   :  { %v2371_v43 = vmul.f32 %v6488_v42, %v2355_v2  ;;  %v2386_v51 = vadd.f32 %v5570_v45, %v2378_v44  ;;  %v5575_v42 = vld [vmem:[#allocation21] ss:$0 sm:$0xff] }
 0xecc   :  { %v2379_v28 = vmul.f32 %v5569_v41, %v2371_v43 }
 0xece   :  { %v2387_v52 = vadd.f32 %v5570_v45, %v2379_v28 }
 0xed0   :  { %v2388_v54 = vpack.c.bf16 %v2387_v52, %v2386_v51  ;;  %v2564_v51 = vpop.permute.xlu1 %2563 }
 0xed2   :  { %5983 = vmatmul.mubr.msk.bf16.vlgmr.msra.gmra.mxu0 %vm1690_vm4, %v2388_v54  ;;  %v2562_v54 = vpop.permute.xlu0 %2561 }
 0xed3   :  { %6002 = vmatprep.mubr.msk.f32.mxu0 %vm7357_vm0, %v7356_v0 }
 0xf92   :  { %v2449_v3 = vpop.f32.mrf.mxu0 }
 0xf93   :  { %v2450_v25 = vadd.f32 %v5571_v1, %v2449_v3  ;;  %v2571_v3 = vld [vmem:[#allocation22] sm:$0xff] }
 0xf94   :  { %v5984_v4 = vpop.f32.mrf.mxu0 }
 0xf95   :  { %v2456_v6 = vmul.f32 %v2450_v25, %v2450_v25  ;;  %v6381_v4 = vld [vmem:[%s8722_s6 + $0x18] sm:$0xff]  }
 0xf96   :  { %v2452_v29 = vpop.f32.mrf.mxu0 }
 0xf97   :  { %v2458_v63 = vmul.f32 %v2456_v6, %v2450_v25  ;;  %v2453_v7 = vadd.f32 %v5571_v1, %v2452_v29  ;;  %v6382_v6 = vld [vmem:[%s8722_s6 + $0x10] sm:$0xff]   ;;  %v6383_v29 = vld [vmem:[%s8722_s6 + $0x8] sm:$0xff]  }
 0xf98   :  { %v5985_v8 = vpop.f32.mrf.mxu0 }
 0xf99   :  { %v2460_v10 = vmul.f32 0.044715, %v2458_v63  ;;  %v2457_v11 = vmul.f32 %v2453_v7, %v2453_v7  ;;  %v6384_v63 = vld [vmem:[%s8722_s6] sm:$0xff]   ;;  %s8745_s6 = sld [smem:[#allocation125_spill]] }
 0xf9a   :  { %v2807_v8 = vld [vmem:[%s8724_s13] sm:$0xff]  ;;  %s8747_s13 = sld [smem:[#allocation128_spill]] }
 0xf9b   :  { %v2462_v2 = vadd.f32 %v2460_v10, %v2450_v25  ;;  %v2459_v12 = vmul.f32 %v2457_v11, %v2453_v7 }
 0xf9d   :  { %v2464_v13 = vmul.f32 0.7978846, %v2462_v2  ;;  %v2461_v15 = vmul.f32 0.044715, %v2459_v12 }
 0xf9f   :  { %6489 = vtanh.f32 %v2464_v13  ;;  %v2463_v9 = vadd.f32 %v2461_v15, %v2453_v7 }
 0xfa1   :  { %v2465_v17 = vmul.f32 0.7978846, %v2463_v9 }
 0xfa3   :  { %6491 = vtanh.f32 %v2465_v17 }
 0xfac   :  { %v6490_v31 = vpop.eup %6489 }
 0xfad   :  { %v2468_v33 = vadd.f32 1.0, %v6490_v31 }
 0xfaf   :  { %v2470_v35 = vmul.f32 0.5, %v2468_v33  ;;  %v5583_v33 = vld [vmem:[#allocation25] ss:$0 sm:$0xff] }
 0xfb0   :  { %v6492_v34 = vpop.eup %6491 }
 0xfb1   :  { %v2469_v36 = vadd.f32 1.0, %v6492_v34  ;;  %v2472_v21 = vmul.f32 %v2470_v35, %v2450_v25  ;;  %v2645_v25 = vld [vmem:[#allocation24] sm:$0xff] }
 0xfb3   :  { %v2471_v26 = vmul.f32 0.5, %v2469_v36 }
 0xfb5   :  { %v2473_v23 = vmul.f32 %v2471_v26, %v2453_v7  ;;  %v2808_v7 = vld [vmem:[%s8723_s22] sm:$0xff]  ;;  %s8746_s22 = sld [smem:[#allocation129_spill]] }
 0xfb7   :  { %v2474_v41 = vpack.c.bf16 %v2473_v23, %v2472_v21 }
 0xfb9   :  { %5995 = vmatmul.mubr.msk.bf16.vlgmr.msra.gmra.mxu1 %vm2514_vm5, %v2474_v41 }
 0xfba   :  { %6020 = vmatprep.mubr.msk.bf16.mxu1 %vm7357_vm0, %v7356_v0  ;;  %6013 = vmatpush3.bf16.msra.mxu1 %v6381_v4 }
 0xfbb   :  { %6014 = vmatprep.subr.bf16.mxu1 %v7356_v0 }
 0xfbe   :  { %6015 = vmatpush3.bf16.msra.mxu1 %v6382_v6  ;;  %v5590_v6 = vld [vmem:[%s8727_s8] ss:$0 sm:$0xff]  ;;  %s8752_s8 = sld [smem:[#allocation130_spill]] }
 0xfbf   :  { %6016 = vmatprep.subr.bf16.mxu1 %v7356_v0 }
 0xfc2   :  { %6017 = vmatpush3.bf16.msra.mxu1 %v6383_v29 }
 0xfc3   :  { %6018 = vmatprep.subr.bf16.mxu1 %v7356_v0 }
 0xfc6   :  { %6019 = vmatpush3.bf16.msra.mxu1 %v6384_v63  ;;  %v5591_v63 = vld [vmem:[%s8728_s5] ss:$0 sm:$0xff]  ;;  %s8753_s5 = sld [smem:[#allocation131_spill]] }
 0xfc7   :  { %6041 = vmatprep.subr.mxu1 %v7356_v0 }
0x1079   :  { %v2552_v43 = vpop.f32.mrf.mxu1 }
0x107a   :  { %v2553_v45 = vadd.f32 %v5575_v42, %v2552_v43 }
0x107b   :  { %v5996_v44 = vpop.f32.mrf.mxu1 }
0x107c   :  { %v2567_v58 = vadd.f32 %v2562_v54, %v2553_v45  ;;  %v6387_v54 = vld [vmem:[%s8725_s26 + $0x8] sm:$0xff]  }
0x107d   :  { %v2555_v28 = vpop.f32.mrf.mxu1 }
0x107e   :  { %v2556_v52 = vadd.f32 %v5575_v42, %v2555_v28  ;;  %v8208_v1 = vadd.f32 %v2567_v58, %v8168_v60  ;;  %v3026_v58 = vld [vmem:[%s8726_s1] sm:$0xff]  ;;  %s8751_s1 = sld [smem:[#allocation77_spill]] }
0x107f   :  { %v5997_v56 = vpop.f32.mrf.mxu1 }
0x1080   :  { %v2568_v59 = vadd.f32 %v2564_v51, %v2556_v52  ;;  %v6385_v51 = vld [vmem:[%s8725_s26 + $0x18] sm:$0xff]   ;;  %v6386_v52 = vld [vmem:[%s8725_s26 + $0x10] sm:$0xff]   ;;  %v6388_v56 = vld [vmem:[%s8725_s26] sm:$0xff]   ;;  %s8749_s26 = sld [smem:[#allocation76_spill]] }
0x1082   :  { %v8205_v62 = vadd.f32 %v2568_v59, %v8173_v5 }
0x1084   :  { %5999 = vmatpush3.msra.mxu0 %v8205_v62 }
0x1085   :  { %6000 = vmatprep.subr.mxu0 %v7356_v0 }
0x1086   :  { %6001 = vmatpush3.msra.mxu0 %v8208_v1 }
0x1087   :  { %6003 = vmatmul.mubr.msk.f32.vlgmr.msra.gmra.mxu0 %vm1148_vm3, %v2571_v3  ;;  %6005 = vmatprep.subr.mxu0 %v7356_v0 }
0x1088   :  { %6006 = vmatpush3.msra.mxu0 %v8205_v62  ;;  %6009 = vmatprep.mubr.msk.f32.mxu0 %vm7357_vm0, %v7356_v0 }
0x1089   :  { %6007 = vmatprep.subr.mxu0 %v7356_v0 }
0x108a   :  { %6008 = vmatpush3.msra.mxu0 %v8208_v1 }
0x108b   :  { %6010 = vmatmul.mubr.msk.f32.vlgmr.msra.gmra.mxu0 %vm1148_vm3, %v2645_v25  ;;  %6024 = vmatprep.subr.mxu0 %v7356_v0 }
0x108c   :  { %6026 = vmatprep.mubr.msk.f32.mxu0 %vm7357_vm0, %v7356_v0  ;;  %6025 = vmatpush3.msra.mxu0 %v2808_v7 }
0x108d   :  { %6029 = vmatprep.subr.bf16.mxu0 %v7356_v0 }
0x108f   :  { %6027 = vmatmul.mubr.msk.f32.vlgmr.msra.gmra.mxu0 %vm787_vm2, %v2807_v8 }
0x1090   :  { %6037 = vmatprep.mubr.msk.bf16.mxu0 %vm7357_vm0, %v7356_v0  ;;  %6030 = vmatpush3.bf16.msra.mxu0 %v6385_v51 }
0x1091   :  { %6031 = vmatprep.subr.bf16.mxu0 %v7356_v0 }
0x1094   :  { %6032 = vmatpush3.bf16.msra.mxu0 %v6386_v52 }
0x1095   :  { %6033 = vmatprep.subr.bf16.mxu0 %v7356_v0 }
0x1098   :  { %6034 = vmatpush3.bf16.msra.mxu0 %v6387_v54 }
0x1099   :  { %6035 = vmatprep.subr.bf16.mxu0 %v7356_v0 }
0x109c   :  { %6036 = vmatpush3.bf16.msra.mxu0 %v6388_v56  ;;  %v5513_v56 = vld [vmem:[%s8729_s2] ss:$0 sm:$0xff]  ;;  %s8755_s2 = sld [smem:[#allocation134_spill]] }
0x109d   :  { %6046 = vmatprep.subr.bf16.mxu0 %v7356_v0 }
0x1147   :  { %v2641_v10 = vpop.f32.mrf.mxu0 }
0x1149   :  { %v6004_v11 = vpop.f32.mrf.mxu0 }
0x114b   :  { %v2715_v2 = vpop.f32.mrf.mxu0 }
0x114c   :  { %2720 = vrot.lane.b32.xlu1 %v2715_v2, %s7361_s23 }
0x114d   :  { %v6011_v12 = vpop.f32.mrf.mxu0 }
0x114f   :  { %v2878_v17 = vpop.f32.mrf.mxu0 }
0x1151   :  { %v6028_v31 = vpop.f32.mrf.mxu0 }
0x11be   :  { %v2721_v13 = vpop.permute.xlu1 %2720 }
0x11bf   :  { %v2723_v15 = vsel %vm1690_vm4, %v2641_v10, %v2721_v13  ;;  %v5592_v10 = vld [vmem:[#allocation27] ss:$0 sm:$0xff] }
0x11c0   :  { %v2724_v9 = vpack.c.bf16 %v2723_v15, %v2723_v15 }
0x11c2   :  { %6021 = vmatmul.mubr.msk.bf16.vlgmr.msra.gmra.mxu1 %vm2514_vm5, %v2724_v9 }
0x11c3   :  { %6043 = vmatprep.mubr.msk.f32.mxu1 %vm7357_vm0, %v7356_v0  ;;  %6042 = vmatpush3.msra.mxu1 %v3026_v58 }
0x11c4   :  { %6058 = vmatprep.subr.bf16.mxu1 %v7356_v0 }
0x11ca   :  { %6044 = vmatmul.mubr.msk.f32.vlgmr.msra.gmra.mxu1 %vm787_vm2, %v2807_v8 }
0x11cb   :  { %6074 = vmatprep.mubr.msk.bf16.mxu1 %vm7357_vm0, %v7356_v0 }
0x1282   :  { %v2801_v34 = vpop.f32.mrf.mxu1 }
0x1283   :  { %v8243_v35 = vadd.f32 %v5583_v33, %v2801_v34 }
0x1284   :  { %v6022_v36 = vpop.f32.mrf.mxu1 }
0x1285   :  { %v2882_v26 = vadd.f32 %v2878_v17, %v8243_v35 }
0x1286   :  { %v2804_v21 = vpop.f32.mrf.mxu1 }
0x1287   :  { %v2885_v23 = vsel %vm2514_vm5, %v2882_v26, 0.0 }
0x1288   :  { %2886 = vadd.xlane.f32.xlu1 %v2885_v23  ;;  %v6023_v41 = vpop.f32.mrf.mxu1 }
0x128a   :  { %v3093_v51 = vpop.f32.mrf.mxu1 }
0x128c   :  { %v6045_v52 = vpop.f32.mrf.mxu1 }
0x128d   :  { %v6400_v52 = vld [vmem:[%s8733_s27] sm:$0xff]  }
0x1311   :  { %v2887_v42 = vpop.xlane.xlu1 %2886 }
0x1312   :  { %v2889_v43 = vmul.f32 0.015625, %v2887_v42 }
0x1314   :  { %v2890_v44 = vsub.f32 %v2882_v26, %v2889_v43  ;;  %v5593_v26 = vld [vmem:[#allocation28] ss:$0 sm:$0xff] }
0x1316   :  { %v2891_v45 = vmul.f32 %v2890_v44, %v2890_v44 }
0x1318   :  { %v2892_v28 = vsel %vm2514_vm5, %v2891_v45, 0.0 }
0x1319   :  { %2893 = vadd.xlane.f32.xlu0 %v2892_v28 }
0x13a2   :  { %v2894_v59 = vpop.xlane.xlu0 %2893 }
0x13a3   :  { %v2895_v3 = vmul.f32 0.015625, %v2894_v59  ;;  %v959_v59 = vadd.f32 %v5513_v56, %v7977_v32  ;;  %v6389_v32 = vld [vmem:[%s8730_s17 + $0x18] sm:$0xff]  }
0x13a4   :  { %v5603_v56 = vld [vmem:[#allocation30] ss:$0 sm:$0xff] }
0x13a5   :  { %v2896_v25 = vadd.f32 1e-05, %v2895_v3 }
0x13a7   :  { %6493 = vrsqrt.f32 %v2896_v25 }
0x13b4   :  { %v6494_v4 = vpop.eup %6493 }
0x13b5   :  { %v2898_v29 = vmul.f32 %v6494_v4, %v2890_v44 }
0x13b7   :  { %v2905_v7 = vmul.f32 %v5590_v6, %v2898_v29 }
0x13b9   :  { %v2912_v11 = vadd.f32 %v5591_v63, %v2905_v7 }
0x13bb   :  { %v2920_v2 = vmul.f32 %v5592_v10, %v2912_v11 }
0x13bd   :  { %v2921_v12 = vmul.f32 %v2920_v2, %v2920_v2 }
0x13bf   :  { %v2922_v13 = vmul.f32 %v2921_v12, %v2920_v2  ;;  %v6390_v12 = vld [vmem:[%s8730_s17 + $0x10] sm:$0xff]  }
0x13c1   :  { %v2923_v8 = vmul.f32 0.044715, %v2922_v13  ;;  %v6391_v13 = vld [vmem:[%s8730_s17 + $0x8] sm:$0xff]  }
0x13c3   :  { %v2924_v15 = vadd.f32 %v2923_v8, %v2920_v2  ;;  %v6392_v8 = vld [vmem:[%s8730_s17] sm:$0xff]   ;;  %s8756_s17 = sld [smem:[#allocation135_spill]] }
0x13c5   :  { %v2925_v9 = vmul.f32 0.7978846, %v2924_v15 }
0x13c7   :  { %6495 = vtanh.f32 %v2925_v9 }
0x13d4   :  { %v6496_v17 = vpop.eup %6495 }
0x13d5   :  { %v2927_v31 = vadd.f32 1.0, %v6496_v17 }
0x13d7   :  { %v2928_v33 = vmul.f32 0.5, %v2927_v31 }
0x13d9   :  { %v2929_v34 = vmul.f32 %v2928_v33, %v2920_v2  ;;  %v5601_v33 = vld [vmem:[%s8731_s7] ss:$0 sm:$0xff]  ;;  %s8757_s7 = sld [smem:[#allocation138_spill]] }
0x13db   :  { %v2930_v36 = vpack.c.bf16 %v2929_v34, %v2929_v34 }
0x13dd   :  { %6038 = vmatmul.mubr.msk.bf16.vlgmr.msra.gmra.mxu0 %vm2514_vm5, %v2930_v36  ;;  %v5602_v36 = vld [vmem:[%s8732_s10] ss:$0 sm:$0xff]  ;;  %s8758_s10 = sld [smem:[#allocation148_spill]] }
0x13de   :  { %6054 = vmatprep.mubr.msk.bf16.mxu0 %vm7357_vm0, %v7356_v0  ;;  %6047 = vmatpush3.bf16.msra.mxu0 %v6389_v32 }
0x13df   :  { %6048 = vmatprep.subr.bf16.mxu0 %v7356_v0 }
0x13e2   :  { %6049 = vmatpush3.bf16.msra.mxu0 %v6390_v12 }
0x13e3   :  { %6050 = vmatprep.subr.bf16.mxu0 %v7356_v0 }
0x13e6   :  { %6051 = vmatpush3.bf16.msra.mxu0 %v6391_v13 }
0x13e7   :  { %6052 = vmatprep.subr.bf16.mxu0 %v7356_v0 }
0x13ea   :  { %6053 = vmatpush3.bf16.msra.mxu0 %v6392_v8 }
0x13eb   :  { %6078 = vmatprep.subr.bf16.mxu0 %v7356_v0 }
0x149d   :  { %v3007_v21 = vpop.f32.mrf.mxu0 }
0x149e   :  { %v3008_v23 = vadd.f32 %v5593_v26, %v3007_v21 }
0x149f   :  { %v6039_v41 = vpop.f32.mrf.mxu0 }
0x14a0   :  { %v5599_v42 = vmul.f32 -1.442695, %v3008_v23  ;;  %v6393_v41 = vld [vmem:[%s8733_s27 + $0x38] sm:$0xff]  }
0x14a1   :  { %v3010_v43 = vpop.f32.mrf.mxu0  ;;  %6059 = vmatpush3.bf16.msra.mxu1 %v6393_v41 }
0x14a2   :  { %6497 = vpow2.f32 %v5599_v42  ;;  %6060 = vmatprep.subr.bf16.mxu1 %v7356_v0  ;;  %v6394_v42 = vld [vmem:[%s8733_s27 + $0x30] sm:$0xff]   ;;  %v6395_v43 = vld [vmem:[%s8733_s27 + $0x28] sm:$0xff]  }
0x14a3   :  { %v6040_v44 = vpop.f32.mrf.mxu0 }
0x14a4   :  { %v6396_v44 = vld [vmem:[%s8733_s27 + $0x20] sm:$0xff]  }
0x14a5   :  { %6061 = vmatpush3.bf16.msra.mxu1 %v6394_v42 }
0x14a6   :  { %6062 = vmatprep.subr.bf16.mxu1 %v7356_v0 }
0x14a9   :  { %6063 = vmatpush3.bf16.msra.mxu1 %v6395_v43 }
0x14aa   :  { %6064 = vmatprep.subr.bf16.mxu1 %v7356_v0 }
0x14ad   :  { %6065 = vmatpush3.bf16.msra.mxu1 %v6396_v44 }
0x14ae   :  { %6066 = vmatprep.subr.bf16.mxu1 %v7356_v0 }
0x14af   :  { %v6498_v45 = vpop.eup %6497 }
0x14b0   :  { %v3016_v28 = vadd.f32 1.0, %v6498_v45  ;;  %v6397_v45 = vld [vmem:[%s8733_s27 + $0x18] sm:$0xff]  }
0x14b1   :  { %6067 = vmatpush3.bf16.msra.mxu1 %v6397_v45  ;;  %v3421_v45 = vld [vmem:[%s8735_s14] sm:$0xff] }
0x14b2   :  { %6499 = vrcp.f32 %v3016_v28  ;;  %v6398_v28 = vld [vmem:[%s8733_s27 + $0x10] sm:$0xff]   ;;  %6068 = vmatprep.subr.bf16.mxu1 %v7356_v0 }
0x14b5   :  { %6069 = vmatpush3.bf16.msra.mxu1 %v6398_v28  ;;  %v3423_v28 = vld [vmem:[%s8736_s21] sm:$0xff] }
0x14b6   :  { %6070 = vmatprep.subr.bf16.mxu1 %v7356_v0 }
0x14bf   :  { %v6500_v54 = vpop.eup %6499 }
0x14c0   :  { %3020 = vrot.lane.b32.xlu0 %v6500_v54, %s7326_s28  ;;  %v6401_v54 = vld [vmem:[%s8734_s20 + $0x18] sm:$0xff]  }
0x1532   :  { %v3021_v58 = vpop.permute.xlu0 %3020 }
0x1533   :  { %v3023_v3 = vmul.f32 %v3021_v58, %v3008_v23 }
0x1535   :  { %v3024_v25 = vadd.f32 %v3023_v3, %v959_v59 }
0x1537   :  { %v8270_v4 = vadd.f32 %v3024_v25, %v8243_v35 }
0x1539   :  { %v3097_v6 = vadd.f32 %v3093_v51, %v8270_v4  ;;  %v6399_v51 = vld [vmem:[%s8733_s27 + $0x8] sm:$0xff]   ;;  %s8759_s27 = sld [smem:[#allocation146_spill]] }
0x153a   :  { %6071 = vmatpush3.bf16.msra.mxu1 %v6399_v51  ;;  %v5618_v51 = vld [vmem:[#allocation33] ss:$0 sm:$0xff] }
0x153b   :  { %v3100_v29 = vsel %vm2514_vm5, %v3097_v6, 0.0  ;;  %6072 = vmatprep.subr.bf16.mxu1 %v7356_v0 }
0x153c   :  { %3101 = vadd.xlane.f32.xlu1 %v3100_v29 }
0x153e   :  { %6073 = vmatpush3.bf16.msra.mxu1 %v6400_v52 }
0x15c5   :  { %v3102_v63 = vpop.xlane.xlu1 %3101 }
0x15c6   :  { %v3103_v7 = vmul.f32 0.015625, %v3102_v63 }
0x15c8   :  { %v3104_v10 = vsub.f32 %v3097_v6, %v3103_v7 }
0x15ca   :  { %v3105_v11 = vmul.f32 %v3104_v10, %v3104_v10 }
0x15cc   :  { %v3106_v2 = vsel %vm2514_vm5, %v3105_v11, 0.0 }
0x15cd   :  { %3107 = vadd.xlane.f32.xlu1 %v3106_v2 }
0x15de   :  { %3332 = vrot.lane.b32.xlu1 %v959_v59, %s7326_s28 }
0x1656   :  { %v3108_v15 = vpop.xlane.xlu1 %3107 }
0x1657   :  { %v3109_v9 = vmul.f32 0.015625, %v3108_v15  ;;  %v6402_v15 = vld [vmem:[%s8734_s20 + $0x10] sm:$0xff]  }
0x1659   :  { %v3110_v17 = vadd.f32 1e-05, %v3109_v9  ;;  %v6403_v9 = vld [vmem:[%s8734_s20 + $0x8] sm:$0xff]  }
0x165b   :  { %6501 = vrsqrt.f32 %v3110_v17  ;;  %v6404_v17 = vld [vmem:[%s8734_s20] sm:$0xff]   ;;  %s8760_s20 = sld [smem:[#allocation147_spill]] }
0x1668   :  { %v6502_v31 = vpop.eup %6501 }
0x1669   :  { %v3112_v34 = vmul.f32 %v6502_v31, %v3104_v10  ;;  %v5609_v31 = vld [vmem:[#allocation31] ss:$0 sm:$0xff] }
0x166b   :  { %v3119_v26 = vmul.f32 %v5601_v33, %v3112_v34 }
0x166d   :  { %v3126_v21 = vadd.f32 %v5602_v36, %v3119_v26  ;;  %v3333_v36 = vpop.permute.xlu1 %3332 }
0x166f   :  { %v3127_v23 = vpack.c.bf16 %v3126_v21, %v3126_v21 }
0x1671   :  { %6055 = vmatmul.mubr.msk.bf16.vlgmr.msra.gmra.mxu0 %vm2514_vm5, %v3127_v23 }
0x1672   :  { %6086 = vmatprep.mubr.msk.bf16.mxu0 %vm7357_vm0, %v7356_v0  ;;  %6079 = vmatpush3.bf16.msra.mxu0 %v6401_v54 }
0x1673   :  { %6080 = vmatprep.subr.bf16.mxu0 %v7356_v0 }
0x1676   :  { %6081 = vmatpush3.bf16.msra.mxu0 %v6402_v15 }
0x1677   :  { %6082 = vmatprep.subr.bf16.mxu0 %v7356_v0 }
0x167a   :  { %6083 = vmatpush3.bf16.msra.mxu0 %v6403_v9 }
0x167b   :  { %6084 = vmatprep.subr.bf16.mxu0 %v7356_v0 }
0x167e   :  { %6085 = vmatpush3.bf16.msra.mxu0 %v6404_v17 }
0x1731   :  { %v3204_v58 = vpop.f32.mrf.mxu0 }
0x1732   :  { %v3205_v59 = vadd.f32 %v5603_v56, %v3204_v58  ;;  %v3422_v58 = vld [vmem:[%s8735_s14 + $0x8] sm:$0xff] }
0x1733   :  { %v6056_v3 = vpop.f32.mrf.mxu0 }
0x1734   :  { %v3210_v25 = vmul.f32 %v3205_v59, %v3205_v59  ;;  %v3424_v3 = vld [vmem:[%s8736_s21 + $0x8] sm:$0xff] }
0x1735   :  { %v3207_v6 = vpop.f32.mrf.mxu0 }
0x1736   :  { %v3211_v29 = vmul.f32 %v3210_v25, %v3205_v59  ;;  %v3593_v25 = vld [vmem:[%s8737_s9] sm:$0xff] }
0x1737   :  { %v6057_v63 = vpop.f32.mrf.mxu0 }
0x1738   :  { %v3212_v7 = vmul.f32 0.044715, %v3211_v29 }
0x173a   :  { %v3213_v10 = vadd.f32 %v3212_v7, %v3205_v59 }
0x173c   :  { %v3214_v11 = vmul.f32 0.7978846, %v3213_v10 }
0x173e   :  { %6503 = vtanh.f32 %v3214_v11 }
0x174b   :  { %v6504_v2 = vpop.eup %6503 }
0x174c   :  { %v3216_v32 = vadd.f32 1.0, %v6504_v2 }
0x174e   :  { %v3217_v12 = vmul.f32 0.5, %v3216_v32 }
0x1750   :  { %v3218_v13 = vmul.f32 %v3217_v12, %v3205_v59 }
0x1752   :  { %v3219_v8 = vpack.c.bf16 %v3218_v13, %v3218_v13 }
0x1754   :  { %6075 = vmatmul.mubr.bf16.vlgmr.msra.gmra.mxu1 %v3219_v8 }
0x1755   :  { %6097 = vmatprep.mubr.msk.f32.mxu1 %vm787_vm2, %v3421_v45 }
0x1814   :  { %v3325_v33 = vpop.f32.mrf.mxu1 }
0x1815   :  { %v3326_v34 = vadd.f32 %v5609_v31, %v3325_v33 }
0x1816   :  { %v6076_v26 = vpop.f32.mrf.mxu1 }
0x1817   :  { %v3335_v21 = vadd.f32 %v3333_v36, %v3326_v34 }
0x1818   :  { %v3328_v23 = vpop.f32.mrf.mxu1 }
0x1819   :  { %v3336_v41 = vadd.f32 %v3335_v21, %v8270_v4  ;;  %v6405_v23 = vld [vmem:[%s8738_s15 + $0x8] sm:$0xff]  }
0x181a   :  { %v6077_v42 = vpop.f32.mrf.mxu1 }
0x181b   :  { %v3337_v43 = vadd.f32 %v3336_v41, %v8243_v35  ;;  %v6406_v41 = vld [vmem:[%s8738_s15] sm:$0xff]  }
0x181c   :  { %v3844_v42 = vld [vmem:[%s8739_s16] sm:$0xff] }
0x181d   :  { %v3338_v44 = vpack.c.bf16 %v3337_v43, %v3337_v43  ;;  %v6585_v43 = vld [vmem:[%s8712_s11 + $0x8] sm:$0xff]  ;;  %s8743_s11 = sld [smem:[#allocation122_spill]] }
0x181f   :  { %6087 = vmatmul.mubr.msk.bf16.vlgmr.msra.gmra.mxu0 %vm2514_vm5, %v3338_v44 }
0x1820   :  { %6092 = vmatprep.mubr.msk.f32.mxu0 %vm787_vm2, %v3423_v28 }
0x18df   :  { %v3415_v52 = vpop.f32.mrf.mxu0 }
0x18e0   :  { %v3416_v54 = vadd.f32 %v5618_v51, %v3415_v52 }
0x18e1   :  { %v6088_v56 = vpop.f32.mrf.mxu0 }
0x18e2   :  { %3426 = vrot.lane.b32.xlu0 %v3416_v54, %s7360_s24  ;;  %6095 = vmatprep.subr.mxu1 %v3416_v54 }
0x18e3   :  { %v3418_v35 = vpop.f32.mrf.mxu0  ;;  %6096 = vmatpush3.msra.mxu1 %v3416_v54 }
0x18e4   :  { %6098 = vmatmul.mubr.msk.f32.vlgmr.msra.gmra.mxu1 %vm787_vm2, %v3422_v58  ;;  %6105 = vmatprep.subr.bf16.mxu1 %v7356_v0  ;;  %v5630_v58 = vld [vmem:[%s8740_s0] ss:$0 sm:$0xff] }
0x18e5   :  { %v6089_v4 = vpop.f32.mrf.mxu0  ;;  %6109 = vmatprep.mubr.msk.bf16.mxu1 %vm7357_vm0, %v7356_v0  ;;  %6106 = vmatpush3.bf16.msra.mxu1 %v6405_v23 }
0x18e6   :  { %6107 = vmatprep.subr.bf16.mxu1 %v7356_v0  ;;  %v5631_v4 = vld [vmem:[%s8741_s29] ss:$0 sm:$0xff] }
0x18e9   :  { %6108 = vmatpush3.bf16.msra.mxu1 %v6406_v41 }
0x18ea   :  { %6126 = vmatprep.subr.bf16.mxu1 %v7356_v0 }
0x1954   :  { %v3427_v59 = vpop.permute.xlu0 %3426 }
0x1955   :  { %6090 = vmatprep.subr.mxu0 %v3427_v59 }
0x1956   :  { %6091 = vmatpush3.msra.mxu0 %v3427_v59 }
0x1957   :  { %6093 = vmatmul.mubr.msk.f32.vlgmr.msra.gmra.mxu0 %vm787_vm2, %v3424_v3  ;;  %6100 = vmatprep.subr.mxu0 %v3593_v25 }
0x1958   :  { %6101 = vmatpush3.msra.mxu0 %v3593_v25  ;;  %6102 = vmatprep.mubr.msk.f32.mxu0 %vm787_vm2, %v8115_v39  ;;  %v5632_v25 = vld [vmem:[#allocation34] ss:$0 sm:$0xff] }
0x1959   :  { %6113 = vmatprep.subr.mxu0 %v3844_v42 }
0x195b   :  { %6103 = vmatmul.mubr.msk.f32.vlgmr.msra.gmra.mxu0 %vm787_vm2, %v8118_v22 }
0x195c   :  { %6115 = vmatprep.mubr.msk.f32.mxu0 %vm787_vm2, %v8115_v39  ;;  %6114 = vmatpush3.msra.mxu0 %v3844_v42 }
0x195d   :  { %6118 = vmatprep.subr.bf16.mxu0 %v7356_v0 }
0x195f   :  { %6116 = vmatmul.mubr.msk.f32.vlgmr.msra.gmra.mxu0 %vm787_vm2, %v6585_v43  ;;  %v5633_v43 = vld [vmem:[#allocation36] ss:$0 sm:$0xff] }
0x1960   :  { %6122 = vmatprep.mubr.msk.bf16.mxu0 %vm7357_vm0, %v7356_v0 }
0x19a4   :  { %v6099_v6 = vpop.f32.mrf.mxu1 }
0x19a6   :  { %v3582_v10 = vpop.f32.mrf.mxu1 }
0x1a17   :  { %v6094_v29 = vpop.f32.mrf.mxu0 }
0x1a18   :  { %v3588_v63 = vadd.f32 %v6099_v6, %v6094_v29 }
0x1a19   :  { %v3501_v7 = vpop.f32.mrf.mxu0 }
0x1a1a   :  { %v3583_v11 = vadd.f32 %v3582_v10, %v3501_v7  ;;  %v8334_v2 = vadd.f32 %v3588_v63, %v8205_v62 }
0x1a1b   :  { %v6104_v32 = vpop.f32.mrf.mxu0 }
0x1a1c   :  { %v3670_v12 = vadd.f32 %v6104_v32, %v8334_v2  ;;  %v8338_v13 = vadd.f32 %v3583_v11, %v8208_v1 }
0x1a1d   :  { %v3660_v8 = vpop.f32.mrf.mxu0 }
0x1a1e   :  { %v3669_v22 = vadd.f32 %v3660_v8, %v8338_v13  ;;  %v3676_v39 = vsel %vm1690_vm4, %v3670_v12, 0.0 }
0x1a1f   :  { %3677 = vadd.xlane.f32.xlu0 %v3676_v39 }
0x1a20   :  { %v3673_v15 = vsel %vm1690_vm4, %v3669_v22, 0.0 }
0x1a21   :  { %3674 = vadd.xlane.f32.xlu1 %v3673_v15 }
0x1aa8   :  { %v3678_v9 = vpop.xlane.xlu0 %3677 }
0x1aa9   :  { %v3680_v62 = vmul.f32 0.03125, %v3678_v9 }
0x1aaa   :  { %v3675_v17 = vpop.xlane.xlu1 %3674 }
0x1aab   :  { %v3679_v31 = vmul.f32 0.03125, %v3675_v17  ;;  %v3682_v33 = vsub.f32 %v3670_v12, %v3680_v62 }
0x1aad   :  { %v3681_v34 = vsub.f32 %v3669_v22, %v3679_v31  ;;  %v3684_v26 = vmul.f32 %v3682_v33, %v3682_v33 }
0x1aaf   :  { %v3683_v1 = vmul.f32 %v3681_v34, %v3681_v34  ;;  %v3688_v21 = vsel %vm1690_vm4, %v3684_v26, 0.0 }
0x1ab1   :  { %v3685_v36 = vsel %vm1690_vm4, %v3683_v1, 0.0 }
0x1ab2   :  { %3686 = vadd.xlane.f32.xlu0 %v3685_v36 }
0x1ab6   :  { %3689 = vadd.xlane.f32.xlu0 %v3688_v21 }
0x1b3b   :  { %v3687_v44 = vpop.xlane.xlu0 %3686 }
0x1b3c   :  { %v3691_v45 = vmul.f32 0.03125, %v3687_v44 }
0x1b3e   :  { %v3693_v28 = vadd.f32 1e-05, %v3691_v45 }
0x1b3f   :  { %v3690_v51 = vpop.xlane.xlu0 %3689 }
0x1b40   :  { %6505 = vrsqrt.f32 %v3693_v28  ;;  %v3692_v52 = vmul.f32 0.03125, %v3690_v51 }
0x1b42   :  { %v3694_v54 = vadd.f32 1e-05, %v3692_v52 }
0x1b44   :  { %6507 = vrsqrt.f32 %v3694_v54 }
0x1b4d   :  { %v6506_v56 = vpop.eup %6505 }
0x1b4e   :  { %v3697_v35 = vmul.f32 %v6506_v56, %v3681_v34 }
0x1b50   :  { %v3705_v59 = vmul.f32 %v5630_v58, %v3697_v35 }
0x1b51   :  { %v6508_v3 = vpop.eup %6507 }
0x1b52   :  { %v3713_v6 = vadd.f32 %v5631_v4, %v3705_v59  ;;  %v3698_v29 = vmul.f32 %v6508_v3, %v3682_v33 }
0x1b54   :  { %v3722_v63 = vmul.f32 %v5632_v25, %v3713_v6  ;;  %v3706_v7 = vmul.f32 %v5630_v58, %v3698_v29 }
0x1b56   :  { %v3714_v10 = vadd.f32 %v5631_v4, %v3706_v7  ;;  %v3724_v11 = vmul.f32 %v3722_v63, %v3722_v63 }
0x1b58   :  { %v3723_v32 = vmul.f32 %v5632_v25, %v3714_v10  ;;  %v3726_v12 = vmul.f32 %v3724_v11, %v3722_v63 }
0x1b5a   :  { %v3725_v8 = vmul.f32 %v3723_v32, %v3723_v32  ;;  %v3728_v22 = vmul.f32 0.044715, %v3726_v12 }
0x1b5c   :  { %v3727_v39 = vmul.f32 %v3725_v8, %v3723_v32  ;;  %v3730_v15 = vadd.f32 %v3728_v22, %v3722_v63 }
0x1b5e   :  { %v3729_v9 = vmul.f32 0.044715, %v3727_v39  ;;  %v3732_v62 = vmul.f32 0.7978846, %v3730_v15 }
0x1b60   :  { %v3731_v17 = vadd.f32 %v3729_v9, %v3723_v32  ;;  %6509 = vtanh.f32 %v3732_v62 }
0x1b62   :  { %v3733_v31 = vmul.f32 0.7978846, %v3731_v17 }
0x1b64   :  { %6511 = vtanh.f32 %v3733_v31 }
0x1b6d   :  { %v6510_v34 = vpop.eup %6509 }
0x1b6e   :  { %v3736_v1 = vadd.f32 1.0, %v6510_v34 }
0x1b70   :  { %v3738_v26 = vmul.f32 0.5, %v3736_v1 }
0x1b71   :  { %v6512_v36 = vpop.eup %6511 }
0x1b72   :  { %v3737_v33 = vadd.f32 1.0, %v6512_v36  ;;  %v3740_v23 = vmul.f32 %v3738_v26, %v3722_v63 }
0x1b74   :  { %v3739_v21 = vmul.f32 0.5, %v3737_v33 }
0x1b76   :  { %v3741_v41 = vmul.f32 %v3739_v21, %v3723_v32  ;;  %v6117_v32 = vpop.f32.mrf.mxu0 }
0x1b78   :  { %v3742_v42 = vpack.c.bf16 %v3741_v41, %v3740_v23  ;;  %v3911_v9 = vpop.f32.mrf.mxu0 }
0x1b7a   :  { %6110 = vmatmul.mubr.msk.bf16.vlgmr.msra.gmra.mxu1 %vm1690_vm4, %v3742_v42 }
0x1b7b   :  { %6134 = vmatprep.mubr.msk.bf16.mxu1 %vm7357_vm0, %v7356_v0 }
0x1c3a   :  { %v3803_v44 = vpop.f32.mrf.mxu1 }
0x1c3b   :  { %v3804_v45 = vadd.f32 %v5633_v43, %v3803_v44 }
0x1c3c   :  { %v6111_v28 = vpop.f32.mrf.mxu1 }
0x1c3d   :  { %v5637_v51 = vmul.f32 -1.442695, %v3804_v45 }
0x1c3e   :  { %v3806_v52 = vpop.f32.mrf.mxu1 }
0x1c3f   :  { %6513 = vpow2.f32 %v5637_v51  ;;  %v3807_v54 = vadd.f32 %v5633_v43, %v3806_v52 }
0x1c40   :  { %v6112_v56 = vpop.f32.mrf.mxu1 }
0x1c41   :  { %v5638_v58 = vmul.f32 -1.442695, %v3807_v54 }
0x1c43   :  { %6515 = vpow2.f32 %v5638_v58  ;;  %v5641_v58 = vld [vmem:[%s8743_s11] ss:$0 sm:$0xff] }
0x1c4c   :  { %v6514_v35 = vpop.eup %6513 }
0x1c4d   :  { %v3816_v4 = vadd.f32 1.0, %v6514_v35 }
0x1c4f   :  { %6517 = vrcp.f32 %v3816_v4 }
0x1c50   :  { %v6516_v59 = vpop.eup %6515 }
0x1c51   :  { %v3817_v3 = vadd.f32 1.0, %v6516_v59 }
0x1c53   :  { %6519 = vrcp.f32 %v3817_v3  ;;  %v5642_v3 = vld [vmem:[%s8744_s18] ss:$0 sm:$0xff] }
0x1c5c   :  { %v6518_v25 = vpop.eup %6517 }
0x1c5d   :  { %3824 = vrot.lane.b32.xlu1 %v6518_v25, %s7360_s24 }
0x1c60   :  { %v6520_v6 = vpop.eup %6519 }
0x1c61   :  { %3832 = vrot.lane.b32.xlu1 %v8161_v53, %s7326_s28  ;;  %3826 = vrot.lane.b32.xlu0 %v6520_v6, %s7360_s24 }
0x1c65   :  { %3834 = vrot.lane.b32.xlu1 %v8165_v55, %s7326_s28  ;;  %s8742_s28 = sld [smem:[#allocation124_spill]] }
0x1c6b   :  { %v6407_v43 = vld [vmem:[%s8742_s28 + $0x8] sm:$0xff]  }
0x1c6c   :  { %6119 = vmatpush3.bf16.msra.mxu0 %v6407_v43 }
0x1c6d   :  { %6120 = vmatprep.subr.bf16.mxu0 %v7356_v0 }
0x1ccf   :  { %v3825_v29 = vpop.permute.xlu1 %3824 }
0x1cd0   :  { %v3830_v63 = vmul.f32 %v3825_v29, %v3804_v45 }
0x1cd3   :  { %v3833_v7 = vpop.permute.xlu1 %3832  ;;  %v3827_v10 = vpop.permute.xlu0 %3826 }
0x1cd4   :  { %v3838_v11 = vadd.f32 %v3833_v7, %v3830_v63  ;;  %v3831_v8 = vmul.f32 %v3827_v10, %v3807_v54  ;;  %v6409_v7 = vld [vmem:[%s8745_s6 + $0x18] sm:$0xff]   ;;  %v6410_v10 = vld [vmem:[%s8745_s6 + $0x10] sm:$0xff]  }
0x1cd5   :  { %6127 = vmatpush3.bf16.msra.mxu1 %v6409_v7 }
0x1cd6   :  { %v3840_v12 = vadd.f32 %v3838_v11, %v8338_v13  ;;  %6128 = vmatprep.subr.bf16.mxu1 %v7356_v0  ;;  %v6411_v11 = vld [vmem:[%s8745_s6 + $0x8] sm:$0xff]  }
0x1cd7   :  { %v3835_v22 = vpop.permute.xlu1 %3834 }
0x1cd8   :  { %v3839_v39 = vadd.f32 %v3835_v22, %v3831_v8  ;;  %v8368_v15 = vadd.f32 %v3840_v12, %v8168_v60  ;;  %v5643_v12 = vld [vmem:[#allocation37] ss:$0 sm:$0xff] }
0x1cd9   :  { %6129 = vmatpush3.bf16.msra.mxu1 %v6410_v10 }
0x1cda   :  { %v3841_v62 = vadd.f32 %v3839_v39, %v8334_v2  ;;  %v3920_v17 = vadd.f32 %v3911_v9, %v8368_v15  ;;  %6130 = vmatprep.subr.bf16.mxu1 %v7356_v0 }
0x1cdc   :  { %v3924_v31 = vsel %vm1690_vm4, %v3920_v17, 0.0  ;;  %v8374_v34 = vadd.f32 %v3841_v62, %v8173_v5 }
0x1cdd   :  { %3925 = vadd.xlane.f32.xlu1 %v3924_v31  ;;  %6131 = vmatpush3.bf16.msra.mxu1 %v6411_v11 }
0x1cde   :  { %v3921_v1 = vadd.f32 %v6117_v32, %v8374_v34  ;;  %6132 = vmatprep.subr.bf16.mxu1 %v7356_v0  ;;  %v6412_v32 = vld [vmem:[%s8745_s6] sm:$0xff]  }
0x1ce0   :  { %v3927_v13 = vsel %vm1690_vm4, %v3921_v1, 0.0 }
0x1ce1   :  { %3928 = vadd.xlane.f32.xlu0 %v3927_v13  ;;  %6133 = vmatpush3.bf16.msra.mxu1 %v6412_v32 }
0x1cee   :  { %4136 = vrot.lane.b32.xlu1 %v8161_v53, %s7361_s23  ;;  %v6408_v53 = vld [vmem:[%s8742_s28] sm:$0xff]  }
0x1cef   :  { %6121 = vmatpush3.bf16.msra.mxu0 %v6408_v53 }
0x1cf0   :  { %6138 = vmatprep.subr.bf16.mxu0 %v7356_v0 }
0x1d66   :  { %v3926_v60 = vpop.xlane.xlu1 %3925 }
0x1d67   :  { %v3930_v2 = vmul.f32 0.03125, %v3926_v60 }
0x1d69   :  { %v3932_v36 = vsub.f32 %v3920_v17, %v3930_v2 }
0x1d6a   :  { %v3929_v33 = vpop.xlane.xlu0 %3928 }
0x1d6b   :  { %v3931_v26 = vmul.f32 0.03125, %v3929_v33  ;;  %v3934_v21 = vmul.f32 %v3932_v36, %v3932_v36 }
0x1d6d   :  { %v3933_v23 = vsub.f32 %v3921_v1, %v3931_v26  ;;  %v3936_v5 = vsel %vm1690_vm4, %v3934_v21, 0.0 }
0x1d6e   :  { %3937 = vadd.xlane.f32.xlu0 %v3936_v5 }
0x1d6f   :  { %v3935_v41 = vmul.f32 %v3933_v23, %v3933_v23 }
0x1d71   :  { %v3939_v42 = vsel %vm1690_vm4, %v3935_v41, 0.0 }
0x1d72   :  { %3940 = vadd.xlane.f32.xlu0 %v3939_v42 }
0x1d88   :  { %4138 = vrot.lane.b32.xlu0 %v8165_v55, %s7361_s23  ;;  %s8748_s23 = sld [smem:[#allocation127_spill]] }
0x1df7   :  { %v3938_v44 = vpop.xlane.xlu0 %3937 }
0x1df8   :  { %v3942_v45 = vmul.f32 0.03125, %v3938_v44 }
0x1dfa   :  { %v3944_v28 = vadd.f32 1e-05, %v3942_v45 }
0x1dfb   :  { %v3941_v51 = vpop.xlane.xlu0 %3940 }
0x1dfc   :  { %6521 = vrsqrt.f32 %v3944_v28  ;;  %v3943_v52 = vmul.f32 0.03125, %v3941_v51 }
0x1dfe   :  { %v3945_v54 = vadd.f32 1e-05, %v3943_v52  ;;  %v6413_v52 = vld [vmem:[%s8746_s22 + $0x8] sm:$0xff]  }
0x1e00   :  { %6523 = vrsqrt.f32 %v3945_v54  ;;  %v6414_v54 = vld [vmem:[%s8746_s22] sm:$0xff]  }
0x1e09   :  { %v6522_v55 = vpop.eup %6521 }
0x1e0a   :  { %v3948_v56 = vmul.f32 %v6522_v55, %v3932_v36  ;;  %v5647_v55 = vld [vmem:[#allocation39] ss:$0 sm:$0xff] }
0x1e0c   :  { %v3956_v59 = vmul.f32 %v5641_v58, %v3948_v56 }
0x1e0d   :  { %v6524_v35 = vpop.eup %6523 }
0x1e0e   :  { %v3949_v4 = vmul.f32 %v6524_v35, %v3933_v23  ;;  %v3964_v6 = vadd.f32 %v5642_v3, %v3956_v59  ;;  %v4137_v35 = vpop.permute.xlu1 %4136 }
0x1e10   :  { %v3957_v25 = vmul.f32 %v5641_v58, %v3949_v4 }
0x1e12   :  { %v3965_v29 = vadd.f32 %v5642_v3, %v3957_v25 }
0x1e14   :  { %v3966_v63 = vpack.c.bf16 %v3965_v29, %v3964_v6  ;;  %v4139_v6 = vpop.permute.xlu0 %4138 }
0x1e16   :  { %6123 = vmatmul.mubr.msk.bf16.vlgmr.msra.gmra.mxu0 %vm1690_vm4, %v3966_v63 }
0x1e17   :  { %6142 = vmatprep.mubr.msk.bf16.mxu0 %vm7357_vm0, %v7356_v0  ;;  %6139 = vmatpush3.bf16.msra.mxu0 %v6413_v52 }
0x1e18   :  { %6140 = vmatprep.subr.bf16.mxu0 %v7356_v0 }
0x1e1b   :  { %6141 = vmatpush3.bf16.msra.mxu0 %v6414_v54 }
0x1ed6   :  { %v4027_v8 = vpop.f32.mrf.mxu0 }
0x1ed7   :  { %v4028_v22 = vadd.f32 %v5643_v12, %v4027_v8  ;;  %v4216_v8 = vld [vmem:[%s8748_s23] sm:$0xff] }
0x1ed8   :  { %v6124_v39 = vpop.f32.mrf.mxu0 }
0x1ed9   :  { %v4034_v9 = vmul.f32 %v4028_v22, %v4028_v22  ;;  %v5653_v39 = vld [vmem:[#allocation40] ss:$0 sm:$0xff] }
0x1eda   :  { %v4030_v62 = vpop.f32.mrf.mxu0 }
0x1edb   :  { %v4036_v17 = vmul.f32 %v4034_v9, %v4028_v22  ;;  %v4031_v31 = vadd.f32 %v5643_v12, %v4030_v62  ;;  %v4220_v12 = vld [vmem:[%s8747_s13] sm:$0xff] }
0x1edc   :  { %v6125_v1 = vpop.f32.mrf.mxu0 }
0x1edd   :  { %v4038_v13 = vmul.f32 0.044715, %v4036_v17  ;;  %v4035_v60 = vmul.f32 %v4031_v31, %v4031_v31  ;;  %v4218_v17 = vld [vmem:[%s8748_s23 + $0x10] sm:$0xff] }
0x1edf   :  { %v4040_v2 = vadd.f32 %v4038_v13, %v4028_v22  ;;  %v4037_v36 = vmul.f32 %v4035_v60, %v4031_v31  ;;  %v4221_v60 = vld [vmem:[%s8747_s13 + $0x8] sm:$0xff] }
0x1ee1   :  { %v4042_v33 = vmul.f32 0.7978846, %v4040_v2  ;;  %v4039_v26 = vmul.f32 0.044715, %v4037_v36  ;;  %v4430_v2 = vld [vmem:[%s8749_s26] sm:$0xff]  ;;  %v4222_v36 = vld [vmem:[%s8747_s13 + $0x10] sm:$0xff] }
0x1ee3   :  { %6525 = vtanh.f32 %v4042_v33  ;;  %v4041_v21 = vadd.f32 %v4039_v26, %v4031_v31  ;;  %v4223_v33 = vld [vmem:[%s8747_s13 + $0x18] sm:$0xff]  ;;  %v6586_v26 = vld [vmem:[%s8700_s25] sm:$0xff] }
0x1ee5   :  { %v4043_v23 = vmul.f32 0.7978846, %v4041_v21  ;;  %v8431_v21 = vld [vmem:[%s8700_s25 + $0x8] sm:$0xff] }
0x1ee7   :  { %6527 = vtanh.f32 %v4043_v23  ;;  %v8436_v23 = vld [vmem:[%s8700_s25 + $0x10] sm:$0xff] }
0x1ef0   :  { %v6526_v5 = vpop.eup %6525 }
0x1ef1   :  { %v4046_v41 = vadd.f32 1.0, %v6526_v5  ;;  %v8441_v5 = vld [vmem:[%s8700_s25 + $0x18] sm:$0xff]  ;;  %s8750_s25 = sld [smem:[#allocation133_spill]] }
0x1ef3   :  { %v4048_v43 = vmul.f32 0.5, %v4046_v41 }
0x1ef4   :  { %v6528_v42 = vpop.eup %6527 }
0x1ef5   :  { %v4047_v53 = vadd.f32 1.0, %v6528_v42  ;;  %v4050_v45 = vmul.f32 %v4048_v43, %v4028_v22 }
0x1ef7   :  { %v4049_v44 = vmul.f32 0.5, %v4047_v53 }
0x1ef9   :  { %v4051_v28 = vmul.f32 %v4049_v44, %v4031_v31  ;;  %v4219_v31 = vld [vmem:[%s8748_s23 + $0x18] sm:$0xff] }
0x1efb   :  { %v4052_v51 = vpack.c.bf16 %v4051_v28, %v4050_v45 }
0x1efd   :  { %6135 = vmatmul.mubr.msk.bf16.vlgmr.msra.gmra.mxu1 %vm2514_vm5, %v4052_v51 }
0x1efe   :  { %6160 = vmatprep.mubr.msk.f32.mxu1 %vm1148_vm3, %v4216_v8 }
0x1fbd   :  { %v4129_v56 = vpop.f32.mrf.mxu1 }
0x1fbe   :  { %v4130_v58 = vadd.f32 %v5647_v55, %v4129_v56 }
0x1fbf   :  { %v6136_v4 = vpop.f32.mrf.mxu1 }
0x1fc0   :  { %v4142_v59 = vadd.f32 %v4137_v35, %v4130_v58 }
0x1fc1   :  { %v4132_v3 = vpop.f32.mrf.mxu1 }
0x1fc2   :  { %v4133_v25 = vadd.f32 %v5647_v55, %v4132_v3  ;;  %v4144_v63 = vadd.f32 %v4142_v59, %v8368_v15 }
0x1fc3   :  { %v6137_v29 = vpop.f32.mrf.mxu1 }
0x1fc4   :  { %v4143_v7 = vadd.f32 %v4139_v6, %v4133_v25  ;;  %v4146_v0 = vadd.f32 %v4144_v63, %v8132_v57 }
0x1fc6   :  { %v4145_v10 = vadd.f32 %v4143_v7, %v8374_v34 }
0x1fc8   :  { %v4147_v11 = vadd.f32 %v4145_v10, %v8135_v61  ;;  %v4217_v61 = vld [vmem:[%s8748_s23 + $0x8] sm:$0xff] }
0x1fca   :  { %v4148_v32 = vpack.c.bf16 %v4147_v11, %v4146_v0 }
0x1fcc   :  { %6143 = vmatmul.mubr.msk.bf16.vlgmr.msra.gmra.mxu0 %vm1690_vm4, %v4148_v32 }
0x1fcd   :  { %6150 = vmatprep.mubr.msk.f32.mxu0 %vm1148_vm3, %v4220_v12 }
0x208c   :  { %v4209_v22 = vpop.f32.mrf.mxu0 }
0x208d   :  { %v4210_v62 = vadd.f32 %v5653_v39, %v4209_v22 }
0x208e   :  { %v6144_v15 = vpop.f32.mrf.mxu0 }
0x2090   :  { %v4212_v34 = vpop.f32.mrf.mxu0 }
0x2091   :  { %v4213_v9 = vadd.f32 %v5653_v39, %v4212_v34 }
0x2092   :  { %v6145_v57 = vpop.f32.mrf.mxu0 }
0x2093   :  { %4228 = vrot.lane.b32.xlu1 %v4213_v9, %s7358_s3  ;;  %6156 = vmatprep.subr.mxu1 %v4213_v9 }
0x2094   :  { %6157 = vmatpush3.msra.mxu1 %v4213_v9 }
0x2095   :  { %6158 = vmatprep.subr.mxu1 %v4210_v62 }
0x2096   :  { %6159 = vmatpush3.msra.mxu1 %v4210_v62 }
0x2097   :  { %4226 = vrot.lane.b32.xlu1 %v4210_v62, %s7358_s3  ;;  %6161 = vmatmul.mubr.msk.f32.vlgmr.msra.gmra.mxu1 %vm1148_vm3, %v4217_v61 }
0x2098   :  { %6163 = vmatprep.mubr.msk.f32.mxu1 %vm1148_vm3, %v4218_v17 }
0x209b   :  { %6164 = vmatmul.mubr.msk.f32.gmra.mxu1 %vm1148_vm3, %v4219_v31 }
0x2105   :  { %v4229_v1 = vpop.permute.xlu1 %4228 }
0x2106   :  { %6146 = vmatprep.subr.mxu0 %v4229_v1 }
0x2107   :  { %6147 = vmatpush3.msra.mxu0 %v4229_v1 }
0x2109   :  { %v4227_v13 = vpop.permute.xlu1 %4226 }
0x210a   :  { %6148 = vmatprep.subr.mxu0 %v4227_v13 }
0x210b   :  { %6149 = vmatpush3.msra.mxu0 %v4227_v13 }
0x210c   :  { %6151 = vmatmul.mubr.msk.f32.vlgmr.msra.gmra.mxu0 %vm1148_vm3, %v4221_v60  ;;  %6166 = vmatprep.subr.mxu0 %v4430_v2 }
0x210d   :  { %6153 = vmatprep.mubr.msk.f32.mxu0 %vm1148_vm3, %v4222_v36  ;;  %6167 = vmatpush3.msra.mxu0 %v4430_v2 }
0x2110   :  { %6154 = vmatmul.mubr.msk.f32.gmra.mxu0 %vm1148_vm3, %v4223_v33 }
0x2111   :  { %6168 = vmatprep.mubr.msk.f32.mxu0 %vm787_vm2, %v6586_v26 }
0x2114   :  { %6169 = vmatmul.mubr.msk.f32.vlgmr.msra.gmra.mxu0 %vm787_vm2, %v8431_v21 }
0x2115   :  { %6171 = vmatprep.mubr.msk.f32.mxu0 %vm787_vm2, %v8436_v23 }
0x2118   :  { %6172 = vmatmul.mubr.msk.f32.gmra.mxu0 %vm787_vm2, %v8441_v5 }
0x2119   :  { %6182 = vmatprep.mubr.msk.f32.mxu0 %vm787_vm2, %v6586_v26  ;;  %v6415_v26 = vld [vmem:[%s8750_s25] sm:$0xff]  }
0x211a   :  { %6174 = vmatprep.subr.bf16.mxu1 %v6415_v26 }
0x211b   :  { %6175 = vmatpush3.bf16.msra.mxu1 %v6415_v26 }
0x2157   :  { %v6162_v41 = vpop.f32.mrf.mxu1 }
0x2159   :  { %v4407_v42 = vpop.f32.mrf.mxu1 }
0x215b   :  { %v6165_v44 = vpop.f32.mrf.mxu1 }
0x215d   :  { %v4417_v54 = vpop.f32.mrf.mxu1 }
0x21cc   :  { %v6152_v43 = vpop.f32.mrf.mxu0 }
0x21cd   :  { %v4413_v45 = vadd.f32 %v6162_v41, %v6152_v43  ;;  %v4781_v41 = vld [vmem:[%s8751_s1] sm:$0xff] }
0x21ce   :  { %v4310_v53 = vpop.f32.mrf.mxu0  ;;  %6180 = vmatprep.subr.mxu0 %v4781_v41 }
0x21cf   :  { %v4408_v51 = vadd.f32 %v4407_v42, %v4310_v53  ;;  %v8447_v55 = vadd.f32 %v4413_v45, %v8086_v19  ;;  %6181 = vmatpush3.msra.mxu0 %v4781_v41 }
0x21d0   :  { %v6155_v28 = vpop.f32.mrf.mxu0  ;;  %6183 = vmatmul.mubr.msk.f32.vlgmr.msra.gmra.mxu0 %vm787_vm2, %v8431_v21 }
0x21d1   :  { %v8451_v4 = vadd.f32 %v4408_v51, %v8093_v20  ;;  %v4423_v3 = vadd.f32 %v6165_v44, %v6155_v28  ;;  %6185 = vmatprep.mubr.msk.f32.mxu0 %vm787_vm2, %v8436_v23 }
0x21d2   :  { %v4320_v52 = vpop.f32.mrf.mxu0 }
0x21d3   :  { %v4418_v58 = vadd.f32 %v4417_v54, %v4320_v52  ;;  %v8460_v10 = vadd.f32 %v4423_v3, %v8076_v14  ;;  %v5670_v3 = vld [vmem:[%s8753_s5] ss:$0 sm:$0xff] }
0x21d4   :  { %v6170_v56 = vpop.f32.mrf.mxu0  ;;  %6186 = vmatmul.mubr.msk.f32.gmra.mxu0 %vm787_vm2, %v8441_v5  ;;  %v5669_v5 = vld [vmem:[%s8752_s8] ss:$0 sm:$0xff] }
0x21d5   :  { %v4517_v35 = vadd.f32 %v6170_v56, %v8447_v55  ;;  %v8456_v63 = vadd.f32 %v4418_v58, %v8079_v16 }
0x21d6   :  { %v4497_v59 = vpop.f32.mrf.mxu0 }
0x21d7   :  { %v4516_v25 = vadd.f32 %v4497_v59, %v8451_v4  ;;  %v4525_v6 = vsel %vm1148_vm3, %v4517_v35, 0.0 }
0x21d8   :  { %v6173_v29 = vpop.f32.mrf.mxu0  ;;  %4526 = vadd.xlane.f32.xlu0 %v4525_v6 }
0x21d9   :  { %v4522_v19 = vsel %vm1148_vm3, %v4516_v25, 0.0  ;;  %v4519_v0 = vadd.f32 %v6173_v29, %v8460_v10  ;;  %v5671_v29 = vld [vmem:[#allocation42] ss:$0 sm:$0xff] }
0x21da   :  { %v4507_v7 = vpop.f32.mrf.mxu0  ;;  %4523 = vadd.xlane.f32.xlu1 %v4522_v19 }
0x21db   :  { %v4518_v20 = vadd.f32 %v4507_v7, %v8456_v63  ;;  %v4531_v32 = vsel %vm1148_vm3, %v4519_v0, 0.0 }
0x21dd   :  { %v4528_v11 = vsel %vm1148_vm3, %v4518_v20, 0.0 }
0x21de   :  { %4529 = vadd.xlane.f32.xlu0 %v4528_v11 }
0x21e2   :  { %4532 = vadd.xlane.f32.xlu0 %v4531_v32 }
0x2261   :  { %v4527_v12 = vpop.xlane.xlu0 %4526 }
0x2262   :  { %v4535_v16 = vmul.f32 0.0625, %v4527_v12 }
0x2263   :  { %v4524_v8 = vpop.xlane.xlu1 %4523 }
0x2264   :  { %v4539_v22 = vsub.f32 %v4517_v35, %v4535_v16  ;;  %v4534_v15 = vmul.f32 0.0625, %v4524_v8 }
0x2266   :  { %v4538_v39 = vsub.f32 %v4516_v25, %v4534_v15  ;;  %v4543_v34 = vmul.f32 %v4539_v22, %v4539_v22 }
0x2267   :  { %v4530_v9 = vpop.xlane.xlu0 %4529 }
0x2268   :  { %v4536_v14 = vmul.f32 0.0625, %v4530_v9  ;;  %v4549_v57 = vsel %vm1148_vm3, %v4543_v34, 0.0  ;;  %v4542_v62 = vmul.f32 %v4538_v39, %v4538_v39 }
0x2269   :  { %4550 = vadd.xlane.f32.xlu0 %v4549_v57 }
0x226a   :  { %v4540_v61 = vsub.f32 %v4518_v20, %v4536_v14  ;;  %v4546_v17 = vsel %vm1148_vm3, %v4542_v62, 0.0 }
0x226b   :  { %v4533_v31 = vpop.xlane.xlu0 %4532  ;;  %4547 = vadd.xlane.f32.xlu1 %v4546_v17 }
0x226c   :  { %v4537_v1 = vmul.f32 0.0625, %v4533_v31  ;;  %v4544_v13 = vmul.f32 %v4540_v61, %v4540_v61 }
0x226e   :  { %v4541_v60 = vsub.f32 %v4519_v0, %v4537_v1  ;;  %v4552_v2 = vsel %vm1148_vm3, %v4544_v13, 0.0 }
0x226f   :  { %4553 = vadd.xlane.f32.xlu1 %v4552_v2 }
0x2270   :  { %v4545_v36 = vmul.f32 %v4541_v60, %v4541_v60 }
0x2272   :  { %v4555_v33 = vsel %vm1148_vm3, %v4545_v36, 0.0 }
0x2273   :  { %4556 = vadd.xlane.f32.xlu0 %v4555_v33 }
0x2280   :  { %4757 = vrot.lane.b32.xlu1 %v8019_v27, %s7360_s24 }
0x2289   :  { %4759 = vrot.lane.b32.xlu0 %v8024_v37, %s7360_s24 }
0x22f2   :  { %v4551_v42 = vpop.xlane.xlu0 %4550 }
0x22f3   :  { %v4559_v43 = vmul.f32 0.0625, %v4551_v42 }
0x22f4   :  { %v4548_v53 = vpop.xlane.xlu1 %4547 }
0x22f5   :  { %v4563_v44 = vadd.f32 1e-05, %v4559_v43  ;;  %v4558_v45 = vmul.f32 0.0625, %v4548_v53 }
0x22f7   :  { %6529 = vrsqrt.f32 %v4563_v44  ;;  %v4562_v28 = vadd.f32 1e-05, %v4558_v45 }
0x22f8   :  { %v4554_v51 = vpop.xlane.xlu1 %4553 }
0x22f9   :  { %6531 = vrsqrt.f32 %v4562_v28  ;;  %v4560_v52 = vmul.f32 0.0625, %v4554_v51 }
0x22fb   :  { %v4564_v54 = vadd.f32 1e-05, %v4560_v52 }
0x22fc   :  { %v4557_v21 = vpop.xlane.xlu0 %4556 }
0x22fd   :  { %6533 = vrsqrt.f32 %v4564_v54  ;;  %v4561_v56 = vmul.f32 0.0625, %v4557_v21 }
0x22ff   :  { %v4565_v23 = vadd.f32 1e-05, %v4561_v56 }
0x2301   :  { %6535 = vrsqrt.f32 %v4565_v23 }
0x2304   :  { %v6530_v58 = vpop.eup %6529 }
0x2305   :  { %v4571_v35 = vmul.f32 %v6530_v58, %v4539_v22 }
0x2306   :  { %v6532_v59 = vpop.eup %6531 }
0x2307   :  { %v4581_v25 = vmul.f32 %v5669_v5, %v4571_v35  ;;  %v4570_v6 = vmul.f32 %v6532_v59, %v4538_v39 }
0x2309   :  { %v4580_v19 = vmul.f32 %v5669_v5, %v4570_v6  ;;  %v4591_v7 = vadd.f32 %v5670_v3, %v4581_v25 }
0x230a   :  { %v6534_v20 = vpop.eup %6533 }
0x230b   :  { %v4572_v0 = vmul.f32 %v6534_v20, %v4540_v61  ;;  %v4590_v11 = vadd.f32 %v5670_v3, %v4580_v19  ;;  %v4602_v32 = vmul.f32 %v5671_v29, %v4591_v7 }
0x230d   :  { %v4582_v12 = vmul.f32 %v5669_v5, %v4572_v0  ;;  %v4601_v16 = vmul.f32 %v5671_v29, %v4590_v11  ;;  %v4606_v8 = vmul.f32 %v4602_v32, %v4602_v32 }
0x230e   :  { %v6536_v15 = vpop.eup %6535 }
0x230f   :  { %v4592_v34 = vadd.f32 %v5670_v3, %v4582_v12  ;;  %v4573_v9 = vmul.f32 %v6536_v15, %v4541_v60  ;;  %v4605_v14 = vmul.f32 %v4601_v16, %v4601_v16  ;;  %v4610_v57 = vmul.f32 %v4606_v8, %v4602_v32  ;;  %v5672_v12 = vld [vmem:[#allocation43] ss:$0 sm:$0xff] }
0x2311   :  { %v4603_v22 = vmul.f32 %v5671_v29, %v4592_v34  ;;  %v4583_v62 = vmul.f32 %v5669_v5, %v4573_v9  ;;  %v4609_v17 = vmul.f32 %v4605_v14, %v4601_v16  ;;  %v4614_v31 = vmul.f32 0.044715, %v4610_v57 }
0x2313   :  { %v4607_v39 = vmul.f32 %v4603_v22, %v4603_v22  ;;  %v4593_v1 = vadd.f32 %v5670_v3, %v4583_v62  ;;  %v4613_v13 = vmul.f32 0.044715, %v4609_v17  ;;  %v4618_v2 = vadd.f32 %v4614_v31, %v4602_v32 }
0x2315   :  { %v4604_v36 = vmul.f32 %v5671_v29, %v4593_v1  ;;  %v4617_v61 = vadd.f32 %v4613_v13, %v4601_v16  ;;  %v4622_v33 = vmul.f32 0.7978846, %v4618_v2  ;;  %v4611_v26 = vmul.f32 %v4607_v39, %v4603_v22 }
0x2317   :  { %v4608_v41 = vmul.f32 %v4604_v36, %v4604_v36  ;;  %v4621_v42 = vmul.f32 0.7978846, %v4617_v61  ;;  %6537 = vtanh.f32 %v4622_v33  ;;  %v4615_v43 = vmul.f32 0.044715, %v4611_v26 }
0x2319   :  { %6539 = vtanh.f32 %v4621_v42  ;;  %v4612_v60 = vmul.f32 %v4608_v41, %v4604_v36  ;;  %v4619_v53 = vadd.f32 %v4615_v43, %v4603_v22 }
0x231b   :  { %v4616_v44 = vmul.f32 0.044715, %v4612_v60  ;;  %v4623_v45 = vmul.f32 0.7978846, %v4619_v53  ;;  %v4758_v53 = vpop.permute.xlu1 %4757 }
0x231d   :  { %v4620_v28 = vadd.f32 %v4616_v44, %v4604_v36  ;;  %6541 = vtanh.f32 %v4623_v45  ;;  %v4760_v45 = vpop.permute.xlu0 %4759 }
0x231f   :  { %v4624_v51 = vmul.f32 0.7978846, %v4620_v28 }
0x2321   :  { %6543 = vtanh.f32 %v4624_v51 }
0x2324   :  { %v6538_v52 = vpop.eup %6537 }
0x2325   :  { %v4630_v54 = vadd.f32 1.0, %v6538_v52 }
0x2326   :  { %v6540_v21 = vpop.eup %6539 }
0x2327   :  { %v4629_v56 = vadd.f32 1.0, %v6540_v21  ;;  %v4634_v23 = vmul.f32 0.5, %v4630_v54  ;;  %v6184_v54 = vpop.f32.mrf.mxu0 }
0x2329   :  { %v4633_v58 = vmul.f32 0.5, %v4629_v56  ;;  %v4638_v59 = vmul.f32 %v4634_v23, %v4602_v32 }
0x232a   :  { %v6542_v5 = vpop.eup %6541 }
0x232b   :  { %v4637_v35 = vmul.f32 %v4633_v58, %v4601_v16  ;;  %v4631_v3 = vadd.f32 1.0, %v6542_v5 }
0x232d   :  { %v4641_v25 = vpack.c.bf16 %v4638_v59, %v4637_v35  ;;  %v4635_v19 = vmul.f32 0.5, %v4631_v3  ;;  %v4848_v3 = vpop.f32.mrf.mxu0 }
0x232e   :  { %v6544_v6 = vpop.eup %6543 }
0x232f   :  { %6176 = vmatprep.mubr.msk.bf16.mxu1 %vm1148_vm3, %v4641_v25  ;;  %v4632_v29 = vadd.f32 1.0, %v6544_v6  ;;  %v4639_v20 = vmul.f32 %v4635_v19, %v4603_v22 }
0x2331   :  { %v4636_v7 = vmul.f32 0.5, %v4632_v29 }
0x2333   :  { %v4640_v0 = vmul.f32 %v4636_v7, %v4604_v36 }
0x2335   :  { %v4642_v11 = vpack.c.bf16 %v4640_v0, %v4639_v20 }
0x2337   :  { %6177 = vmatmul.mubr.msk.bf16.vlgmr.msra.gmra.mxu1 %vm1148_vm3, %v4642_v11  ;;  %v6187_v11 = vpop.f32.mrf.mxu0 }
0x23f7   :  { %v6178_v8 = vpop.f32.mrf.mxu1 }
0x23f8   :  { %v4707_v15 = vadd.f32 %v6178_v8, %v5672_v12 }
0x23f9   :  { %v4698_v34 = vpop.f32.mrf.mxu1 }
0x23fa   :  { %v5678_v9 = vmul.f32 -1.442695, %v4707_v15  ;;  %v4699_v16 = vadd.f32 %v5672_v12, %v4698_v34  ;;  %v4858_v34 = vpop.f32.mrf.mxu0 }
0x23fb   :  { %v6179_v32 = vpop.f32.mrf.mxu1 }
0x23fc   :  { %6545 = vpow2.f32 %v5678_v9  ;;  %v5676_v14 = vmul.f32 -1.442695, %v4699_v16  ;;  %v4710_v57 = vadd.f32 %v6179_v32, %v5672_v12 }
0x23fd   :  { %v4701_v62 = vpop.f32.mrf.mxu1 }
0x23fe   :  { %6547 = vpow2.f32 %v5676_v14  ;;  %v5679_v17 = vmul.f32 -1.442695, %v4710_v57  ;;  %v4702_v31 = vadd.f32 %v5672_v12, %v4701_v62 }
0x2400   :  { %6549 = vpow2.f32 %v5679_v17  ;;  %v5677_v22 = vmul.f32 -1.442695, %v4702_v31 }
0x2402   :  { %6551 = vpow2.f32 %v5677_v22 }
0x2409   :  { %v6546_v39 = vpop.eup %6545 }
0x240a   :  { %v4727_v1 = vadd.f32 1.0, %v6546_v39 }
0x240b   :  { %v6548_v13 = vpop.eup %6547 }
0x240c   :  { %6553 = vrcp.f32 %v4727_v1  ;;  %v4725_v2 = vadd.f32 1.0, %v6548_v13 }
0x240d   :  { %v6550_v36 = vpop.eup %6549 }
0x240e   :  { %6555 = vrcp.f32 %v4725_v2  ;;  %v4728_v33 = vadd.f32 1.0, %v6550_v36 }
0x240f   :  { %v6552_v61 = vpop.eup %6551 }
0x2410   :  { %v4726_v26 = vadd.f32 1.0, %v6552_v61 }
0x2412   :  { %6557 = vrcp.f32 %v4726_v26 }
0x2413   :  { %6559 = vrcp.f32 %v4728_v33 }
0x2419   :  { %v6554_v41 = vpop.eup %6553 }
0x241a   :  { %4745 = vrot.lane.b32.xlu1 %v6554_v41, %s7358_s3 }
0x241b   :  { %v6556_v42 = vpop.eup %6555 }
0x241e   :  { %4741 = vrot.lane.b32.xlu1 %v6556_v42, %s7358_s3 }
0x241f   :  { %v6558_v43 = vpop.eup %6557 }
0x2420   :  { %4743 = vrot.lane.b32.xlu0 %v6558_v43, %s7358_s3  ;;  %v6560_v60 = vpop.eup %6559 }
0x2422   :  { %4747 = vrot.lane.b32.xlu1 %v6560_v60, %s7358_s3  ;;  %s8754_s3 = sld [smem:[#allocation136_spill]] }
0x2424   :  { %4763 = vrot.lane.b32.xlu0 %v8035_v40, %s7360_s24 }
0x2426   :  { %4761 = vrot.lane.b32.xlu1 %v8016_v18, %s7360_s24  ;;  %s7362_s24 = smov 80  }
0x248c   :  { %v4746_v44 = vpop.permute.xlu1 %4745 }
0x248d   :  { %v4755_v25 = vmul.f32 %v4746_v44, %v4707_v15 }
0x2490   :  { %v4742_v28 = vpop.permute.xlu1 %4741 }
0x2491   :  { %v4753_v51 = vmul.f32 %v4742_v28, %v4699_v16 }
0x2492   :  { %v4744_v52 = vpop.permute.xlu0 %4743 }
0x2493   :  { %v4769_v21 = vadd.f32 %v4758_v53, %v4753_v51  ;;  %v4754_v56 = vmul.f32 %v4744_v52, %v4702_v31  ;;  %v6416_v53 = vld [vmem:[%s8754_s3] sm:$0xff]  }
0x2494   :  { %v4748_v23 = vpop.permute.xlu1 %4747  ;;  %6188 = vmatprep.subr.bf16.mxu1 %v6416_v53 }
0x2495   :  { %v4770_v58 = vadd.f32 %v4760_v45, %v4754_v56  ;;  %v4756_v5 = vmul.f32 %v4748_v23, %v4710_v57  ;;  %v4773_v35 = vadd.f32 %v4769_v21, %v8451_v4  ;;  %6189 = vmatpush3.bf16.msra.mxu1 %v6416_v53 }
0x2496   :  { %v4764_v59 = vpop.permute.xlu0 %4763 }
0x2497   :  { %v8496_v6 = vadd.f32 %v4773_v35, %v8030_v24  ;;  %v4774_v19 = vadd.f32 %v4770_v58, %v8447_v55  ;;  %v4772_v7 = vadd.f32 %v4764_v59, %v4756_v5  ;;  %v5684_v35 = vld [vmem:[%s8755_s2] ss:$0 sm:$0xff] }
0x2498   :  { %v4762_v29 = vpop.permute.xlu1 %4761 }
0x2499   :  { %v4867_v20 = vadd.f32 %v4848_v3, %v8496_v6  ;;  %v4771_v0 = vadd.f32 %v4762_v29, %v4755_v25  ;;  %v8503_v4 = vadd.f32 %v4774_v19, %v8039_v30  ;;  %v4776_v15 = vadd.f32 %v4772_v7, %v8460_v10  ;;  %v5685_v19 = vld [vmem:[%s8756_s17] ss:$0 sm:$0xff] }
0x249b   :  { %v4775_v12 = vadd.f32 %v4771_v0, %v8456_v63  ;;  %v4873_v8 = vsel %vm1148_vm3, %v4867_v20, 0.0  ;;  %v4868_v9 = vadd.f32 %v6184_v54, %v8503_v4  ;;  %v8512_v16 = vadd.f32 %v4776_v15, %v8045_v46 }
0x249c   :  { %4874 = vadd.xlane.f32.xlu1 %v4873_v8 }
0x249d   :  { %v8507_v24 = vadd.f32 %v4775_v12, %v8027_v38  ;;  %v4870_v32 = vadd.f32 %v6187_v11, %v8512_v16  ;;  %v4876_v30 = vsel %vm1148_vm3, %v4868_v9, 0.0 }
0x249f   :  { %v4869_v55 = vadd.f32 %v4858_v34, %v8507_v24  ;;  %v4882_v10 = vsel %vm1148_vm3, %v4870_v32, 0.0 }
0x24a1   :  { %v4879_v63 = vsel %vm1148_vm3, %v4869_v55, 0.0 }
0x24a2   :  { %4880 = vadd.xlane.f32.xlu0 %v4879_v63 }
0x24a6   :  { %4877 = vadd.xlane.f32.xlu0 %v4876_v30  ;;  %v6418_v30 = vld [vmem:[%s8757_s7] sm:$0xff]  }
0x24aa   :  { %4883 = vadd.xlane.f32.xlu0 %v4882_v10  ;;  %v5686_v10 = vld [vmem:[#allocation45] ss:$0 sm:$0xff] }
0x2525   :  { %v4875_v38 = vpop.xlane.xlu1 %4874 }
0x2526   :  { %v4885_v14 = vmul.f32 0.0625, %v4875_v38 }
0x2528   :  { %v4889_v57 = vsub.f32 %v4867_v20, %v4885_v14 }
0x252a   :  { %v4893_v62 = vmul.f32 %v4889_v57, %v4889_v57 }
0x252b   :  { %v4881_v17 = vpop.xlane.xlu0 %4880 }
0x252c   :  { %v4887_v31 = vmul.f32 0.0625, %v4881_v17  ;;  %v4897_v46 = vsel %vm1148_vm3, %v4893_v62, 0.0 }
0x252d   :  { %4898 = vadd.xlane.f32.xlu1 %v4897_v46 }
0x252e   :  { %v4891_v22 = vsub.f32 %v4869_v55, %v4887_v31 }
0x252f   :  { %v4878_v39 = vpop.xlane.xlu0 %4877 }
0x2530   :  { %v4886_v1 = vmul.f32 0.0625, %v4878_v39  ;;  %v4895_v13 = vmul.f32 %v4891_v22, %v4891_v22 }
0x2532   :  { %v4890_v2 = vsub.f32 %v4868_v9, %v4886_v1  ;;  %v4903_v36 = vsel %vm1148_vm3, %v4895_v13, 0.0 }
0x2533   :  { %v4884_v61 = vpop.xlane.xlu0 %4883  ;;  %4904 = vadd.xlane.f32.xlu1 %v4903_v36 }
0x2534   :  { %v4888_v33 = vmul.f32 0.0625, %v4884_v61  ;;  %v4894_v26 = vmul.f32 %v4890_v2, %v4890_v2 }
0x2536   :  { %v4892_v41 = vsub.f32 %v4870_v32, %v4888_v33  ;;  %v4900_v42 = vsel %vm1148_vm3, %v4894_v26, 0.0  ;;  %v6417_v32 = vld [vmem:[%s8757_s7 + $0x8] sm:$0xff]  }
0x2537   :  { %4901 = vadd.xlane.f32.xlu0 %v4900_v42  ;;  %6194 = vmatprep.subr.bf16.mxu0 %v6417_v32 }
0x2538   :  { %v4896_v43 = vmul.f32 %v4892_v41, %v4892_v41  ;;  %6195 = vmatpush3.bf16.msra.mxu0 %v6417_v32 }
0x2539   :  { %6196 = vmatprep.subr.bf16.mxu0 %v6418_v30 }
0x253a   :  { %v4906_v60 = vsel %vm1148_vm3, %v4896_v43, 0.0 }
0x253b   :  { %4907 = vadd.xlane.f32.xlu0 %v4906_v60 }
0x253c   :  { %6197 = vmatpush3.bf16.msra.mxu0 %v6418_v30 }
0x2544   :  { %5133 = vrot.lane.b32.xlu1 %v8019_v27, %s7362_s24 }
0x2548   :  { %5137 = vrot.lane.b32.xlu1 %v8016_v18, %s7362_s24 }
0x254c   :  { %5139 = vrot.lane.b32.xlu1 %v8035_v40, %s7362_s24 }
0x2551   :  { %5135 = vrot.lane.b32.xlu0 %v8024_v37, %s7362_s24 }
0x25b6   :  { %v4899_v44 = vpop.xlane.xlu1 %4898 }
0x25b7   :  { %v4909_v45 = vmul.f32 0.0625, %v4899_v44 }
0x25b9   :  { %v4913_v28 = vadd.f32 1e-05, %v4909_v45 }
0x25bb   :  { %6561 = vrsqrt.f32 %v4913_v28 }
0x25bc   :  { %v4905_v51 = vpop.xlane.xlu1 %4904 }
0x25bd   :  { %v4911_v52 = vmul.f32 0.0625, %v4905_v51 }
0x25bf   :  { %v4915_v54 = vadd.f32 1e-05, %v4911_v52 }
0x25c0   :  { %v4902_v21 = vpop.xlane.xlu0 %4901 }
0x25c1   :  { %v4910_v56 = vmul.f32 0.0625, %v4902_v21  ;;  %6563 = vrsqrt.f32 %v4915_v54 }
0x25c3   :  { %v4914_v18 = vadd.f32 1e-05, %v4910_v56 }
0x25c4   :  { %v4908_v27 = vpop.xlane.xlu0 %4907 }
0x25c5   :  { %6565 = vrsqrt.f32 %v4914_v18  ;;  %v4912_v40 = vmul.f32 0.0625, %v4908_v27 }
0x25c7   :  { %v4916_v37 = vadd.f32 1e-05, %v4912_v40 }
0x25c8   :  { %v6562_v23 = vpop.eup %6561 }
0x25c9   :  { %6567 = vrsqrt.f32 %v4916_v37  ;;  %v4921_v58 = vmul.f32 %v6562_v23, %v4889_v57 }
0x25cb   :  { %v4931_v29 = vmul.f32 %v5684_v35, %v4921_v58 }
0x25cd   :  { %v4941_v11 = vadd.f32 %v5685_v19, %v4931_v29 }
0x25ce   :  { %v6564_v5 = vpop.eup %6563 }
0x25cf   :  { %v4923_v3 = vmul.f32 %v6564_v5, %v4891_v22 }
0x25d1   :  { %v4933_v8 = vmul.f32 %v5684_v35, %v4923_v3 }
0x25d2   :  { %v6566_v59 = vpop.eup %6565 }
0x25d3   :  { %v4922_v25 = vmul.f32 %v6566_v59, %v4890_v2  ;;  %v4943_v55 = vadd.f32 %v5685_v19, %v4933_v8  ;;  %v5690_v8 = vld [vmem:[#allocation46] ss:$0 sm:$0xff] }
0x25d5   :  { %v4932_v7 = vmul.f32 %v5684_v35, %v4922_v25 }
0x25d6   :  { %v6568_v20 = vpop.eup %6567 }
0x25d7   :  { %v4924_v0 = vmul.f32 %v6568_v20, %v4892_v41  ;;  %v4942_v12 = vadd.f32 %v5685_v19, %v4932_v7 }
0x25d9   :  { %v4945_v15 = vpack.c.bf16 %v4942_v12, %v4941_v11  ;;  %v4934_v34 = vmul.f32 %v5684_v35, %v4924_v0  ;;  %v5134_v12 = vpop.permute.xlu1 %5133 }
0x25db   :  { %6190 = vmatprep.mubr.msk.bf16.mxu1 %vm1148_vm3, %v4945_v15  ;;  %v4944_v9 = vadd.f32 %v5685_v19, %v4934_v34 }
0x25dd   :  { %v4946_v63 = vpack.c.bf16 %v4944_v9, %v4943_v55  ;;  %v5138_v15 = vpop.permute.xlu1 %5137 }
0x25df   :  { %6191 = vmatmul.mubr.msk.bf16.vlgmr.msra.gmra.mxu1 %vm1148_vm3, %v4946_v63 }
0x269f   :  { %v6192_v38 = vpop.f32.mrf.mxu1 }
0x26a0   :  { %v5011_v14 = vadd.f32 %v6192_v38, %v5686_v10 }
0x26a1   :  { %v5002_v57 = vpop.f32.mrf.mxu1 }
0x26a2   :  { %v5019_v62 = vmul.f32 %v5011_v14, %v5011_v14  ;;  %v5003_v17 = vadd.f32 %v5686_v10, %v5002_v57 }
0x26a3   :  { %v6193_v31 = vpop.f32.mrf.mxu1 }
0x26a4   :  { %v5023_v46 = vmul.f32 %v5019_v62, %v5011_v14  ;;  %v5017_v22 = vmul.f32 %v5003_v17, %v5003_v17  ;;  %v5014_v39 = vadd.f32 %v6193_v31, %v5686_v10 }
0x26a5   :  { %v5005_v1 = vpop.f32.mrf.mxu1 }
0x26a6   :  { %v5027_v13 = vmul.f32 0.044715, %v5023_v46  ;;  %v5021_v2 = vmul.f32 %v5017_v22, %v5003_v17  ;;  %v5020_v36 = vmul.f32 %v5014_v39, %v5014_v39  ;;  %v5006_v61 = vadd.f32 %v5686_v10, %v5005_v1 }
0x26a8   :  { %v5031_v33 = vadd.f32 %v5027_v13, %v5011_v14  ;;  %v5025_v26 = vmul.f32 0.044715, %v5021_v2  ;;  %v5024_v41 = vmul.f32 %v5020_v36, %v5014_v39  ;;  %v5018_v42 = vmul.f32 %v5006_v61, %v5006_v61 }
0x26aa   :  { %v5035_v43 = vmul.f32 0.7978846, %v5031_v33  ;;  %v5029_v60 = vadd.f32 %v5025_v26, %v5003_v17  ;;  %v5028_v53 = vmul.f32 0.044715, %v5024_v41  ;;  %v5022_v44 = vmul.f32 %v5018_v42, %v5006_v61 }
0x26ac   :  { %v5033_v45 = vmul.f32 0.7978846, %v5029_v60  ;;  %v5032_v28 = vadd.f32 %v5028_v53, %v5014_v39  ;;  %v5026_v51 = vmul.f32 0.044715, %v5022_v44  ;;  %6569 = vtanh.f32 %v5035_v43 }
0x26ae   :  { %6571 = vtanh.f32 %v5033_v45  ;;  %v5036_v52 = vmul.f32 0.7978846, %v5032_v28  ;;  %v5030_v54 = vadd.f32 %v5026_v51, %v5006_v61 }
0x26b0   :  { %6573 = vtanh.f32 %v5036_v52  ;;  %v5034_v21 = vmul.f32 0.7978846, %v5030_v54 }
0x26b2   :  { %6575 = vtanh.f32 %v5034_v21 }
0x26b9   :  { %v6570_v56 = vpop.eup %6569 }
0x26ba   :  { %v5043_v37 = vadd.f32 1.0, %v6570_v56 }
0x26bb   :  { %v6572_v18 = vpop.eup %6571 }
0x26bc   :  { %v5041_v27 = vadd.f32 1.0, %v6572_v18  ;;  %v5047_v3 = vmul.f32 0.5, %v5043_v37 }
0x26bd   :  { %v6574_v40 = vpop.eup %6573 }
0x26be   :  { %v5044_v23 = vadd.f32 1.0, %v6574_v40  ;;  %v5045_v5 = vmul.f32 0.5, %v5041_v27  ;;  %v5051_v20 = vmul.f32 %v5047_v3, %v5011_v14  ;;  %v5140_v14 = vpop.permute.xlu1 %5139  ;;  %v6419_v40 = vld [vmem:[%s8758_s10] sm:$0xff]  }
0x26bf   :  { %v6576_v58 = vpop.eup %6575  ;;  %6202 = vmatprep.subr.bf16.mxu1 %v6419_v40 }
0x26c0   :  { %v5048_v35 = vmul.f32 0.5, %v5044_v23  ;;  %v5042_v59 = vadd.f32 1.0, %v6576_v58  ;;  %v5049_v19 = vmul.f32 %v5045_v5, %v5003_v17  ;;  %6203 = vmatpush3.bf16.msra.mxu1 %v6419_v40 }
0x26c2   :  { %v5046_v25 = vmul.f32 0.5, %v5042_v59  ;;  %v5052_v29 = vmul.f32 %v5048_v35, %v5014_v39  ;;  %v5136_v39 = vpop.permute.xlu0 %5135 }
0x26c4   :  { %v5050_v7 = vmul.f32 %v5046_v25, %v5006_v61  ;;  %v5054_v11 = vpack.c.bf16 %v5052_v29, %v5051_v20 }
0x26c6   :  { %v5053_v0 = vpack.c.bf16 %v5050_v7, %v5049_v19 }
0x26c8   :  { %6198 = vmatprep.mubr.msk.bf16.mxu0 %vm1690_vm4, %v5053_v0 }
0x26c9   :  { %6199 = vmatmul.mubr.msk.bf16.vlgmr.msra.gmra.mxu0 %vm1690_vm4, %v5054_v11 }
0x2789   :  { %v6200_v34 = vpop.f32.mrf.mxu0 }
0x278a   :  { %v5127_v55 = vadd.f32 %v6200_v34, %v5690_v8 }
0x278b   :  { %v5118_v9 = vpop.f32.mrf.mxu0 }
0x278c   :  { %v5147_v63 = vadd.f32 %v5138_v15, %v5127_v55  ;;  %v5119_v32 = vadd.f32 %v5690_v8, %v5118_v9 }
0x278d   :  { %v6201_v30 = vpop.f32.mrf.mxu0 }
0x278e   :  { %v5145_v10 = vadd.f32 %v5134_v12, %v5119_v32  ;;  %v5130_v38 = vadd.f32 %v6201_v30, %v5690_v8  ;;  %v5151_v57 = vadd.f32 %v5147_v63, %v8507_v24  ;;  %v5695_v12 = vld [vmem:[%s8759_s27] ss:$0 sm:$0xff] }
0x278f   :  { %v5121_v62 = vpop.f32.mrf.mxu0  ;;  %v5696_v63 = vld [vmem:[%s8760_s20] ss:$0 sm:$0xff] }
0x2790   :  { %v5148_v17 = vadd.f32 %v5140_v14, %v5130_v38  ;;  %v5122_v31 = vadd.f32 %v5690_v8, %v5121_v62  ;;  %v5155_v46 = vadd.f32 %v5151_v57, %v7979_v47  ;;  %v5149_v22 = vadd.f32 %v5145_v10, %v8496_v6 }
0x2792   :  { %v5146_v1 = vadd.f32 %v5136_v39, %v5122_v31  ;;  %v5165_v13 = vsel %vm1148_vm3, %v5155_v46, 0.0  ;;  %v5153_v2 = vadd.f32 %v5149_v22, %v7981_v48  ;;  %v5152_v24 = vadd.f32 %v5148_v17, %v8512_v16  ;;  %v6420_v39 = vld [vmem:[%s7871_s19] sm:$0xff]  }
0x2793   :  { %5166 = vadd.xlane.f32.xlu0 %v5165_v13  ;;  %6208 = vmatprep.subr.bf16.mxu0 %v6420_v39 }
0x2794   :  { %v5159_v36 = vsel %vm1148_vm3, %v5153_v2, 0.0  ;;  %v5150_v61 = vadd.f32 %v5146_v1, %v8503_v4  ;;  %v5156_v6 = vadd.f32 %v5152_v24, %v7983_v49  ;;  %6209 = vmatpush3.bf16.msra.mxu0 %v6420_v39 }
0x2795   :  { %5160 = vadd.xlane.f32.xlu1 %v5159_v36 }
0x2796   :  { %v5154_v33 = vadd.f32 %v5150_v61, %v7985_v50  ;;  %v5168_v26 = vsel %vm1148_vm3, %v5156_v6, 0.0 }
0x2798   :  { %v5162_v47 = vsel %vm1148_vm3, %v5154_v33, 0.0 }
0x2799   :  { %5163 = vadd.xlane.f32.xlu0 %v5162_v47 }
0x279d   :  { %5169 = vadd.xlane.f32.xlu0 %v5168_v26 }
0x281c   :  { %v5167_v41 = vpop.xlane.xlu0 %5166 }
0x281d   :  { %v5173_v48 = vmul.f32 0.0625, %v5167_v41 }
0x281e   :  { %v5161_v42 = vpop.xlane.xlu1 %5160 }
0x281f   :  { %v5171_v43 = vmul.f32 0.0625, %v5161_v42  ;;  %v5177_v60 = vsub.f32 %v5155_v46, %v5173_v48 }
0x2821   :  { %v5175_v53 = vsub.f32 %v5153_v2, %v5171_v43  ;;  %v5181_v28 = vmul.f32 %v5177_v60, %v5177_v60  ;;  %v5697_v2 = vld [vmem:[%s7866_s12] ss:$0 sm:$0xff] }
0x2822   :  { %v5164_v4 = vpop.xlane.xlu0 %5163 }
0x2823   :  { %v5172_v44 = vmul.f32 0.0625, %v5164_v4  ;;  %v5179_v16 = vmul.f32 %v5175_v53, %v5175_v53  ;;  %v5189_v56 = vsel %vm1148_vm3, %v5181_v28, 0.0 }
0x2825   :  { %v5176_v45 = vsub.f32 %v5154_v33, %v5172_v44  ;;  %v5183_v50 = vsel %vm1148_vm3, %v5179_v16, 0.0 }
0x2826   :  { %v5170_v51 = vpop.xlane.xlu0 %5169  ;;  %5184 = vadd.xlane.f32.xlu1 %v5183_v50 }
0x2827   :  { %v5174_v49 = vmul.f32 0.0625, %v5170_v51  ;;  %v5180_v52 = vmul.f32 %v5176_v45, %v5176_v45 }
0x2829   :  { %v5178_v54 = vsub.f32 %v5156_v6, %v5174_v49  ;;  %v5186_v21 = vsel %vm1148_vm3, %v5180_v52, 0.0 }
0x282a   :  { %5187 = vadd.xlane.f32.xlu0 %v5186_v21  ;;  %5190 = vadd.xlane.f32.xlu1 %v5189_v56 }
0x282b   :  { %v5182_v18 = vmul.f32 %v5178_v54, %v5178_v54 }
0x282d   :  { %v5192_v27 = vsel %vm1148_vm3, %v5182_v18, 0.0 }
0x282e   :  { %5193 = vadd.xlane.f32.xlu0 %v5192_v27 }
0x28af   :  { %v5185_v37 = vpop.xlane.xlu1 %5184 }
0x28b0   :  { %v5195_v23 = vmul.f32 0.0625, %v5185_v37 }
0x28b2   :  { %v5199_v58 = vadd.f32 1e-05, %v5195_v23 }
0x28b3   :  { %v5188_v5 = vpop.xlane.xlu0 %5187  ;;  %v5191_v35 = vpop.xlane.xlu1 %5190 }
0x28b4   :  { %6577 = vrsqrt.f32 %v5199_v58  ;;  %v5196_v59 = vmul.f32 0.0625, %v5188_v5  ;;  %v5197_v3 = vmul.f32 0.0625, %v5191_v35 }
0x28b6   :  { %v5200_v25 = vadd.f32 1e-05, %v5196_v59  ;;  %v5201_v29 = vadd.f32 1e-05, %v5197_v3 }
0x28b7   :  { %v5194_v19 = vpop.xlane.xlu0 %5193 }
0x28b8   :  { %6579 = vrsqrt.f32 %v5200_v25  ;;  %v5198_v7 = vmul.f32 0.0625, %v5194_v19 }
0x28b9   :  { %6581 = vrsqrt.f32 %v5201_v29 }
0x28ba   :  { %v5202_v20 = vadd.f32 1e-05, %v5198_v7 }
0x28bc   :  { %6583 = vrsqrt.f32 %v5202_v20 }
0x28c1   :  { %v6578_v0 = vpop.eup %6577 }
0x28c2   :  { %v5207_v11 = vmul.f32 %v6578_v0, %v5175_v53  ;;  %v5701_v53 = vld [vmem:[%s7876_s4] ss:$0 sm:$0xff] }
0x28c4   :  { %v5217_v55 = vmul.f32 %v5695_v12, %v5207_v11 }
0x28c5   :  { %v6580_v8 = vpop.eup %6579 }
0x28c6   :  { %v6582_v15 = vpop.eup %6581  ;;  %v5208_v34 = vmul.f32 %v6580_v8, %v5176_v45  ;;  %v5227_v38 = vadd.f32 %v5696_v63, %v5217_v55 }
0x28c7   :  { %v5209_v9 = vmul.f32 %v6582_v15, %v5177_v60 }
0x28c8   :  { %v5218_v32 = vmul.f32 %v5695_v12, %v5208_v34 }
0x28c9   :  { %v6584_v30 = vpop.eup %6583  ;;  %v5219_v14 = vmul.f32 %v5695_v12, %v5209_v9 }
0x28ca   :  { %v5210_v10 = vmul.f32 %v6584_v30, %v5178_v54  ;;  %v5228_v57 = vadd.f32 %v5696_v63, %v5218_v32 }
0x28cb   :  { %v5229_v31 = vadd.f32 %v5696_v63, %v5219_v14 }
0x28cc   :  { %v5231_v62 = vpack.c.bf16 %v5228_v57, %v5227_v38  ;;  %v5220_v17 = vmul.f32 %v5695_v12, %v5210_v10 }
0x28ce   :  { %6204 = vmatprep.mubr.msk.bf16.mxu1 %vm1148_vm3, %v5231_v62  ;;  %v5230_v46 = vadd.f32 %v5696_v63, %v5220_v17 }
0x28d0   :  { %v5232_v22 = vpack.c.bf16 %v5230_v46, %v5229_v31 }
0x28d2   :  { %6205 = vmatmul.mubr.msk.bf16.vlgmr.msra.gmra.mxu1 %vm1148_vm3, %v5232_v22 }
0x2992   :  { %v6206_v1 = vpop.f32.mrf.mxu1 }
0x2993   :  { %v5297_v33 = vadd.f32 %v6206_v1, %v5697_v2 }
0x2994   :  { %v5288_v13 = vpop.f32.mrf.mxu1 }
0x2995   :  { %v5289_v61 = vadd.f32 %v5697_v2, %v5288_v13  ;;  %v5305_v42 = vmax.f32 %v5297_v33, 0.0 }
0x2996   :  { %v6207_v36 = vpop.f32.mrf.mxu1 }
0x2997   :  { %v5300_v24 = vadd.f32 %v6207_v36, %v5697_v2  ;;  %v5303_v41 = vmax.f32 %v5289_v61, 0.0 }
0x2998   :  { %v5291_v47 = vpop.f32.mrf.mxu1 }
0x2999   :  { %v5292_v6 = vadd.f32 %v5697_v2, %v5291_v47  ;;  %v5306_v26 = vmax.f32 %v5300_v24, 0.0 }
0x299b   :  { %v5304_v48 = vmax.f32 %v5292_v6, 0.0  ;;  %v5308_v60 = vpack.c.bf16 %v5306_v26, %v5305_v42 }
0x299d   :  { %v5307_v43 = vpack.c.bf16 %v5304_v48, %v5303_v41 }
0x299f   :  { %6210 = vmatprep.mubr.msk.bf16.mxu0 %vm1148_vm3, %v5307_v43 }
0x29a0   :  { %6211 = vmatmul.mubr.msk.bf16.vlgmr.msra.gmra.mxu0 %vm1148_vm3, %v5308_v60 }
0x2a60   :  { %v6212_v4 = vpop.f32.mrf.mxu0 }
0x2a61   :  { %v5373_v44 = vadd.f32 %v6212_v4, %v5701_v53 }
0x2a62   :  { %v5364_v16 = vpop.f32.mrf.mxu0 }
0x2a63   :  { %5381 = vst [vmem:[%s7881_s30 + $0x10] sm:$0xff] %v5373_v44  ;;  %v5365_v45 = vadd.f32 %v5701_v53, %v5364_v16 }
0x2a64   :  { %v6213_v50 = vpop.f32.mrf.mxu0 }
0x2a65   :  { %5379 = vst [vmem:[%s7881_s30] sm:$0xff] %v5365_v45  ;;  %v5376_v28 = vadd.f32 %v6213_v50, %v5701_v53 }
0x2a66   :  { %v5367_v51 = vpop.f32.mrf.mxu0 }
0x2a67   :  { %5382 = vst [vmem:[%s7881_s30 + $0x18] sm:$0xff] %v5376_v28  ;;  %v5368_v49 = vadd.f32 %v5701_v53, %v5367_v51 }
0x2a69   :  { %5380 = vst [vmem:[%s7881_s30 + $0x8] sm:$0xff] %v5368_v49 }
0x2a6a   :  { %5387 = vsyncpa [#allocation3], 1 }
0x2a6b   :  { %5388 = vsyncpa [#allocation5], 1 }
0x2a6c   :  { %5389 = vsyncpa [#allocation8], 1 }
0x2a6d   :  { %5390 = vsyncpa [#allocation11], 1 }
0x2a6e   :  { %5391 = vsyncpa [#allocation14], 1 }
0x2a6f   :  { %5392 = vsyncpa [#allocation17], 1 }
0x2a70   :  { %5393 = vsyncpa [#allocation20], 1 }
0x2a71   :  { %5394 = vsyncpa [#allocation23], 1 }
0x2a72   :  { %5395 = vsyncpa [#allocation26], 1 }
0x2a73   :  { %5396 = vsyncpa [#allocation29], 1 }
0x2a74   :  { %5397 = vsyncpa [#allocation32], 1 }
0x2a75   :  { %5398 = vsyncpa [#allocation35], 1 }
0x2a76   :  { %5399 = vsyncpa [#allocation38], 1 }
0x2a77   :  { %5400 = vsyncpa [#allocation41], 1 }
0x2a78   :  { %5401 = vsyncpa [#allocation44], 1 }
0x2a79   :  { %5402 = vsyncpa [#allocation47], 1 }

</bundles_post_ra>
